<compile_context>
chip_gen: v5e
topology: v5e:2x2
jax: 0.10.0
libtpu: 0.0.40
codegen_flags: <defaults>
</compile_context>

<pallas_src>
import functools

import jax
import jax.numpy as jnp
from jax import lax
from jax.experimental import pallas as pl
from jax.experimental.pallas import tpu as pltpu

E = 1e-4        # BatchNorm eps (matches the PyTorch module)
SLOPE = 0.01    # F.leaky_relu default negative slope
LANE = 128      # TPU lane width; channel slots are padded to a multiple of this
HALO = 8        # sublane-aligned halo rows (max conv halo needed is 6)

# Static per-tap input shifts (shift = k*dilation - pad) for the inception branches.
S1_SHIFTS = (-1, 0, 1,           # branch1: k=3, d=1, p=1
             -3, 0, 3,           # branch2: k=3, d=3, p=3
             0)                  # 1x1 reductions feeding branch3 / branch4
S2_SHIFTS = (-4, -2, 0, 2, 4,    # branch3 2nd conv: k=5, d=2, p=4
             -6, -3, 0, 3, 6)    # branch4 2nd conv: k=5, d=3, p=6


# ---------------------------------------------------------------------------
# compiler params / BlockSpec helpers
# ---------------------------------------------------------------------------
@functools.lru_cache(maxsize=1)
def _vmem_limit_bytes():
  """Generation-aware scoped-VMEM budget (~75% of physical, conservative fallback)."""
  try:
    cap = int(pltpu.get_tpu_info().vmem_capacity_bytes)
  except Exception:                       # info query unavailable -> safe default
    cap = 64 * 1024 * 1024
  return max(32 * 1024 * 1024, min(100 * 1024 * 1024, (cap * 3) // 4))


def _cparams():
  return pltpu.CompilerParams(
      dimension_semantics=("parallel",),            # batch grid axis -> megacore split
      vmem_limit_bytes=_vmem_limit_bytes())


def _bspec(block, batched):
  nd = len(block)
  if batched:
    return pl.BlockSpec(block, lambda b, _nd=nd: (b,) + (0,) * (_nd - 1))
  return pl.BlockSpec(block, lambda b, _nd=nd: (0,) * _nd)


def _leaky(y):
  return jnp.maximum(y, SLOPE * y)        # == leaky_relu for 0 < slope < 1


# ---------------------------------------------------------------------------
# Pallas kernels
# ---------------------------------------------------------------------------
def _init_conv_kernel(x_ref, w_ref, scale_ref, shift_ref, o_ref, padx_ref,
                      *, ksize, pad, dilation):
  """Fused Conv1d(bias=False) + folded BatchNorm1d + LeakyReLU (init block).

  x_ref  : (1, L, CINP) f32      one batch row, channels zero-padded to a lane multiple
  w_ref  : (K, CINP, CP) bf16    per-tap weights (zero rows/cols on padded channels)
  scale  : (1, CP) f32           folded BN scale (zero on padded channels)
  shift  : (1, CP) f32
  o_ref  : (1, L, CP) f32
  padx   : (L + 2*HALO, CINP) f32  halo-padded input scratch
  """
  _, l, cinp = x_ref.shape
  cp = o_ref.shape[2]

  # Zero only the tiny halo rows (every step; interior rows are fully overwritten below).
  zh = jnp.zeros((HALO, cinp), jnp.float32)
  padx_ref[0:HALO, :] = zh
  padx_ref[HALO + l:2 * HALO + l, :] = zh
  padx_ref[HALO:HALO + l, :] = x_ref[...].reshape(l, cinp)

  # Per-tap matmul accumulation — no im2col materialization.
  acc = None
  for k in range(ksize):
    sh = k * dilation - pad
    a = padx_ref[HALO + sh:HALO + sh + l, :].astype(jnp.bfloat16)
    d = jnp.dot(a, w_ref[k], preferred_element_type=jnp.float32)
    acc = d if acc is None else acc + d

  y = _leaky(acc * scale_ref[...] + shift_ref[...])          # f32 epilogue
  o_ref[...] = y.reshape(1, l, cp).astype(o_ref.dtype)


def _inception_block_kernel(h_ref, w1_ref, s1s_ref, s1b_ref, w2_ref, s2s_ref,
                            s2b_ref, mask_ref, *rest, use_residual, with_head):
  """Fused: max_pool1d(2) -> InceptionBlock (4 branches + concat + residual)
  [-> global avg pool + Linear when with_head].

  h_ref : (1, 2L, CP) f32     pre-pool activation (channel-padded)
  w1    : (7, CP, CP) bf16    stage-1 per-tap weights; DENSE output columns:
                              [0:bc)=branch1, [bc:2bc)=branch2, [2bc:3bc)=s3 (1x1),
                              [3bc:4bc)=s4 (1x1), rest zero.
  w2    : (10, CP, CP) bf16   stage-2 per-tap weights (branch3/branch4 dilated k=5):
                              read the s3/s4 columns, write the final b3/b4 columns.
  mask  : (1, CP) f32         1.0 on the [b1|b2] columns, 0 elsewhere.
  """
  if with_head:
    lw_ref, lb_ref, o_ref, padx_ref, pady_ref = rest
  else:
    o_ref, padx_ref, pady_ref = rest

  _, l2, cp = h_ref.shape
  lp = l2 // 2

  # --- fused max_pool1d(kernel_size=2, stride=2): strided even/odd reads + VPU max -----
  # TODO(synk): fusing the pool into the producer's epilogue would halve the HBM traffic
  #             at each level boundary; kept in the consumer since the strided ref read is
  #             the proven lowering path.
  xpool = jnp.maximum(h_ref[:, pl.ds(0, lp, 2), :],
                      h_ref[:, pl.ds(1, lp, 2), :]).reshape(lp, cp)

  zh = jnp.zeros((HALO, cp), jnp.float32)

  # --- stage 1: branch1 + branch2 + both 1x1 reductions as 7 per-tap matmuls -----------
  padx_ref[0:HALO, :] = zh
  padx_ref[HALO + lp:2 * HALO + lp, :] = zh
  padx_ref[HALO:HALO + lp, :] = xpool                 # sublane-aligned store (offset 8)

  acc1 = None
  for t, sh in enumerate(S1_SHIFTS):
    a = padx_ref[HALO + sh:HALO + sh + lp, :].astype(jnp.bfloat16)
    d = jnp.dot(a, w1_ref[t], preferred_element_type=jnp.float32)
    acc1 = d if acc1 is None else acc1 + d
  y1 = _leaky(acc1 * s1s_ref[...] + s1b_ref[...])     # [b1|b2|s3|s4|0...]

  # --- stage 2: the dilated k=5 convs of branch3/branch4 as 10 per-tap matmuls ---------
  pady_ref[0:HALO, :] = zh
  pady_ref[HALO + lp:2 * HALO + lp, :] = zh
  pady_ref[HALO:HALO + lp, :] = y1

  acc2 = None
  for t, sh in enumerate(S2_SHIFTS):
    a = pady_ref[HALO + sh:HALO + sh + lp, :].astype(jnp.bfloat16)
    d = jnp.dot(a, w2_ref[t], preferred_element_type=jnp.float32)
    acc2 = d if acc2 is None else acc2 + d
  y2 = _leaky(acc2 * s2s_ref[...] + s2b_ref[...])     # [0|0|b3|b4|0...]

  out = y1 * mask_ref[...] + y2                       # concat [b1|b2|b3|b4] (lane-dense)
  if use_residual:
    out = out + xpool                                 # f32 residual (matches reference)

  if with_head:
    # global average pool over L + Linear (Dropout p=0.25 is identity in eval mode)
    ap = jnp.sum(out, axis=0, keepdims=True) * (1.0 / lp)          # (1, CP)
    logits = jnp.dot(ap, lw_ref[...], preferred_element_type=jnp.float32) + lb_ref[...]
    o_ref[...] = logits.reshape(1, 1, -1).astype(o_ref.dtype)
  else:
    o_ref[...] = out.reshape(1, lp, cp).astype(o_ref.dtype)


def _head_kernel(x_ref, w_ref, b_ref, o_ref):
  """Standalone avg_pool1d(full length) + Linear (only used when depth == 1)."""
  _, l, cp = x_ref.shape
  ap = jnp.sum(x_ref[...].reshape(l, cp), axis=0, keepdims=True) * (1.0 / l)
  o_ref[...] = (jnp.dot(ap, w_ref[...], preferred_element_type=jnp.float32)
                + b_ref[...]).reshape(1, 1, -1).astype(o_ref.dtype)


# ---------------------------------------------------------------------------
# pallas_call wrappers
# ---------------------------------------------------------------------------
def init_conv(x, prm, *, pad=2, dilation=1):
  n, l, cinp = x.shape
  cp = prm["scale"].shape[-1]
  ksize = prm["w"].shape[0]
  kernel = functools.partial(_init_conv_kernel, ksize=ksize, pad=pad, dilation=dilation)
  return pl.pallas_call(
      kernel,
      grid=(n,),
      in_specs=[
          _bspec((1, l, cinp), True),
          _bspec(prm["w"].shape, False),
          _bspec(prm["scale"].shape, False),
          _bspec(prm["shift"].shape, False),
      ],
      out_specs=_bspec((1, l, cp), True),
      out_shape=jax.ShapeDtypeStruct((n, l, cp), jnp.float32),
      scratch_shapes=[pltpu.VMEM((l + 2 * HALO, cinp), jnp.float32)],
      compiler_params=_cparams(),
  )(x, prm["w"], prm["scale"], prm["shift"])


def inception_block(h, prm, *, use_residual, head=None):
  n, l2, cp = h.shape
  lp = l2 // 2
  with_head = head is not None
  kernel = functools.partial(_inception_block_kernel,
                             use_residual=use_residual, with_head=with_head)
  in_arrays = [h, prm["w1"], prm["s1_scale"], prm["s1_shift"],
               prm["w2"], prm["s2_scale"], prm["s2_shift"], prm["mask12"]]
  in_specs = [_bspec((1, l2, cp), True)]
  in_specs += [_bspec(a.shape, False) for a in in_arrays[1:]]
  if with_head:
    lin_w, lin_b = head
    o = lin_w.shape[1]
    in_arrays += [lin_w, lin_b]
    in_specs += [_bspec(lin_w.shape, False), _bspec(lin_b.shape, False)]
    out_specs = _bspec((1, 1, o), True)
    out_shape = jax.ShapeDtypeStruct((n, 1, o), jnp.float32)
  else:
    out_specs = _bspec((1, lp, cp), True)
    out_shape = jax.ShapeDtypeStruct((n, lp, cp), jnp.float32)

  scratch = [
      pltpu.VMEM((lp + 2 * HALO, cp), jnp.float32),   # halo-padded pooled input
      pltpu.VMEM((lp + 2 * HALO, cp), jnp.float32),   # halo-padded stage-1 output
  ]
  return pl.pallas_call(
      kernel,
      grid=(n,),
      in_specs=in_specs,
      out_specs=out_specs,
      out_shape=out_shape,
      scratch_shapes=scratch,
      compiler_params=_cparams(),
  )(*in_arrays)


def head_only(h, lin_w, lin_b):
  n, l, cp = h.shape
  o = lin_w.shape[1]
  out = pl.pallas_call(
      _head_kernel,
      grid=(n,),
      in_specs=[_bspec((1, l, cp), True), _bspec(lin_w.shape, False),
                _bspec(lin_b.shape, False)],
      out_specs=_bspec((1, 1, o), True),
      out_shape=jax.ShapeDtypeStruct((n, 1, o), jnp.float32),
      compiler_params=_cparams(),
  )(h, lin_w, lin_b)
  return out.reshape(n, o)


# ---------------------------------------------------------------------------
# parameters: raw (per-conv, for the reference) + packed (merged / lane-padded)
# ---------------------------------------------------------------------------
def make_conv_params(key, c_in, c_out, ksize):
  k1, k2, k3, k4, k5 = jax.random.split(key, 5)
  w = jax.random.normal(k1, (ksize, c_in, c_out), jnp.float32) / jnp.sqrt(float(c_in * ksize))
  gamma = 1.0 + 0.1 * jax.random.normal(k2, (c_out,), jnp.float32)
  beta = 0.1 * jax.random.normal(k3, (c_out,), jnp.float32)
  mean = 0.1 * jax.random.normal(k4, (c_out,), jnp.float32)
  var = jnp.abs(jax.random.normal(k5, (c_out,), jnp.float32)) + 0.5
  scale = gamma / jnp.sqrt(var + E)
  shift = beta - mean * scale
  return {"w": w, "scale": scale, "shift": shift}


def init_params(key, c_in, conv_channels, depth, output_size):
  bc = conv_channels // 4
  keys = jax.random.split(key, depth + 1)
  params = {"init": make_conv_params(keys[0], c_in, conv_channels, 5)}
  blocks = []
  for d in range(1, depth):
    bk = jax.random.split(keys[d], 6)
    blocks.append({
        "b1": make_conv_params(bk[0], conv_channels, bc, 3),
        "b2": make_conv_params(bk[1], conv_channels, bc, 3),
        "b3_0": make_conv_params(bk[2], conv_channels, bc, 1),
        "b3_1": make_conv_params(bk[3], bc, bc, 5),
        "b4_0": make_conv_params(bk[4], conv_channels, bc, 1),
        "b4_1": make_conv_params(bk[5], bc, bc, 5),
    })
  params["blocks"] = blocks
  kl1, kl2 = jax.random.split(keys[depth], 2)
  params["lin_w"] = jax.random.normal(kl1, (conv_channels, output_size), jnp.float32) / \
      jnp.sqrt(float(conv_channels))
  params["lin_b"] = 0.1 * jax.random.normal(kl2, (1, output_size), jnp.float32)
  return params


def _round_up(x, m):
  return ((x + m - 1) // m) * m


def pack_init_params(raw, cp, cinp):
  w = raw["w"]                                    # (K, c_in, C)
  k, c_in, c_out = w.shape
  wp = jnp.zeros((k, cinp, cp), jnp.float32).at[:, 0:c_in, 0:c_out].set(w)
  scale = jnp.zeros((1, cp), jnp.float32).at[0, 0:c_out].set(raw["scale"])
  shift = jnp.zeros((1, cp), jnp.float32).at[0, 0:c_out].set(raw["shift"])
  return {"w": wp.astype(jnp.bfloat16), "scale": scale, "shift": shift}


def pack_block_params(raw, bc, c, cp):
  # stage 1: per-tap (CP, CP) weights, DENSE output columns [b1|b2|s3|s4|0...]
  w1 = jnp.zeros((7, cp, cp), jnp.float32)
  w1 = w1.at[0:3, 0:c, 0:bc].set(raw["b1"]["w"])
  w1 = w1.at[3:6, 0:c, bc:2 * bc].set(raw["b2"]["w"])
  w1 = w1.at[6, 0:c, 2 * bc:3 * bc].set(raw["b3_0"]["w"][0])
  w1 = w1.at[6, 0:c, 3 * bc:4 * bc].set(raw["b4_0"]["w"][0])

  s1_scale = jnp.zeros((1, cp), jnp.float32)
  s1_shift = jnp.zeros((1, cp), jnp.float32)
  for off, name in ((0, "b1"), (bc, "b2"), (2 * bc, "b3_0"), (3 * bc, "b4_0")):
    s1_scale = s1_scale.at[0, off:off + bc].set(raw[name]["scale"])
    s1_shift = s1_shift.at[0, off:off + bc].set(raw[name]["shift"])

  # stage 2: per-tap (CP, CP) weights reading the s3/s4 columns, writing b3/b4 columns
  w2 = jnp.zeros((10, cp, cp), jnp.float32)
  w2 = w2.at[0:5, 2 * bc:3 * bc, 2 * bc:3 * bc].set(raw["b3_1"]["w"])
  w2 = w2.at[5:10, 3 * bc:4 * bc, 3 * bc:4 * bc].set(raw["b4_1"]["w"])

  s2_scale = jnp.zeros((1, cp), jnp.float32)
  s2_shift = jnp.zeros((1, cp), jnp.float32)
  s2_scale = s2_scale.at[0, 2 * bc:3 * bc].set(raw["b3_1"]["scale"])
  s2_scale = s2_scale.at[0, 3 * bc:4 * bc].set(raw["b4_1"]["scale"])
  s2_shift = s2_shift.at[0, 2 * bc:3 * bc].set(raw["b3_1"]["shift"])
  s2_shift = s2_shift.at[0, 3 * bc:4 * bc].set(raw["b4_1"]["shift"])

  mask12 = jnp.zeros((1, cp), jnp.float32).at[0, 0:2 * bc].set(1.0)

  return {"w1": w1.astype(jnp.bfloat16), "s1_scale": s1_scale, "s1_shift": s1_shift,
          "w2": w2.astype(jnp.bfloat16), "s2_scale": s2_scale, "s2_shift": s2_shift,
          "mask12": mask12}


def pack_params(raw, conv_channels):
  bc = conv_channels // 4
  cp = _round_up(conv_channels, LANE)
  c_in = raw["init"]["w"].shape[1]
  cinp = _round_up(c_in, LANE)
  packed = {
      "init": pack_init_params(raw["init"], cp, cinp),
      "blocks": [pack_block_params(b, bc, conv_channels, cp) for b in raw["blocks"]],
  }
  lw = raw["lin_w"]
  packed["lin_w"] = jnp.zeros((cp, lw.shape[1]), jnp.float32).at[0:lw.shape[0], :].set(lw)
  packed["lin_b"] = raw["lin_b"].reshape(1, -1)
  return packed


# ---------------------------------------------------------------------------
# forward pass
# ---------------------------------------------------------------------------
def inception_net_forward(x_nlc_padded, packed, depth, conv_channels):
  use_residual = conv_channels == 4 * (conv_channels // 4)
  h = init_conv(x_nlc_padded, packed["init"])
  if depth == 1:
    return head_only(h, packed["lin_w"], packed["lin_b"])
  for d in range(1, depth):
    last = d == depth - 1
    head_args = (packed["lin_w"], packed["lin_b"]) if last else None
    h = inception_block(h, packed["blocks"][d - 1],
                        use_residual=use_residual, head=head_args)
  return h.reshape(h.shape[0], -1)   # (N, 1, O) -> (N, O)


# ---------------------------------------------------------------------------
# pure-JAX reference (eval-mode semantics, bf16 MXU operands like the kernel)
# ---------------------------------------------------------------------------
def _ref_conv_block(x, prm, *, pad, dilation):
  y = lax.conv_general_dilated(
      x.astype(jnp.bfloat16), prm["w"].astype(jnp.bfloat16),
      window_strides=(1,), padding=[(pad, pad)], rhs_dilation=(dilation,),
      dimension_numbers=("NHC", "HIO", "NHC"),
      preferred_element_type=jnp.float32)
  y = y * prm["scale"][None, None, :] + prm["shift"][None, None, :]
  return jnp.where(y >= 0.0, y, SLOPE * y)


def reference_forward(x_nlc, raw, depth, conv_channels):
  use_residual = conv_channels == 4 * (conv_channels // 4)
  h = _ref_conv_block(x_nlc, raw["init"], pad=2, dilation=1)
  for d in range(1, depth):
    n, l, c = h.shape
    h = jnp.max(h[:, :2 * (l // 2), :].reshape(n, l // 2, 2, c), axis=2)  # max_pool1d(2)
    blk = raw["blocks"][d - 1]
    b1 = _ref_conv_block(h, blk["b1"], pad=1, dilation=1)
    b2 = _ref_conv_block(h, blk["b2"], pad=3, dilation=3)
    b3 = _ref_conv_block(_ref_conv_block(h, blk["b3_0"], pad=0, dilation=1),
                         blk["b3_1"], pad=4, dilation=2)
    b4 = _ref_conv_block(_ref_conv_block(h, blk["b4_0"], pad=0, dilation=1),
                         blk["b4_1"], pad=6, dilation=3)
    out = jnp.concatenate([b1, b2, b3, b4], axis=-1)
    if use_residual:
      out = out + h
    h = out
  ap = jnp.mean(h, axis=1)                       # avg_pool1d over full length
  return ap @ raw["lin_w"] + raw["lin_b"]        # dropout is identity in eval mode


# ---------------------------------------------------------------------------
if __name__ == "__main__":
  key = jax.random.PRNGKey(0)
  kx, kp = jax.random.split(key)

  N, C_IN, L = 2, 4, 16
  CONV_CHANNELS, DEPTH, OUTPUT_SIZE = 32, 3, 8

  # PyTorch-style (N, C, L) input, transposed once to the kernels' channels-last layout
  # and zero-padded to a lane multiple (one-time host-side prep).
  x_ncl = jax.random.normal(kx, (N, C_IN, L), jnp.float32)
  x_nlc = jnp.transpose(x_ncl, (0, 2, 1))
  cinp = _round_up(C_IN, LANE)
  x_pad = jnp.zeros((N, L, cinp), jnp.float32).at[:, :, 0:C_IN].set(x_nlc)

  raw = init_params(kp, C_IN, CONV_CHANNELS, DEPTH, OUTPUT_SIZE)
  packed = pack_params(raw, CONV_CHANNELS)

  fwd = jax.jit(functools.partial(inception_net_forward,
                                  depth=DEPTH, conv_channels=CONV_CHANNELS))
  out = jax.block_until_ready(fwd(x_pad, packed))

  assert out.shape == (N, OUTPUT_SIZE), out.shape
  assert bool(jnp.all(jnp.isfinite(out)))

  ref = reference_forward(x_nlc, raw, DEPTH, CONV_CHANNELS)
  err = float(jnp.max(jnp.abs(out - ref)))
  assert err < 1e-2, f"max abs err vs reference = {err}"

  print("KERNEL_OK")
</pallas_src>

<mosaic_0001>
module attributes {stable_mosaic.version = 11 : i64} {
  func.func @_init_conv_kernel(%arg0: i32, %arg1: memref<1x16x128xf32, #tpu.memory_space<vmem>>, %arg2: memref<5x128x128xbf16, #tpu.memory_space<vmem>>, %arg3: memref<1x128xf32, #tpu.memory_space<vmem>>, %arg4: memref<1x128xf32, #tpu.memory_space<vmem>>, %arg5: memref<1x16x128xf32, #tpu.memory_space<vmem>>, %arg6: memref<32x128xf32, #tpu.memory_space<vmem>>) attributes {dimension_semantics = [#tpu.dimension_semantics<parallel>], iteration_bounds = array<i64: 2>, scalar_prefetch = 0 : i64, scratch_operands = 1 : i64, tpu.core_type = #tpu.core_type<tc>, window_params = [{transform_indices = @transform_0, window_bounds = array<i64: 1, 16, 128>}, {pipeline_mode = #tpu.pipeline_mode<synchronous>, transform_indices = @transform_1, window_bounds = array<i64: 5, 128, 128>}, {pipeline_mode = #tpu.pipeline_mode<synchronous>, transform_indices = @transform_2, window_bounds = array<i64: 1, 128>}, {pipeline_mode = #tpu.pipeline_mode<synchronous>, transform_indices = @transform_3, window_bounds = array<i64: 1, 128>}, {transform_indices = @transform_4, window_bounds = array<i64: 1, 16, 128>}]} {
    %cst = arith.constant 0.000000e+00 : f32
    %0 = vector.broadcast %cst : f32 to vector<8x128xf32>
    %c0 = arith.constant 0 : index
    %c0_0 = arith.constant 0 : index
    %1 = vector.load %arg6[%c0, %c0_0] : memref<32x128xf32, #tpu.memory_space<vmem>>, vector<8x128xf32>
    tpu.vector_store %arg6[%c0, %c0_0], %0 {strides = array<i32>} : memref<32x128xf32, #tpu.memory_space<vmem>>, vector<8x128xf32>,
    %c24 = arith.constant 24 : index
    %c0_1 = arith.constant 0 : index
    %2 = vector.load %arg6[%c24, %c0_1] : memref<32x128xf32, #tpu.memory_space<vmem>>, vector<8x128xf32>
    tpu.vector_store %arg6[%c24, %c0_1], %0 {strides = array<i32>} : memref<32x128xf32, #tpu.memory_space<vmem>>, vector<8x128xf32>,
    %c0_2 = arith.constant 0 : index
    %c0_3 = arith.constant 0 : index
    %c0_4 = arith.constant 0 : index
    %3 = vector.load %arg1[%c0_2, %c0_3, %c0_4] : memref<1x16x128xf32, #tpu.memory_space<vmem>>, vector<1x16x128xf32>
    %4 = vector.shape_cast %3 : vector<1x16x128xf32> to vector<16x128xf32>
    %c8 = arith.constant 8 : index
    %c0_5 = arith.constant 0 : index
    %5 = vector.load %arg6[%c8, %c0_5] : memref<32x128xf32, #tpu.memory_space<vmem>>, vector<16x128xf32>
    tpu.vector_store %arg6[%c8, %c0_5], %4 {strides = array<i32>} : memref<32x128xf32, #tpu.memory_space<vmem>>, vector<16x128xf32>,
    %c6 = arith.constant 6 : index
    %c0_6 = arith.constant 0 : index
    %6 = vector.load %arg6[%c6, %c0_6] : memref<32x128xf32, #tpu.memory_space<vmem>>, vector<16x128xf32>
    %7 = arith.truncf %6 : vector<16x128xf32> to vector<16x128xbf16>
    %c0_7 = arith.constant 0 : index
    %c0_8 = arith.constant 0 : index
    %c0_9 = arith.constant 0 : index
    %8 = vector.load %arg2[%c0_7, %c0_8, %c0_9] : memref<5x128x128xbf16, #tpu.memory_space<vmem>>, vector<1x128x128xbf16>
    %9 = vector.shape_cast %8 : vector<1x128x128xbf16> to vector<128x128xbf16>
    %cst_10 = arith.constant dense<0.000000e+00> : vector<16x128xf32>
    %10 = tpu.matmul %7, %9, %cst_10 {dimension_numbers = #tpu.dot_dimension_numbers<[1], [0], [0], [1], [0, 0, 1, 1], [], []>} : vector<16x128xbf16>, vector<128x128xbf16>, vector<16x128xf32> -> vector<16x128xf32>
    %c7 = arith.constant 7 : index
    %c0_11 = arith.constant 0 : index
    %11 = vector.load %arg6[%c7, %c0_11] : memref<32x128xf32, #tpu.memory_space<vmem>>, vector<16x128xf32>
    %12 = arith.truncf %11 : vector<16x128xf32> to vector<16x128xbf16>
    %c1 = arith.constant 1 : index
    %c0_12 = arith.constant 0 : index
    %c0_13 = arith.constant 0 : index
    %13 = vector.load %arg2[%c1, %c0_12, %c0_13] : memref<5x128x128xbf16, #tpu.memory_space<vmem>>, vector<1x128x128xbf16>
    %14 = vector.shape_cast %13 : vector<1x128x128xbf16> to vector<128x128xbf16>
    %cst_14 = arith.constant dense<0.000000e+00> : vector<16x128xf32>
    %15 = tpu.matmul %12, %14, %cst_14 {dimension_numbers = #tpu.dot_dimension_numbers<[1], [0], [0], [1], [0, 0, 1, 1], [], []>} : vector<16x128xbf16>, vector<128x128xbf16>, vector<16x128xf32> -> vector<16x128xf32>
    %16 = arith.addf %10, %15 : vector<16x128xf32>
    %c8_15 = arith.constant 8 : index
    %c0_16 = arith.constant 0 : index
    %17 = vector.load %arg6[%c8_15, %c0_16] : memref<32x128xf32, #tpu.memory_space<vmem>>, vector<16x128xf32>
    %18 = arith.truncf %17 : vector<16x128xf32> to vector<16x128xbf16>
    %c2 = arith.constant 2 : index
    %c0_17 = arith.constant 0 : index
    %c0_18 = arith.constant 0 : index
    %19 = vector.load %arg2[%c2, %c0_17, %c0_18] : memref<5x128x128xbf16, #tpu.memory_space<vmem>>, vector<1x128x128xbf16>
    %20 = vector.shape_cast %19 : vector<1x128x128xbf16> to vector<128x128xbf16>
    %cst_19 = arith.constant dense<0.000000e+00> : vector<16x128xf32>
    %21 = tpu.matmul %18, %20, %cst_19 {dimension_numbers = #tpu.dot_dimension_numbers<[1], [0], [0], [1], [0, 0, 1, 1], [], []>} : vector<16x128xbf16>, vector<128x128xbf16>, vector<16x128xf32> -> vector<16x128xf32>
    %22 = arith.addf %16, %21 : vector<16x128xf32>
    %c9 = arith.constant 9 : index
    %c0_20 = arith.constant 0 : index
    %23 = vector.load %arg6[%c9, %c0_20] : memref<32x128xf32, #tpu.memory_space<vmem>>, vector<16x128xf32>
    %24 = arith.truncf %23 : vector<16x128xf32> to vector<16x128xbf16>
    %c3 = arith.constant 3 : index
    %c0_21 = arith.constant 0 : index
    %c0_22 = arith.constant 0 : index
    %25 = vector.load %arg2[%c3, %c0_21, %c0_22] : memref<5x128x128xbf16, #tpu.memory_space<vmem>>, vector<1x128x128xbf16>
    %26 = vector.shape_cast %25 : vector<1x128x128xbf16> to vector<128x128xbf16>
    %cst_23 = arith.constant dense<0.000000e+00> : vector<16x128xf32>
    %27 = tpu.matmul %24, %26, %cst_23 {dimension_numbers = #tpu.dot_dimension_numbers<[1], [0], [0], [1], [0, 0, 1, 1], [], []>} : vector<16x128xbf16>, vector<128x128xbf16>, vector<16x128xf32> -> vector<16x128xf32>
    %28 = arith.addf %22, %27 : vector<16x128xf32>
    %c10 = arith.constant 10 : index
    %c0_24 = arith.constant 0 : index
    %29 = vector.load %arg6[%c10, %c0_24] : memref<32x128xf32, #tpu.memory_space<vmem>>, vector<16x128xf32>
    %30 = arith.truncf %29 : vector<16x128xf32> to vector<16x128xbf16>
    %c4 = arith.constant 4 : index
    %c0_25 = arith.constant 0 : index
    %c0_26 = arith.constant 0 : index
    %31 = vector.load %arg2[%c4, %c0_25, %c0_26] : memref<5x128x128xbf16, #tpu.memory_space<vmem>>, vector<1x128x128xbf16>
    %32 = vector.shape_cast %31 : vector<1x128x128xbf16> to vector<128x128xbf16>
    %cst_27 = arith.constant dense<0.000000e+00> : vector<16x128xf32>
    %33 = tpu.matmul %30, %32, %cst_27 {dimension_numbers = #tpu.dot_dimension_numbers<[1], [0], [0], [1], [0, 0, 1, 1], [], []>} : vector<16x128xbf16>, vector<128x128xbf16>, vector<16x128xf32> -> vector<16x128xf32>
    %34 = arith.addf %28, %33 : vector<16x128xf32>
    %c0_28 = arith.constant 0 : index
    %c0_29 = arith.constant 0 : index
    %35 = vector.load %arg3[%c0_28, %c0_29] : memref<1x128xf32, #tpu.memory_space<vmem>>, vector<1x128xf32>
    %36 = vector.broadcast %35 : vector<1x128xf32> to vector<16x128xf32>
    %37 = arith.mulf %34, %36 : vector<16x128xf32>
    %c0_30 = arith.constant 0 : index
    %c0_31 = arith.constant 0 : index
    %38 = vector.load %arg4[%c0_30, %c0_31] : memref<1x128xf32, #tpu.memory_space<vmem>>, vector<1x128xf32>
    %39 = vector.broadcast %38 : vector<1x128xf32> to vector<16x128xf32>
    %40 = arith.addf %37, %39 : vector<16x128xf32>
    %cst_32 = arith.constant 0.00999999977 : f32
    %41 = vector.broadcast %cst_32 : f32 to vector<16x128xf32>
    %42 = arith.mulf %41, %40 : vector<16x128xf32>
    %43 = arith.maximumf %40, %42 : vector<16x128xf32>
    %44 = vector.shape_cast %43 : vector<16x128xf32> to vector<1x16x128xf32>
    %c0_33 = arith.constant 0 : index
    %c0_34 = arith.constant 0 : index
    %c0_35 = arith.constant 0 : index
    %45 = vector.load %arg5[%c0_33, %c0_34, %c0_35] : memref<1x16x128xf32, #tpu.memory_space<vmem>>, vector<1x16x128xf32>
    tpu.vector_store %arg5[%c0_33, %c0_34, %c0_35], %44 {strides = array<i32>} : memref<1x16x128xf32, #tpu.memory_space<vmem>>, vector<1x16x128xf32>,
    return
  }
  func.func @transform_0(%arg0: i32) -> (i32, i32, i32) {
    %c0_i32 = arith.constant 0 : i32
    %c0_i32_0 = arith.constant 0 : i32
    %c0_i32_1 = arith.constant 0 : i32
    return %arg0, %c0_i32, %c0_i32_0 : i32, i32, i32
  }
  func.func @transform_1(%arg0: i32) -> (i32, i32, i32) {
    %c0_i32 = arith.constant 0 : i32
    %c0_i32_0 = arith.constant 0 : i32
    %c0_i32_1 = arith.constant 0 : i32
    %c0_i32_2 = arith.constant 0 : i32
    return %c0_i32, %c0_i32_0, %c0_i32_1 : i32, i32, i32
  }
  func.func @transform_2(%arg0: i32) -> (i32, i32) {
    %c0_i32 = arith.constant 0 : i32
    %c0_i32_0 = arith.constant 0 : i32
    %c0_i32_1 = arith.constant 0 : i32
    return %c0_i32, %c0_i32_0 : i32, i32
  }
  func.func @transform_3(%arg0: i32) -> (i32, i32) {
    %c0_i32 = arith.constant 0 : i32
    %c0_i32_0 = arith.constant 0 : i32
    %c0_i32_1 = arith.constant 0 : i32
    return %c0_i32, %c0_i32_0 : i32, i32
  }
  func.func @transform_4(%arg0: i32) -> (i32, i32, i32) {
    %c0_i32 = arith.constant 0 : i32
    %c0_i32_0 = arith.constant 0 : i32
    %c0_i32_1 = arith.constant 0 : i32
    return %arg0, %c0_i32, %c0_i32_0 : i32, i32, i32
  }
}

module attributes {stable_mosaic.version = 11 : i64} {
  func.func @_inception_block_kernel(%arg0: i32, %arg1: memref<1x16x128xf32, #tpu.memory_space<vmem>>, %arg2: memref<7x128x128xbf16, #tpu.memory_space<vmem>>, %arg3: memref<1x128xf32, #tpu.memory_space<vmem>>, %arg4: memref<1x128xf32, #tpu.memory_space<vmem>>, %arg5: memref<10x128x128xbf16, #tpu.memory_space<vmem>>, %arg6: memref<1x128xf32, #tpu.memory_space<vmem>>, %arg7: memref<1x128xf32, #tpu.memory_space<vmem>>, %arg8: memref<1x128xf32, #tpu.memory_space<vmem>>, %arg9: memref<1x8x128xf32, #tpu.memory_space<vmem>>, %arg10: memref<24x128xf32, #tpu.memory_space<vmem>>, %arg11: memref<24x128xf32, #tpu.memory_space<vmem>>) attributes {dimension_semantics = [#tpu.dimension_semantics<parallel>], iteration_bounds = array<i64: 2>, scalar_prefetch = 0 : i64, scratch_operands = 2 : i64, tpu.core_type = #tpu.core_type<tc>, window_params = [{transform_indices = @transform_0, window_bounds = array<i64: 1, 16, 128>}, {pipeline_mode = #tpu.pipeline_mode<synchronous>, transform_indices = @transform_1, window_bounds = array<i64: 7, 128, 128>}, {pipeline_mode = #tpu.pipeline_mode<synchronous>, transform_indices = @transform_2, window_bounds = array<i64: 1, 128>}, {pipeline_mode = #tpu.pipeline_mode<synchronous>, transform_indices = @transform_3, window_bounds = array<i64: 1, 128>}, {pipeline_mode = #tpu.pipeline_mode<synchronous>, transform_indices = @transform_4, window_bounds = array<i64: 10, 128, 128>}, {pipeline_mode = #tpu.pipeline_mode<synchronous>, transform_indices = @transform_5, window_bounds = array<i64: 1, 128>}, {pipeline_mode = #tpu.pipeline_mode<synchronous>, transform_indices = @transform_6, window_bounds = array<i64: 1, 128>}, {pipeline_mode = #tpu.pipeline_mode<synchronous>, transform_indices = @transform_7, window_bounds = array<i64: 1, 128>}, {transform_indices = @transform_8, window_bounds = array<i64: 1, 8, 128>}]} {
    %c0 = arith.constant 0 : index
    %c0_0 = arith.constant 0 : index
    %c0_1 = arith.constant 0 : index
    %0 = tpu.strided_load %arg1[%c0, %c0_0, %c0_1] {strides = array<i32: 1, 2, 1>} : memref<1x16x128xf32, #tpu.memory_space<vmem>>, vector<1x8x128xf32>
    %c0_2 = arith.constant 0 : index
    %c1 = arith.constant 1 : index
    %c0_3 = arith.constant 0 : index
    %1 = tpu.strided_load %arg1[%c0_2, %c1, %c0_3] {strides = array<i32: 1, 2, 1>} : memref<1x16x128xf32, #tpu.memory_space<vmem>>, vector<1x8x128xf32>
    %2 = arith.maximumf %0, %1 : vector<1x8x128xf32>
    %3 = vector.shape_cast %2 : vector<1x8x128xf32> to vector<8x128xf32>
    %cst = arith.constant 0.000000e+00 : f32
    %4 = vector.broadcast %cst : f32 to vector<8x128xf32>
    %c0_4 = arith.constant 0 : index
    %c0_5 = arith.constant 0 : index
    %5 = vector.load %arg10[%c0_4, %c0_5] : memref<24x128xf32, #tpu.memory_space<vmem>>, vector<8x128xf32>
    tpu.vector_store %arg10[%c0_4, %c0_5], %4 {strides = array<i32>} : memref<24x128xf32, #tpu.memory_space<vmem>>, vector<8x128xf32>,
    %c16 = arith.constant 16 : index
    %c0_6 = arith.constant 0 : index
    %6 = vector.load %arg10[%c16, %c0_6] : memref<24x128xf32, #tpu.memory_space<vmem>>, vector<8x128xf32>
    tpu.vector_store %arg10[%c16, %c0_6], %4 {strides = array<i32>} : memref<24x128xf32, #tpu.memory_space<vmem>>, vector<8x128xf32>,
    %c8 = arith.constant 8 : index
    %c0_7 = arith.constant 0 : index
    %7 = vector.load %arg10[%c8, %c0_7] : memref<24x128xf32, #tpu.memory_space<vmem>>, vector<8x128xf32>
    tpu.vector_store %arg10[%c8, %c0_7], %3 {strides = array<i32>} : memref<24x128xf32, #tpu.memory_space<vmem>>, vector<8x128xf32>,
    %c7 = arith.constant 7 : index
    %c0_8 = arith.constant 0 : index
    %8 = vector.load %arg10[%c7, %c0_8] : memref<24x128xf32, #tpu.memory_space<vmem>>, vector<8x128xf32>
    %9 = arith.truncf %8 : vector<8x128xf32> to vector<8x128xbf16>
    %c0_9 = arith.constant 0 : index
    %c0_10 = arith.constant 0 : index
    %c0_11 = arith.constant 0 : index
    %10 = vector.load %arg2[%c0_9, %c0_10, %c0_11] : memref<7x128x128xbf16, #tpu.memory_space<vmem>>, vector<1x128x128xbf16>
    %11 = vector.shape_cast %10 : vector<1x128x128xbf16> to vector<128x128xbf16>
    %cst_12 = arith.constant dense<0.000000e+00> : vector<8x128xf32>
    %12 = tpu.matmul %9, %11, %cst_12 {dimension_numbers = #tpu.dot_dimension_numbers<[1], [0], [0], [1], [0, 0, 1, 1], [], []>} : vector<8x128xbf16>, vector<128x128xbf16>, vector<8x128xf32> -> vector<8x128xf32>
    %c8_13 = arith.constant 8 : index
    %c0_14 = arith.constant 0 : index
    %13 = vector.load %arg10[%c8_13, %c0_14] : memref<24x128xf32, #tpu.memory_space<vmem>>, vector<8x128xf32>
    %14 = arith.truncf %13 : vector<8x128xf32> to vector<8x128xbf16>
    %c1_15 = arith.constant 1 : index
    %c0_16 = arith.constant 0 : index
    %c0_17 = arith.constant 0 : index
    %15 = vector.load %arg2[%c1_15, %c0_16, %c0_17] : memref<7x128x128xbf16, #tpu.memory_space<vmem>>, vector<1x128x128xbf16>
    %16 = vector.shape_cast %15 : vector<1x128x128xbf16> to vector<128x128xbf16>
    %cst_18 = arith.constant dense<0.000000e+00> : vector<8x128xf32>
    %17 = tpu.matmul %14, %16, %cst_18 {dimension_numbers = #tpu.dot_dimension_numbers<[1], [0], [0], [1], [0, 0, 1, 1], [], []>} : vector<8x128xbf16>, vector<128x128xbf16>, vector<8x128xf32> -> vector<8x128xf32>
    %18 = arith.addf %12, %17 : vector<8x128xf32>
    %c9 = arith.constant 9 : index
    %c0_19 = arith.constant 0 : index
    %19 = vector.load %arg10[%c9, %c0_19] : memref<24x128xf32, #tpu.memory_space<vmem>>, vector<8x128xf32>
    %20 = arith.truncf %19 : vector<8x128xf32> to vector<8x128xbf16>
    %c2 = arith.constant 2 : index
    %c0_20 = arith.constant 0 : index
    %c0_21 = arith.constant 0 : index
    %21 = vector.load %arg2[%c2, %c0_20, %c0_21] : memref<7x128x128xbf16, #tpu.memory_space<vmem>>, vector<1x128x128xbf16>
    %22 = vector.shape_cast %21 : vector<1x128x128xbf16> to vector<128x128xbf16>
    %cst_22 = arith.constant dense<0.000000e+00> : vector<8x128xf32>
    %23 = tpu.matmul %20, %22, %cst_22 {dimension_numbers = #tpu.dot_dimension_numbers<[1], [0], [0], [1], [0, 0, 1, 1], [], []>} : vector<8x128xbf16>, vector<128x128xbf16>, vector<8x128xf32> -> vector<8x128xf32>
    %24 = arith.addf %18, %23 : vector<8x128xf32>
    %c5 = arith.constant 5 : index
    %c0_23 = arith.constant 0 : index
    %25 = vector.load %arg10[%c5, %c0_23] : memref<24x128xf32, #tpu.memory_space<vmem>>, vector<8x128xf32>
    %26 = arith.truncf %25 : vector<8x128xf32> to vector<8x128xbf16>
    %c3 = arith.constant 3 : index
    %c0_24 = arith.constant 0 : index
    %c0_25 = arith.constant 0 : index
    %27 = vector.load %arg2[%c3, %c0_24, %c0_25] : memref<7x128x128xbf16, #tpu.memory_space<vmem>>, vector<1x128x128xbf16>
    %28 = vector.shape_cast %27 : vector<1x128x128xbf16> to vector<128x128xbf16>
    %cst_26 = arith.constant dense<0.000000e+00> : vector<8x128xf32>
    %29 = tpu.matmul %26, %28, %cst_26 {dimension_numbers = #tpu.dot_dimension_numbers<[1], [0], [0], [1], [0, 0, 1, 1], [], []>} : vector<8x128xbf16>, vector<128x128xbf16>, vector<8x128xf32> -> vector<8x128xf32>
    %30 = arith.addf %24, %29 : vector<8x128xf32>
    %c8_27 = arith.constant 8 : index
    %c0_28 = arith.constant 0 : index
    %31 = vector.load %arg10[%c8_27, %c0_28] : memref<24x128xf32, #tpu.memory_space<vmem>>, vector<8x128xf32>
    %32 = arith.truncf %31 : vector<8x128xf32> to vector<8x128xbf16>
    %c4 = arith.constant 4 : index
    %c0_29 = arith.constant 0 : index
    %c0_30 = arith.constant 0 : index
    %33 = vector.load %arg2[%c4, %c0_29, %c0_30] : memref<7x128x128xbf16, #tpu.memory_space<vmem>>, vector<1x128x128xbf16>
    %34 = vector.shape_cast %33 : vector<1x128x128xbf16> to vector<128x128xbf16>
    %cst_31 = arith.constant dense<0.000000e+00> : vector<8x128xf32>
    %35 = tpu.matmul %32, %34, %cst_31 {dimension_numbers = #tpu.dot_dimension_numbers<[1], [0], [0], [1], [0, 0, 1, 1], [], []>} : vector<8x128xbf16>, vector<128x128xbf16>, vector<8x128xf32> -> vector<8x128xf32>
    %36 = arith.addf %30, %35 : vector<8x128xf32>
    %c11 = arith.constant 11 : index
    %c0_32 = arith.constant 0 : index
    %37 = vector.load %arg10[%c11, %c0_32] : memref<24x128xf32, #tpu.memory_space<vmem>>, vector<8x128xf32>
    %38 = arith.truncf %37 : vector<8x128xf32> to vector<8x128xbf16>
    %c5_33 = arith.constant 5 : index
    %c0_34 = arith.constant 0 : index
    %c0_35 = arith.constant 0 : index
    %39 = vector.load %arg2[%c5_33, %c0_34, %c0_35] : memref<7x128x128xbf16, #tpu.memory_space<vmem>>, vector<1x128x128xbf16>
    %40 = vector.shape_cast %39 : vector<1x128x128xbf16> to vector<128x128xbf16>
    %cst_36 = arith.constant dense<0.000000e+00> : vector<8x128xf32>
    %41 = tpu.matmul %38, %40, %cst_36 {dimension_numbers = #tpu.dot_dimension_numbers<[1], [0], [0], [1], [0, 0, 1, 1], [], []>} : vector<8x128xbf16>, vector<128x128xbf16>, vector<8x128xf32> -> vector<8x128xf32>
    %42 = arith.addf %36, %41 : vector<8x128xf32>
    %c8_37 = arith.constant 8 : index
    %c0_38 = arith.constant 0 : index
    %43 = vector.load %arg10[%c8_37, %c0_38] : memref<24x128xf32, #tpu.memory_space<vmem>>, vector<8x128xf32>
    %44 = arith.truncf %43 : vector<8x128xf32> to vector<8x128xbf16>
    %c6 = arith.constant 6 : index
    %c0_39 = arith.constant 0 : index
    %c0_40 = arith.constant 0 : index
    %45 = vector.load %arg2[%c6, %c0_39, %c0_40] : memref<7x128x128xbf16, #tpu.memory_space<vmem>>, vector<1x128x128xbf16>
    %46 = vector.shape_cast %45 : vector<1x128x128xbf16> to vector<128x128xbf16>
    %cst_41 = arith.constant dense<0.000000e+00> : vector<8x128xf32>
    %47 = tpu.matmul %44, %46, %cst_41 {dimension_numbers = #tpu.dot_dimension_numbers<[1], [0], [0], [1], [0, 0, 1, 1], [], []>} : vector<8x128xbf16>, vector<128x128xbf16>, vector<8x128xf32> -> vector<8x128xf32>
    %48 = arith.addf %42, %47 : vector<8x128xf32>
    %c0_42 = arith.constant 0 : index
    %c0_43 = arith.constant 0 : index
    %49 = vector.load %arg3[%c0_42, %c0_43] : memref<1x128xf32, #tpu.memory_space<vmem>>, vector<1x128xf32>
    %50 = vector.broadcast %49 : vector<1x128xf32> to vector<8x128xf32>
    %51 = arith.mulf %48, %50 : vector<8x128xf32>
    %c0_44 = arith.constant 0 : index
    %c0_45 = arith.constant 0 : index
    %52 = vector.load %arg4[%c0_44, %c0_45] : memref<1x128xf32, #tpu.memory_space<vmem>>, vector<1x128xf32>
    %53 = vector.broadcast %52 : vector<1x128xf32> to vector<8x128xf32>
    %54 = arith.addf %51, %53 : vector<8x128xf32>
    %cst_46 = arith.constant 0.00999999977 : f32
    %55 = vector.broadcast %cst_46 : f32 to vector<8x128xf32>
    %56 = arith.mulf %55, %54 : vector<8x128xf32>
    %57 = arith.maximumf %54, %56 : vector<8x128xf32>
    %c0_47 = arith.constant 0 : index
    %c0_48 = arith.constant 0 : index
    %58 = vector.load %arg11[%c0_47, %c0_48] : memref<24x128xf32, #tpu.memory_space<vmem>>, vector<8x128xf32>
    tpu.vector_store %arg11[%c0_47, %c0_48], %4 {strides = array<i32>} : memref<24x128xf32, #tpu.memory_space<vmem>>, vector<8x128xf32>,
    %c16_49 = arith.constant 16 : index
    %c0_50 = arith.constant 0 : index
    %59 = vector.load %arg11[%c16_49, %c0_50] : memref<24x128xf32, #tpu.memory_space<vmem>>, vector<8x128xf32>
    tpu.vector_store %arg11[%c16_49, %c0_50], %4 {strides = array<i32>} : memref<24x128xf32, #tpu.memory_space<vmem>>, vector<8x128xf32>,
    %c8_51 = arith.constant 8 : index
    %c0_52 = arith.constant 0 : index
    %60 = vector.load %arg11[%c8_51, %c0_52] : memref<24x128xf32, #tpu.memory_space<vmem>>, vector<8x128xf32>
    tpu.vector_store %arg11[%c8_51, %c0_52], %57 {strides = array<i32>} : memref<24x128xf32, #tpu.memory_space<vmem>>, vector<8x128xf32>,
    %c4_53 = arith.constant 4 : index
    %c0_54 = arith.constant 0 : index
    %61 = vector.load %arg11[%c4_53, %c0_54] : memref<24x128xf32, #tpu.memory_space<vmem>>, vector<8x128xf32>
    %62 = arith.truncf %61 : vector<8x128xf32> to vector<8x128xbf16>
    %c0_55 = arith.constant 0 : index
    %c0_56 = arith.constant 0 : index
    %c0_57 = arith.constant 0 : index
    %63 = vector.load %arg5[%c0_55, %c0_56, %c0_57] : memref<10x128x128xbf16, #tpu.memory_space<vmem>>, vector<1x128x128xbf16>
    %64 = vector.shape_cast %63 : vector<1x128x128xbf16> to vector<128x128xbf16>
    %cst_58 = arith.constant dense<0.000000e+00> : vector<8x128xf32>
    %65 = tpu.matmul %62, %64, %cst_58 {dimension_numbers = #tpu.dot_dimension_numbers<[1], [0], [0], [1], [0, 0, 1, 1], [], []>} : vector<8x128xbf16>, vector<128x128xbf16>, vector<8x128xf32> -> vector<8x128xf32>
    %c6_59 = arith.constant 6 : index
    %c0_60 = arith.constant 0 : index
    %66 = vector.load %arg11[%c6_59, %c0_60] : memref<24x128xf32, #tpu.memory_space<vmem>>, vector<8x128xf32>
    %67 = arith.truncf %66 : vector<8x128xf32> to vector<8x128xbf16>
    %c1_61 = arith.constant 1 : index
    %c0_62 = arith.constant 0 : index
    %c0_63 = arith.constant 0 : index
    %68 = vector.load %arg5[%c1_61, %c0_62, %c0_63] : memref<10x128x128xbf16, #tpu.memory_space<vmem>>, vector<1x128x128xbf16>
    %69 = vector.shape_cast %68 : vector<1x128x128xbf16> to vector<128x128xbf16>
    %cst_64 = arith.constant dense<0.000000e+00> : vector<8x128xf32>
    %70 = tpu.matmul %67, %69, %cst_64 {dimension_numbers = #tpu.dot_dimension_numbers<[1], [0], [0], [1], [0, 0, 1, 1], [], []>} : vector<8x128xbf16>, vector<128x128xbf16>, vector<8x128xf32> -> vector<8x128xf32>
    %71 = arith.addf %65, %70 : vector<8x128xf32>
    %c8_65 = arith.constant 8 : index
    %c0_66 = arith.constant 0 : index
    %72 = vector.load %arg11[%c8_65, %c0_66] : memref<24x128xf32, #tpu.memory_space<vmem>>, vector<8x128xf32>
    %73 = arith.truncf %72 : vector<8x128xf32> to vector<8x128xbf16>
    %c2_67 = arith.constant 2 : index
    %c0_68 = arith.constant 0 : index
    %c0_69 = arith.constant 0 : index
    %74 = vector.load %arg5[%c2_67, %c0_68, %c0_69] : memref<10x128x128xbf16, #tpu.memory_space<vmem>>, vector<1x128x128xbf16>
    %75 = vector.shape_cast %74 : vector<1x128x128xbf16> to vector<128x128xbf16>
    %cst_70 = arith.constant dense<0.000000e+00> : vector<8x128xf32>
    %76 = tpu.matmul %73, %75, %cst_70 {dimension_numbers = #tpu.dot_dimension_numbers<[1], [0], [0], [1], [0, 0, 1, 1], [], []>} : vector<8x128xbf16>, vector<128x128xbf16>, vector<8x128xf32> -> vector<8x128xf32>
    %77 = arith.addf %71, %76 : vector<8x128xf32>
    %c10 = arith.constant 10 : index
    %c0_71 = arith.constant 0 : index
    %78 = vector.load %arg11[%c10, %c0_71] : memref<24x128xf32, #tpu.memory_space<vmem>>, vector<8x128xf32>
    %79 = arith.truncf %78 : vector<8x128xf32> to vector<8x128xbf16>
    %c3_72 = arith.constant 3 : index
    %c0_73 = arith.constant 0 : index
    %c0_74 = arith.constant 0 : index
    %80 = vector.load %arg5[%c3_72, %c0_73, %c0_74] : memref<10x128x128xbf16, #tpu.memory_space<vmem>>, vector<1x128x128xbf16>
    %81 = vector.shape_cast %80 : vector<1x128x128xbf16> to vector<128x128xbf16>
    %cst_75 = arith.constant dense<0.000000e+00> : vector<8x128xf32>
    %82 = tpu.matmul %79, %81, %cst_75 {dimension_numbers = #tpu.dot_dimension_numbers<[1], [0], [0], [1], [0, 0, 1, 1], [], []>} : vector<8x128xbf16>, vector<128x128xbf16>, vector<8x128xf32> -> vector<8x128xf32>
    %83 = arith.addf %77, %82 : vector<8x128xf32>
    %c12 = arith.constant 12 : index
    %c0_76 = arith.constant 0 : index
    %84 = vector.load %arg11[%c12, %c0_76] : memref<24x128xf32, #tpu.memory_space<vmem>>, vector<8x128xf32>
    %85 = arith.truncf %84 : vector<8x128xf32> to vector<8x128xbf16>
    %c4_77 = arith.constant 4 : index
    %c0_78 = arith.constant 0 : index
    %c0_79 = arith.constant 0 : index
    %86 = vector.load %arg5[%c4_77, %c0_78, %c0_79] : memref<10x128x128xbf16, #tpu.memory_space<vmem>>, vector<1x128x128xbf16>
    %87 = vector.shape_cast %86 : vector<1x128x128xbf16> to vector<128x128xbf16>
    %cst_80 = arith.constant dense<0.000000e+00> : vector<8x128xf32>
    %88 = tpu.matmul %85, %87, %cst_80 {dimension_numbers = #tpu.dot_dimension_numbers<[1], [0], [0], [1], [0, 0, 1, 1], [], []>} : vector<8x128xbf16>, vector<128x128xbf16>, vector<8x128xf32> -> vector<8x128xf32>
    %89 = arith.addf %83, %88 : vector<8x128xf32>
    %c2_81 = arith.constant 2 : index
    %c0_82 = arith.constant 0 : index
    %90 = vector.load %arg11[%c2_81, %c0_82] : memref<24x128xf32, #tpu.memory_space<vmem>>, vector<8x128xf32>
    %91 = arith.truncf %90 : vector<8x128xf32> to vector<8x128xbf16>
    %c5_83 = arith.constant 5 : index
    %c0_84 = arith.constant 0 : index
    %c0_85 = arith.constant 0 : index
    %92 = vector.load %arg5[%c5_83, %c0_84, %c0_85] : memref<10x128x128xbf16, #tpu.memory_space<vmem>>, vector<1x128x128xbf16>
    %93 = vector.shape_cast %92 : vector<1x128x128xbf16> to vector<128x128xbf16>
    %cst_86 = arith.constant dense<0.000000e+00> : vector<8x128xf32>
    %94 = tpu.matmul %91, %93, %cst_86 {dimension_numbers = #tpu.dot_dimension_numbers<[1], [0], [0], [1], [0, 0, 1, 1], [], []>} : vector<8x128xbf16>, vector<128x128xbf16>, vector<8x128xf32> -> vector<8x128xf32>
    %95 = arith.addf %89, %94 : vector<8x128xf32>
    %c5_87 = arith.constant 5 : index
    %c0_88 = arith.constant 0 : index
    %96 = vector.load %arg11[%c5_87, %c0_88] : memref<24x128xf32, #tpu.memory_space<vmem>>, vector<8x128xf32>
    %97 = arith.truncf %96 : vector<8x128xf32> to vector<8x128xbf16>
    %c6_89 = arith.constant 6 : index
    %c0_90 = arith.constant 0 : index
    %c0_91 = arith.constant 0 : index
    %98 = vector.load %arg5[%c6_89, %c0_90, %c0_91] : memref<10x128x128xbf16, #tpu.memory_space<vmem>>, vector<1x128x128xbf16>
    %99 = vector.shape_cast %98 : vector<1x128x128xbf16> to vector<128x128xbf16>
    %cst_92 = arith.constant dense<0.000000e+00> : vector<8x128xf32>
    %100 = tpu.matmul %97, %99, %cst_92 {dimension_numbers = #tpu.dot_dimension_numbers<[1], [0], [0], [1], [0, 0, 1, 1], [], []>} : vector<8x128xbf16>, vector<128x128xbf16>, vector<8x128xf32> -> vector<8x128xf32>
    %101 = arith.addf %95, %100 : vector<8x128xf32>
    %c8_93 = arith.constant 8 : index
    %c0_94 = arith.constant 0 : index
    %102 = vector.load %arg11[%c8_93, %c0_94] : memref<24x128xf32, #tpu.memory_space<vmem>>, vector<8x128xf32>
    %103 = arith.truncf %102 : vector<8x128xf32> to vector<8x128xbf16>
    %c7_95 = arith.constant 7 : index
    %c0_96 = arith.constant 0 : index
    %c0_97 = arith.constant 0 : index
    %104 = vector.load %arg5[%c7_95, %c0_96, %c0_97] : memref<10x128x128xbf16, #tpu.memory_space<vmem>>, vector<1x128x128xbf16>
    %105 = vector.shape_cast %104 : vector<1x128x128xbf16> to vector<128x128xbf16>
    %cst_98 = arith.constant dense<0.000000e+00> : vector<8x128xf32>
    %106 = tpu.matmul %103, %105, %cst_98 {dimension_numbers = #tpu.dot_dimension_numbers<[1], [0], [0], [1], [0, 0, 1, 1], [], []>} : vector<8x128xbf16>, vector<128x128xbf16>, vector<8x128xf32> -> vector<8x128xf32>
    %107 = arith.addf %101, %106 : vector<8x128xf32>
    %c11_99 = arith.constant 11 : index
    %c0_100 = arith.constant 0 : index
    %108 = vector.load %arg11[%c11_99, %c0_100] : memref<24x128xf32, #tpu.memory_space<vmem>>, vector<8x128xf32>
    %109 = arith.truncf %108 : vector<8x128xf32> to vector<8x128xbf16>
    %c8_101 = arith.constant 8 : index
    %c0_102 = arith.constant 0 : index
    %c0_103 = arith.constant 0 : index
    %110 = vector.load %arg5[%c8_101, %c0_102, %c0_103] : memref<10x128x128xbf16, #tpu.memory_space<vmem>>, vector<1x128x128xbf16>
    %111 = vector.shape_cast %110 : vector<1x128x128xbf16> to vector<128x128xbf16>
    %cst_104 = arith.constant dense<0.000000e+00> : vector<8x128xf32>
    %112 = tpu.matmul %109, %111, %cst_104 {dimension_numbers = #tpu.dot_dimension_numbers<[1], [0], [0], [1], [0, 0, 1, 1], [], []>} : vector<8x128xbf16>, vector<128x128xbf16>, vector<8x128xf32> -> vector<8x128xf32>
    %113 = arith.addf %107, %112 : vector<8x128xf32>
    %c14 = arith.constant 14 : index
    %c0_105 = arith.constant 0 : index
    %114 = vector.load %arg11[%c14, %c0_105] : memref<24x128xf32, #tpu.memory_space<vmem>>, vector<8x128xf32>
    %115 = arith.truncf %114 : vector<8x128xf32> to vector<8x128xbf16>
    %c9_106 = arith.constant 9 : index
    %c0_107 = arith.constant 0 : index
    %c0_108 = arith.constant 0 : index
    %116 = vector.load %arg5[%c9_106, %c0_107, %c0_108] : memref<10x128x128xbf16, #tpu.memory_space<vmem>>, vector<1x128x128xbf16>
    %117 = vector.shape_cast %116 : vector<1x128x128xbf16> to vector<128x128xbf16>
    %cst_109 = arith.constant dense<0.000000e+00> : vector<8x128xf32>
    %118 = tpu.matmul %115, %117, %cst_109 {dimension_numbers = #tpu.dot_dimension_numbers<[1], [0], [0], [1], [0, 0, 1, 1], [], []>} : vector<8x128xbf16>, vector<128x128xbf16>, vector<8x128xf32> -> vector<8x128xf32>
    %119 = arith.addf %113, %118 : vector<8x128xf32>
    %c0_110 = arith.constant 0 : index
    %c0_111 = arith.constant 0 : index
    %120 = vector.load %arg6[%c0_110, %c0_111] : memref<1x128xf32, #tpu.memory_space<vmem>>, vector<1x128xf32>
    %121 = vector.broadcast %120 : vector<1x128xf32> to vector<8x128xf32>
    %122 = arith.mulf %119, %121 : vector<8x128xf32>
    %c0_112 = arith.constant 0 : index
    %c0_113 = arith.constant 0 : index
    %123 = vector.load %arg7[%c0_112, %c0_113] : memref<1x128xf32, #tpu.memory_space<vmem>>, vector<1x128xf32>
    %124 = vector.broadcast %123 : vector<1x128xf32> to vector<8x128xf32>
    %125 = arith.addf %122, %124 : vector<8x128xf32>
    %cst_114 = arith.constant 0.00999999977 : f32
    %126 = vector.broadcast %cst_114 : f32 to vector<8x128xf32>
    %127 = arith.mulf %126, %125 : vector<8x128xf32>
    %128 = arith.maximumf %125, %127 : vector<8x128xf32>
    %c0_115 = arith.constant 0 : index
    %c0_116 = arith.constant 0 : index
    %129 = vector.load %arg8[%c0_115, %c0_116] : memref<1x128xf32, #tpu.memory_space<vmem>>, vector<1x128xf32>
    %130 = vector.broadcast %129 : vector<1x128xf32> to vector<8x128xf32>
    %131 = arith.mulf %57, %130 : vector<8x128xf32>
    %132 = arith.addf %131, %128 : vector<8x128xf32>
    %133 = arith.addf %132, %3 : vector<8x128xf32>
    %134 = vector.shape_cast %133 : vector<8x128xf32> to vector<1x8x128xf32>
    %c0_117 = arith.constant 0 : index
    %c0_118 = arith.constant 0 : index
    %c0_119 = arith.constant 0 : index
    %135 = vector.load %arg9[%c0_117, %c0_118, %c0_119] : memref<1x8x128xf32, #tpu.memory_space<vmem>>, vector<1x8x128xf32>
    tpu.vector_store %arg9[%c0_117, %c0_118, %c0_119], %134 {strides = array<i32>} : memref<1x8x128xf32, #tpu.memory_space<vmem>>, vector<1x8x128xf32>,
    return
  }
  func.func @transform_0(%arg0: i32) -> (i32, i32, i32) {
    %c0_i32 = arith.constant 0 : i32
    %c0_i32_0 = arith.constant 0 : i32
    %c0_i32_1 = arith.constant 0 : i32
    return %arg0, %c0_i32, %c0_i32_0 : i32, i32, i32
  }
  func.func @transform_1(%arg0: i32) -> (i32, i32, i32) {
    %c0_i32 = arith.constant 0 : i32
    %c0_i32_0 = arith.constant 0 : i32
    %c0_i32_1 = arith.constant 0 : i32
    %c0_i32_2 = arith.constant 0 : i32
    return %c0_i32, %c0_i32_0, %c0_i32_1 : i32, i32, i32
  }
  func.func @transform_2(%arg0: i32) -> (i32, i32) {
    %c0_i32 = arith.constant 0 : i32
    %c0_i32_0 = arith.constant 0 : i32
    %c0_i32_1 = arith.constant 0 : i32
    return %c0_i32, %c0_i32_0 : i32, i32
  }
  func.func @transform_3(%arg0: i32) -> (i32, i32) {
    %c0_i32 = arith.constant 0 : i32
    %c0_i32_0 = arith.constant 0 : i32
    %c0_i32_1 = arith.constant 0 : i32
    return %c0_i32, %c0_i32_0 : i32, i32
  }
  func.func @transform_4(%arg0: i32) -> (i32, i32, i32) {
    %c0_i32 = arith.constant 0 : i32
    %c0_i32_0 = arith.constant 0 : i32
    %c0_i32_1 = arith.constant 0 : i32
    %c0_i32_2 = arith.constant 0 : i32
    return %c0_i32, %c0_i32_0, %c0_i32_1 : i32, i32, i32
  }
  func.func @transform_5(%arg0: i32) -> (i32, i32) {
    %c0_i32 = arith.constant 0 : i32
    %c0_i32_0 = arith.constant 0 : i32
    %c0_i32_1 = arith.constant 0 : i32
    return %c0_i32, %c0_i32_0 : i32, i32
  }
  func.func @transform_6(%arg0: i32) -> (i32, i32) {
    %c0_i32 = arith.constant 0 : i32
    %c0_i32_0 = arith.constant 0 : i32
    %c0_i32_1 = arith.constant 0 : i32
    return %c0_i32, %c0_i32_0 : i32, i32
  }
  func.func @transform_7(%arg0: i32) -> (i32, i32) {
    %c0_i32 = arith.constant 0 : i32
    %c0_i32_0 = arith.constant 0 : i32
    %c0_i32_1 = arith.constant 0 : i32
    return %c0_i32, %c0_i32_0 : i32, i32
  }
  func.func @transform_8(%arg0: i32) -> (i32, i32, i32) {
    %c0_i32 = arith.constant 0 : i32
    %c0_i32_0 = arith.constant 0 : i32
    %c0_i32_1 = arith.constant 0 : i32
    return %arg0, %c0_i32, %c0_i32_0 : i32, i32, i32
  }
}

module attributes {stable_mosaic.version = 11 : i64} {
  func.func @_inception_block_kernel(%arg0: i32, %arg1: memref<1x8x128xf32, #tpu.memory_space<vmem>>, %arg2: memref<7x128x128xbf16, #tpu.memory_space<vmem>>, %arg3: memref<1x128xf32, #tpu.memory_space<vmem>>, %arg4: memref<1x128xf32, #tpu.memory_space<vmem>>, %arg5: memref<10x128x128xbf16, #tpu.memory_space<vmem>>, %arg6: memref<1x128xf32, #tpu.memory_space<vmem>>, %arg7: memref<1x128xf32, #tpu.memory_space<vmem>>, %arg8: memref<1x128xf32, #tpu.memory_space<vmem>>, %arg9: memref<128x8xf32, #tpu.memory_space<vmem>>, %arg10: memref<1x8xf32, #tpu.memory_space<vmem>>, %arg11: memref<1x1x8xf32, #tpu.memory_space<vmem>>, %arg12: memref<20x128xf32, #tpu.memory_space<vmem>>, %arg13: memref<20x128xf32, #tpu.memory_space<vmem>>) attributes {dimension_semantics = [#tpu.dimension_semantics<parallel>], iteration_bounds = array<i64: 2>, scalar_prefetch = 0 : i64, scratch_operands = 2 : i64, tpu.core_type = #tpu.core_type<tc>, window_params = [{transform_indices = @transform_0, window_bounds = array<i64: 1, 8, 128>}, {pipeline_mode = #tpu.pipeline_mode<synchronous>, transform_indices = @transform_1, window_bounds = array<i64: 7, 128, 128>}, {pipeline_mode = #tpu.pipeline_mode<synchronous>, transform_indices = @transform_2, window_bounds = array<i64: 1, 128>}, {pipeline_mode = #tpu.pipeline_mode<synchronous>, transform_indices = @transform_3, window_bounds = array<i64: 1, 128>}, {pipeline_mode = #tpu.pipeline_mode<synchronous>, transform_indices = @transform_4, window_bounds = array<i64: 10, 128, 128>}, {pipeline_mode = #tpu.pipeline_mode<synchronous>, transform_indices = @transform_5, window_bounds = array<i64: 1, 128>}, {pipeline_mode = #tpu.pipeline_mode<synchronous>, transform_indices = @transform_6, window_bounds = array<i64: 1, 128>}, {pipeline_mode = #tpu.pipeline_mode<synchronous>, transform_indices = @transform_7, window_bounds = array<i64: 1, 128>}, {pipeline_mode = #tpu.pipeline_mode<synchronous>, transform_indices = @transform_8, window_bounds = array<i64: 128, 8>}, {pipeline_mode = #tpu.pipeline_mode<synchronous>, transform_indices = @transform_9, window_bounds = array<i64: 1, 8>}, {transform_indices = @transform_10, window_bounds = array<i64: 1, 1, 8>}]} {
    %c0 = arith.constant 0 : index
    %c0_0 = arith.constant 0 : index
    %c0_1 = arith.constant 0 : index
    %0 = tpu.strided_load %arg1[%c0, %c0_0, %c0_1] {strides = array<i32: 1, 2, 1>} : memref<1x8x128xf32, #tpu.memory_space<vmem>>, vector<1x4x128xf32>
    %c0_2 = arith.constant 0 : index
    %c1 = arith.constant 1 : index
    %c0_3 = arith.constant 0 : index
    %1 = tpu.strided_load %arg1[%c0_2, %c1, %c0_3] {strides = array<i32: 1, 2, 1>} : memref<1x8x128xf32, #tpu.memory_space<vmem>>, vector<1x4x128xf32>
    %2 = arith.maximumf %0, %1 : vector<1x4x128xf32>
    %3 = vector.shape_cast %2 : vector<1x4x128xf32> to vector<4x128xf32>
    %cst = arith.constant 0.000000e+00 : f32
    %4 = vector.broadcast %cst : f32 to vector<8x128xf32>
    %c0_4 = arith.constant 0 : index
    %c0_5 = arith.constant 0 : index
    %5 = vector.load %arg12[%c0_4, %c0_5] : memref<20x128xf32, #tpu.memory_space<vmem>>, vector<8x128xf32>
    tpu.vector_store %arg12[%c0_4, %c0_5], %4 {strides = array<i32>} : memref<20x128xf32, #tpu.memory_space<vmem>>, vector<8x128xf32>,
    %c12 = arith.constant 12 : index
    %c0_6 = arith.constant 0 : index
    %6 = vector.load %arg12[%c12, %c0_6] : memref<20x128xf32, #tpu.memory_space<vmem>>, vector<8x128xf32>
    tpu.vector_store %arg12[%c12, %c0_6], %4 {strides = array<i32>} : memref<20x128xf32, #tpu.memory_space<vmem>>, vector<8x128xf32>,
    %c8 = arith.constant 8 : index
    %c0_7 = arith.constant 0 : index
    %7 = vector.load %arg12[%c8, %c0_7] : memref<20x128xf32, #tpu.memory_space<vmem>>, vector<4x128xf32>
    tpu.vector_store %arg12[%c8, %c0_7], %3 {strides = array<i32>} : memref<20x128xf32, #tpu.memory_space<vmem>>, vector<4x128xf32>,
    %c7 = arith.constant 7 : index
    %c0_8 = arith.constant 0 : index
    %8 = vector.load %arg12[%c7, %c0_8] : memref<20x128xf32, #tpu.memory_space<vmem>>, vector<4x128xf32>
    %9 = arith.truncf %8 : vector<4x128xf32> to vector<4x128xbf16>
    %c0_9 = arith.constant 0 : index
    %c0_10 = arith.constant 0 : index
    %c0_11 = arith.constant 0 : index
    %10 = vector.load %arg2[%c0_9, %c0_10, %c0_11] : memref<7x128x128xbf16, #tpu.memory_space<vmem>>, vector<1x128x128xbf16>
    %11 = vector.shape_cast %10 : vector<1x128x128xbf16> to vector<128x128xbf16>
    %cst_12 = arith.constant dense<0.000000e+00> : vector<4x128xf32>
    %12 = tpu.matmul %9, %11, %cst_12 {dimension_numbers = #tpu.dot_dimension_numbers<[1], [0], [0], [1], [0, 0, 1, 1], [], []>} : vector<4x128xbf16>, vector<128x128xbf16>, vector<4x128xf32> -> vector<4x128xf32>
    %c8_13 = arith.constant 8 : index
    %c0_14 = arith.constant 0 : index
    %13 = vector.load %arg12[%c8_13, %c0_14] : memref<20x128xf32, #tpu.memory_space<vmem>>, vector<4x128xf32>
    %14 = arith.truncf %13 : vector<4x128xf32> to vector<4x128xbf16>
    %c1_15 = arith.constant 1 : index
    %c0_16 = arith.constant 0 : index
    %c0_17 = arith.constant 0 : index
    %15 = vector.load %arg2[%c1_15, %c0_16, %c0_17] : memref<7x128x128xbf16, #tpu.memory_space<vmem>>, vector<1x128x128xbf16>
    %16 = vector.shape_cast %15 : vector<1x128x128xbf16> to vector<128x128xbf16>
    %cst_18 = arith.constant dense<0.000000e+00> : vector<4x128xf32>
    %17 = tpu.matmul %14, %16, %cst_18 {dimension_numbers = #tpu.dot_dimension_numbers<[1], [0], [0], [1], [0, 0, 1, 1], [], []>} : vector<4x128xbf16>, vector<128x128xbf16>, vector<4x128xf32> -> vector<4x128xf32>
    %18 = arith.addf %12, %17 : vector<4x128xf32>
    %c9 = arith.constant 9 : index
    %c0_19 = arith.constant 0 : index
    %19 = vector.load %arg12[%c9, %c0_19] : memref<20x128xf32, #tpu.memory_space<vmem>>, vector<4x128xf32>
    %20 = arith.truncf %19 : vector<4x128xf32> to vector<4x128xbf16>
    %c2 = arith.constant 2 : index
    %c0_20 = arith.constant 0 : index
    %c0_21 = arith.constant 0 : index
    %21 = vector.load %arg2[%c2, %c0_20, %c0_21] : memref<7x128x128xbf16, #tpu.memory_space<vmem>>, vector<1x128x128xbf16>
    %22 = vector.shape_cast %21 : vector<1x128x128xbf16> to vector<128x128xbf16>
    %cst_22 = arith.constant dense<0.000000e+00> : vector<4x128xf32>
    %23 = tpu.matmul %20, %22, %cst_22 {dimension_numbers = #tpu.dot_dimension_numbers<[1], [0], [0], [1], [0, 0, 1, 1], [], []>} : vector<4x128xbf16>, vector<128x128xbf16>, vector<4x128xf32> -> vector<4x128xf32>
    %24 = arith.addf %18, %23 : vector<4x128xf32>
    %c5 = arith.constant 5 : index
    %c0_23 = arith.constant 0 : index
    %25 = vector.load %arg12[%c5, %c0_23] : memref<20x128xf32, #tpu.memory_space<vmem>>, vector<4x128xf32>
    %26 = arith.truncf %25 : vector<4x128xf32> to vector<4x128xbf16>
    %c3 = arith.constant 3 : index
    %c0_24 = arith.constant 0 : index
    %c0_25 = arith.constant 0 : index
    %27 = vector.load %arg2[%c3, %c0_24, %c0_25] : memref<7x128x128xbf16, #tpu.memory_space<vmem>>, vector<1x128x128xbf16>
    %28 = vector.shape_cast %27 : vector<1x128x128xbf16> to vector<128x128xbf16>
    %cst_26 = arith.constant dense<0.000000e+00> : vector<4x128xf32>
    %29 = tpu.matmul %26, %28, %cst_26 {dimension_numbers = #tpu.dot_dimension_numbers<[1], [0], [0], [1], [0, 0, 1, 1], [], []>} : vector<4x128xbf16>, vector<128x128xbf16>, vector<4x128xf32> -> vector<4x128xf32>
    %30 = arith.addf %24, %29 : vector<4x128xf32>
    %c8_27 = arith.constant 8 : index
    %c0_28 = arith.constant 0 : index
    %31 = vector.load %arg12[%c8_27, %c0_28] : memref<20x128xf32, #tpu.memory_space<vmem>>, vector<4x128xf32>
    %32 = arith.truncf %31 : vector<4x128xf32> to vector<4x128xbf16>
    %c4 = arith.constant 4 : index
    %c0_29 = arith.constant 0 : index
    %c0_30 = arith.constant 0 : index
    %33 = vector.load %arg2[%c4, %c0_29, %c0_30] : memref<7x128x128xbf16, #tpu.memory_space<vmem>>, vector<1x128x128xbf16>
    %34 = vector.shape_cast %33 : vector<1x128x128xbf16> to vector<128x128xbf16>
    %cst_31 = arith.constant dense<0.000000e+00> : vector<4x128xf32>
    %35 = tpu.matmul %32, %34, %cst_31 {dimension_numbers = #tpu.dot_dimension_numbers<[1], [0], [0], [1], [0, 0, 1, 1], [], []>} : vector<4x128xbf16>, vector<128x128xbf16>, vector<4x128xf32> -> vector<4x128xf32>
    %36 = arith.addf %30, %35 : vector<4x128xf32>
    %c11 = arith.constant 11 : index
    %c0_32 = arith.constant 0 : index
    %37 = vector.load %arg12[%c11, %c0_32] : memref<20x128xf32, #tpu.memory_space<vmem>>, vector<4x128xf32>
    %38 = arith.truncf %37 : vector<4x128xf32> to vector<4x128xbf16>
    %c5_33 = arith.constant 5 : index
    %c0_34 = arith.constant 0 : index
    %c0_35 = arith.constant 0 : index
    %39 = vector.load %arg2[%c5_33, %c0_34, %c0_35] : memref<7x128x128xbf16, #tpu.memory_space<vmem>>, vector<1x128x128xbf16>
    %40 = vector.shape_cast %39 : vector<1x128x128xbf16> to vector<128x128xbf16>
    %cst_36 = arith.constant dense<0.000000e+00> : vector<4x128xf32>
    %41 = tpu.matmul %38, %40, %cst_36 {dimension_numbers = #tpu.dot_dimension_numbers<[1], [0], [0], [1], [0, 0, 1, 1], [], []>} : vector<4x128xbf16>, vector<128x128xbf16>, vector<4x128xf32> -> vector<4x128xf32>
    %42 = arith.addf %36, %41 : vector<4x128xf32>
    %c8_37 = arith.constant 8 : index
    %c0_38 = arith.constant 0 : index
    %43 = vector.load %arg12[%c8_37, %c0_38] : memref<20x128xf32, #tpu.memory_space<vmem>>, vector<4x128xf32>
    %44 = arith.truncf %43 : vector<4x128xf32> to vector<4x128xbf16>
    %c6 = arith.constant 6 : index
    %c0_39 = arith.constant 0 : index
    %c0_40 = arith.constant 0 : index
    %45 = vector.load %arg2[%c6, %c0_39, %c0_40] : memref<7x128x128xbf16, #tpu.memory_space<vmem>>, vector<1x128x128xbf16>
    %46 = vector.shape_cast %45 : vector<1x128x128xbf16> to vector<128x128xbf16>
    %cst_41 = arith.constant dense<0.000000e+00> : vector<4x128xf32>
    %47 = tpu.matmul %44, %46, %cst_41 {dimension_numbers = #tpu.dot_dimension_numbers<[1], [0], [0], [1], [0, 0, 1, 1], [], []>} : vector<4x128xbf16>, vector<128x128xbf16>, vector<4x128xf32> -> vector<4x128xf32>
    %48 = arith.addf %42, %47 : vector<4x128xf32>
    %c0_42 = arith.constant 0 : index
    %c0_43 = arith.constant 0 : index
    %49 = vector.load %arg3[%c0_42, %c0_43] : memref<1x128xf32, #tpu.memory_space<vmem>>, vector<1x128xf32>
    %50 = vector.broadcast %49 : vector<1x128xf32> to vector<4x128xf32>
    %51 = arith.mulf %48, %50 : vector<4x128xf32>
    %c0_44 = arith.constant 0 : index
    %c0_45 = arith.constant 0 : index
    %52 = vector.load %arg4[%c0_44, %c0_45] : memref<1x128xf32, #tpu.memory_space<vmem>>, vector<1x128xf32>
    %53 = vector.broadcast %52 : vector<1x128xf32> to vector<4x128xf32>
    %54 = arith.addf %51, %53 : vector<4x128xf32>
    %cst_46 = arith.constant 0.00999999977 : f32
    %55 = vector.broadcast %cst_46 : f32 to vector<4x128xf32>
    %56 = arith.mulf %55, %54 : vector<4x128xf32>
    %57 = arith.maximumf %54, %56 : vector<4x128xf32>
    %c0_47 = arith.constant 0 : index
    %c0_48 = arith.constant 0 : index
    %58 = vector.load %arg13[%c0_47, %c0_48] : memref<20x128xf32, #tpu.memory_space<vmem>>, vector<8x128xf32>
    tpu.vector_store %arg13[%c0_47, %c0_48], %4 {strides = array<i32>} : memref<20x128xf32, #tpu.memory_space<vmem>>, vector<8x128xf32>,
    %c12_49 = arith.constant 12 : index
    %c0_50 = arith.constant 0 : index
    %59 = vector.load %arg13[%c12_49, %c0_50] : memref<20x128xf32, #tpu.memory_space<vmem>>, vector<8x128xf32>
    tpu.vector_store %arg13[%c12_49, %c0_50], %4 {strides = array<i32>} : memref<20x128xf32, #tpu.memory_space<vmem>>, vector<8x128xf32>,
    %c8_51 = arith.constant 8 : index
    %c0_52 = arith.constant 0 : index
    %60 = vector.load %arg13[%c8_51, %c0_52] : memref<20x128xf32, #tpu.memory_space<vmem>>, vector<4x128xf32>
    tpu.vector_store %arg13[%c8_51, %c0_52], %57 {strides = array<i32>} : memref<20x128xf32, #tpu.memory_space<vmem>>, vector<4x128xf32>,
    %c4_53 = arith.constant 4 : index
    %c0_54 = arith.constant 0 : index
    %61 = vector.load %arg13[%c4_53, %c0_54] : memref<20x128xf32, #tpu.memory_space<vmem>>, vector<4x128xf32>
    %62 = arith.truncf %61 : vector<4x128xf32> to vector<4x128xbf16>
    %c0_55 = arith.constant 0 : index
    %c0_56 = arith.constant 0 : index
    %c0_57 = arith.constant 0 : index
    %63 = vector.load %arg5[%c0_55, %c0_56, %c0_57] : memref<10x128x128xbf16, #tpu.memory_space<vmem>>, vector<1x128x128xbf16>
    %64 = vector.shape_cast %63 : vector<1x128x128xbf16> to vector<128x128xbf16>
    %cst_58 = arith.constant dense<0.000000e+00> : vector<4x128xf32>
    %65 = tpu.matmul %62, %64, %cst_58 {dimension_numbers = #tpu.dot_dimension_numbers<[1], [0], [0], [1], [0, 0, 1, 1], [], []>} : vector<4x128xbf16>, vector<128x128xbf16>, vector<4x128xf32> -> vector<4x128xf32>
    %c6_59 = arith.constant 6 : index
    %c0_60 = arith.constant 0 : index
    %66 = vector.load %arg13[%c6_59, %c0_60] : memref<20x128xf32, #tpu.memory_space<vmem>>, vector<4x128xf32>
    %67 = arith.truncf %66 : vector<4x128xf32> to vector<4x128xbf16>
    %c1_61 = arith.constant 1 : index
    %c0_62 = arith.constant 0 : index
    %c0_63 = arith.constant 0 : index
    %68 = vector.load %arg5[%c1_61, %c0_62, %c0_63] : memref<10x128x128xbf16, #tpu.memory_space<vmem>>, vector<1x128x128xbf16>
    %69 = vector.shape_cast %68 : vector<1x128x128xbf16> to vector<128x128xbf16>
    %cst_64 = arith.constant dense<0.000000e+00> : vector<4x128xf32>
    %70 = tpu.matmul %67, %69, %cst_64 {dimension_numbers = #tpu.dot_dimension_numbers<[1], [0], [0], [1], [0, 0, 1, 1], [], []>} : vector<4x128xbf16>, vector<128x128xbf16>, vector<4x128xf32> -> vector<4x128xf32>
    %71 = arith.addf %65, %70 : vector<4x128xf32>
    %c8_65 = arith.constant 8 : index
    %c0_66 = arith.constant 0 : index
    %72 = vector.load %arg13[%c8_65, %c0_66] : memref<20x128xf32, #tpu.memory_space<vmem>>, vector<4x128xf32>
    %73 = arith.truncf %72 : vector<4x128xf32> to vector<4x128xbf16>
    %c2_67 = arith.constant 2 : index
    %c0_68 = arith.constant 0 : index
    %c0_69 = arith.constant 0 : index
    %74 = vector.load %arg5[%c2_67, %c0_68, %c0_69] : memref<10x128x128xbf16, #tpu.memory_space<vmem>>, vector<1x128x128xbf16>
    %75 = vector.shape_cast %74 : vector<1x128x128xbf16> to vector<128x128xbf16>
    %cst_70 = arith.constant dense<0.000000e+00> : vector<4x128xf32>
    %76 = tpu.matmul %73, %75, %cst_70 {dimension_numbers = #tpu.dot_dimension_numbers<[1], [0], [0], [1], [0, 0, 1, 1], [], []>} : vector<4x128xbf16>, vector<128x128xbf16>, vector<4x128xf32> -> vector<4x128xf32>
    %77 = arith.addf %71, %76 : vector<4x128xf32>
    %c10 = arith.constant 10 : index
    %c0_71 = arith.constant 0 : index
    %78 = vector.load %arg13[%c10, %c0_71] : memref<20x128xf32, #tpu.memory_space<vmem>>, vector<4x128xf32>
    %79 = arith.truncf %78 : vector<4x128xf32> to vector<4x128xbf16>
    %c3_72 = arith.constant 3 : index
    %c0_73 = arith.constant 0 : index
    %c0_74 = arith.constant 0 : index
    %80 = vector.load %arg5[%c3_72, %c0_73, %c0_74] : memref<10x128x128xbf16, #tpu.memory_space<vmem>>, vector<1x128x128xbf16>
    %81 = vector.shape_cast %80 : vector<1x128x128xbf16> to vector<128x128xbf16>
    %cst_75 = arith.constant dense<0.000000e+00> : vector<4x128xf32>
    %82 = tpu.matmul %79, %81, %cst_75 {dimension_numbers = #tpu.dot_dimension_numbers<[1], [0], [0], [1], [0, 0, 1, 1], [], []>} : vector<4x128xbf16>, vector<128x128xbf16>, vector<4x128xf32> -> vector<4x128xf32>
    %83 = arith.addf %77, %82 : vector<4x128xf32>
    %c12_76 = arith.constant 12 : index
    %c0_77 = arith.constant 0 : index
    %84 = vector.load %arg13[%c12_76, %c0_77] : memref<20x128xf32, #tpu.memory_space<vmem>>, vector<4x128xf32>
    %85 = arith.truncf %84 : vector<4x128xf32> to vector<4x128xbf16>
    %c4_78 = arith.constant 4 : index
    %c0_79 = arith.constant 0 : index
    %c0_80 = arith.constant 0 : index
    %86 = vector.load %arg5[%c4_78, %c0_79, %c0_80] : memref<10x128x128xbf16, #tpu.memory_space<vmem>>, vector<1x128x128xbf16>
    %87 = vector.shape_cast %86 : vector<1x128x128xbf16> to vector<128x128xbf16>
    %cst_81 = arith.constant dense<0.000000e+00> : vector<4x128xf32>
    %88 = tpu.matmul %85, %87, %cst_81 {dimension_numbers = #tpu.dot_dimension_numbers<[1], [0], [0], [1], [0, 0, 1, 1], [], []>} : vector<4x128xbf16>, vector<128x128xbf16>, vector<4x128xf32> -> vector<4x128xf32>
    %89 = arith.addf %83, %88 : vector<4x128xf32>
    %c2_82 = arith.constant 2 : index
    %c0_83 = arith.constant 0 : index
    %90 = vector.load %arg13[%c2_82, %c0_83] : memref<20x128xf32, #tpu.memory_space<vmem>>, vector<4x128xf32>
    %91 = arith.truncf %90 : vector<4x128xf32> to vector<4x128xbf16>
    %c5_84 = arith.constant 5 : index
    %c0_85 = arith.constant 0 : index
    %c0_86 = arith.constant 0 : index
    %92 = vector.load %arg5[%c5_84, %c0_85, %c0_86] : memref<10x128x128xbf16, #tpu.memory_space<vmem>>, vector<1x128x128xbf16>
    %93 = vector.shape_cast %92 : vector<1x128x128xbf16> to vector<128x128xbf16>
    %cst_87 = arith.constant dense<0.000000e+00> : vector<4x128xf32>
    %94 = tpu.matmul %91, %93, %cst_87 {dimension_numbers = #tpu.dot_dimension_numbers<[1], [0], [0], [1], [0, 0, 1, 1], [], []>} : vector<4x128xbf16>, vector<128x128xbf16>, vector<4x128xf32> -> vector<4x128xf32>
    %95 = arith.addf %89, %94 : vector<4x128xf32>
    %c5_88 = arith.constant 5 : index
    %c0_89 = arith.constant 0 : index
    %96 = vector.load %arg13[%c5_88, %c0_89] : memref<20x128xf32, #tpu.memory_space<vmem>>, vector<4x128xf32>
    %97 = arith.truncf %96 : vector<4x128xf32> to vector<4x128xbf16>
    %c6_90 = arith.constant 6 : index
    %c0_91 = arith.constant 0 : index
    %c0_92 = arith.constant 0 : index
    %98 = vector.load %arg5[%c6_90, %c0_91, %c0_92] : memref<10x128x128xbf16, #tpu.memory_space<vmem>>, vector<1x128x128xbf16>
    %99 = vector.shape_cast %98 : vector<1x128x128xbf16> to vector<128x128xbf16>
    %cst_93 = arith.constant dense<0.000000e+00> : vector<4x128xf32>
    %100 = tpu.matmul %97, %99, %cst_93 {dimension_numbers = #tpu.dot_dimension_numbers<[1], [0], [0], [1], [0, 0, 1, 1], [], []>} : vector<4x128xbf16>, vector<128x128xbf16>, vector<4x128xf32> -> vector<4x128xf32>
    %101 = arith.addf %95, %100 : vector<4x128xf32>
    %c8_94 = arith.constant 8 : index
    %c0_95 = arith.constant 0 : index
    %102 = vector.load %arg13[%c8_94, %c0_95] : memref<20x128xf32, #tpu.memory_space<vmem>>, vector<4x128xf32>
    %103 = arith.truncf %102 : vector<4x128xf32> to vector<4x128xbf16>
    %c7_96 = arith.constant 7 : index
    %c0_97 = arith.constant 0 : index
    %c0_98 = arith.constant 0 : index
    %104 = vector.load %arg5[%c7_96, %c0_97, %c0_98] : memref<10x128x128xbf16, #tpu.memory_space<vmem>>, vector<1x128x128xbf16>
    %105 = vector.shape_cast %104 : vector<1x128x128xbf16> to vector<128x128xbf16>
    %cst_99 = arith.constant dense<0.000000e+00> : vector<4x128xf32>
    %106 = tpu.matmul %103, %105, %cst_99 {dimension_numbers = #tpu.dot_dimension_numbers<[1], [0], [0], [1], [0, 0, 1, 1], [], []>} : vector<4x128xbf16>, vector<128x128xbf16>, vector<4x128xf32> -> vector<4x128xf32>
    %107 = arith.addf %101, %106 : vector<4x128xf32>
    %c11_100 = arith.constant 11 : index
    %c0_101 = arith.constant 0 : index
    %108 = vector.load %arg13[%c11_100, %c0_101] : memref<20x128xf32, #tpu.memory_space<vmem>>, vector<4x128xf32>
    %109 = arith.truncf %108 : vector<4x128xf32> to vector<4x128xbf16>
    %c8_102 = arith.constant 8 : index
    %c0_103 = arith.constant 0 : index
    %c0_104 = arith.constant 0 : index
    %110 = vector.load %arg5[%c8_102, %c0_103, %c0_104] : memref<10x128x128xbf16, #tpu.memory_space<vmem>>, vector<1x128x128xbf16>
    %111 = vector.shape_cast %110 : vector<1x128x128xbf16> to vector<128x128xbf16>
    %cst_105 = arith.constant dense<0.000000e+00> : vector<4x128xf32>
    %112 = tpu.matmul %109, %111, %cst_105 {dimension_numbers = #tpu.dot_dimension_numbers<[1], [0], [0], [1], [0, 0, 1, 1], [], []>} : vector<4x128xbf16>, vector<128x128xbf16>, vector<4x128xf32> -> vector<4x128xf32>
    %113 = arith.addf %107, %112 : vector<4x128xf32>
    %c14 = arith.constant 14 : index
    %c0_106 = arith.constant 0 : index
    %114 = vector.load %arg13[%c14, %c0_106] : memref<20x128xf32, #tpu.memory_space<vmem>>, vector<4x128xf32>
    %115 = arith.truncf %114 : vector<4x128xf32> to vector<4x128xbf16>
    %c9_107 = arith.constant 9 : index
    %c0_108 = arith.constant 0 : index
    %c0_109 = arith.constant 0 : index
    %116 = vector.load %arg5[%c9_107, %c0_108, %c0_109] : memref<10x128x128xbf16, #tpu.memory_space<vmem>>, vector<1x128x128xbf16>
    %117 = vector.shape_cast %116 : vector<1x128x128xbf16> to vector<128x128xbf16>
    %cst_110 = arith.constant dense<0.000000e+00> : vector<4x128xf32>
    %118 = tpu.matmul %115, %117, %cst_110 {dimension_numbers = #tpu.dot_dimension_numbers<[1], [0], [0], [1], [0, 0, 1, 1], [], []>} : vector<4x128xbf16>, vector<128x128xbf16>, vector<4x128xf32> -> vector<4x128xf32>
    %119 = arith.addf %113, %118 : vector<4x128xf32>
    %c0_111 = arith.constant 0 : index
    %c0_112 = arith.constant 0 : index
    %120 = vector.load %arg6[%c0_111, %c0_112] : memref<1x128xf32, #tpu.memory_space<vmem>>, vector<1x128xf32>
    %121 = vector.broadcast %120 : vector<1x128xf32> to vector<4x128xf32>
    %122 = arith.mulf %119, %121 : vector<4x128xf32>
    %c0_113 = arith.constant 0 : index
    %c0_114 = arith.constant 0 : index
    %123 = vector.load %arg7[%c0_113, %c0_114] : memref<1x128xf32, #tpu.memory_space<vmem>>, vector<1x128xf32>
    %124 = vector.broadcast %123 : vector<1x128xf32> to vector<4x128xf32>
    %125 = arith.addf %122, %124 : vector<4x128xf32>
    %cst_115 = arith.constant 0.00999999977 : f32
    %126 = vector.broadcast %cst_115 : f32 to vector<4x128xf32>
    %127 = arith.mulf %126, %125 : vector<4x128xf32>
    %128 = arith.maximumf %125, %127 : vector<4x128xf32>
    %c0_116 = arith.constant 0 : index
    %c0_117 = arith.constant 0 : index
    %129 = vector.load %arg8[%c0_116, %c0_117] : memref<1x128xf32, #tpu.memory_space<vmem>>, vector<1x128xf32>
    %130 = vector.broadcast %129 : vector<1x128xf32> to vector<4x128xf32>
    %131 = arith.mulf %57, %130 : vector<4x128xf32>
    %132 = arith.addf %131, %128 : vector<4x128xf32>
    %133 = arith.addf %132, %3 : vector<4x128xf32>
    %cst_118 = arith.constant dense<0.000000e+00> : vector<128xf32>
    %134 = vector.multi_reduction <add>, %133, %cst_118 [0] : vector<4x128xf32> to vector<128xf32>
    %135 = vector.shape_cast %134 : vector<128xf32> to vector<1x128xf32>
    %cst_119 = arith.constant 2.500000e-01 : f32
    %136 = vector.broadcast %cst_119 : f32 to vector<1x128xf32>
    %137 = arith.mulf %135, %136 : vector<1x128xf32>
    %c0_120 = arith.constant 0 : index
    %c0_121 = arith.constant 0 : index
    %138 = vector.load %arg9[%c0_120, %c0_121] : memref<128x8xf32, #tpu.memory_space<vmem>>, vector<128x8xf32>
    %cst_122 = arith.constant dense<0.000000e+00> : vector<1x8xf32>
    %139 = tpu.matmul %137, %138, %cst_122 {dimension_numbers = #tpu.dot_dimension_numbers<[1], [0], [0], [1], [0, 0, 1, 1], [], []>} : vector<1x128xf32>, vector<128x8xf32>, vector<1x8xf32> -> vector<1x8xf32>
    %c0_123 = arith.constant 0 : index
    %c0_124 = arith.constant 0 : index
    %140 = vector.load %arg10[%c0_123, %c0_124] : memref<1x8xf32, #tpu.memory_space<vmem>>, vector<1x8xf32>
    %141 = arith.addf %139, %140 : vector<1x8xf32>
    %142 = vector.shape_cast %141 : vector<1x8xf32> to vector<1x1x8xf32>
    %c0_125 = arith.constant 0 : index
    %c0_126 = arith.constant 0 : index
    %c0_127 = arith.constant 0 : index
    %143 = vector.load %arg11[%c0_125, %c0_126, %c0_127] : memref<1x1x8xf32, #tpu.memory_space<vmem>>, vector<1x1x8xf32>
    tpu.vector_store %arg11[%c0_125, %c0_126, %c0_127], %142 {strides = array<i32>} : memref<1x1x8xf32, #tpu.memory_space<vmem>>, vector<1x1x8xf32>,
    return
  }
  func.func @transform_0(%arg0: i32) -> (i32, i32, i32) {
    %c0_i32 = arith.constant 0 : i32
    %c0_i32_0 = arith.constant 0 : i32
    %c0_i32_1 = arith.constant 0 : i32
    return %arg0, %c0_i32, %c0_i32_0 : i32, i32, i32
  }
  func.func @transform_1(%arg0: i32) -> (i32, i32, i32) {
    %c0_i32 = arith.constant 0 : i32
    %c0_i32_0 = arith.constant 0 : i32
    %c0_i32_1 = arith.constant 0 : i32
    %c0_i32_2 = arith.constant 0 : i32
    return %c0_i32, %c0_i32_0, %c0_i32_1 : i32, i32, i32
  }
  func.func @transform_2(%arg0: i32) -> (i32, i32) {
    %c0_i32 = arith.constant 0 : i32
    %c0_i32_0 = arith.constant 0 : i32
    %c0_i32_1 = arith.constant 0 : i32
    return %c0_i32, %c0_i32_0 : i32, i32
  }
  func.func @transform_3(%arg0: i32) -> (i32, i32) {
    %c0_i32 = arith.constant 0 : i32
    %c0_i32_0 = arith.constant 0 : i32
    %c0_i32_1 = arith.constant 0 : i32
    return %c0_i32, %c0_i32_0 : i32, i32
  }
  func.func @transform_4(%arg0: i32) -> (i32, i32, i32) {
    %c0_i32 = arith.constant 0 : i32
    %c0_i32_0 = arith.constant 0 : i32
    %c0_i32_1 = arith.constant 0 : i32
    %c0_i32_2 = arith.constant 0 : i32
    return %c0_i32, %c0_i32_0, %c0_i32_1 : i32, i32, i32
  }
  func.func @transform_5(%arg0: i32) -> (i32, i32) {
    %c0_i32 = arith.constant 0 : i32
    %c0_i32_0 = arith.constant 0 : i32
    %c0_i32_1 = arith.constant 0 : i32
    return %c0_i32, %c0_i32_0 : i32, i32
  }
  func.func @transform_6(%arg0: i32) -> (i32, i32) {
    %c0_i32 = arith.constant 0 : i32
    %c0_i32_0 = arith.constant 0 : i32
    %c0_i32_1 = arith.constant 0 : i32
    return %c0_i32, %c0_i32_0 : i32, i32
  }
  func.func @transform_7(%arg0: i32) -> (i32, i32) {
    %c0_i32 = arith.constant 0 : i32
    %c0_i32_0 = arith.constant 0 : i32
    %c0_i32_1 = arith.constant 0 : i32
    return %c0_i32, %c0_i32_0 : i32, i32
  }
  func.func @transform_8(%arg0: i32) -> (i32, i32) {
    %c0_i32 = arith.constant 0 : i32
    %c0_i32_0 = arith.constant 0 : i32
    %c0_i32_1 = arith.constant 0 : i32
    return %c0_i32, %c0_i32_0 : i32, i32
  }
  func.func @transform_9(%arg0: i32) -> (i32, i32) {
    %c0_i32 = arith.constant 0 : i32
    %c0_i32_0 = arith.constant 0 : i32
    %c0_i32_1 = arith.constant 0 : i32
    return %c0_i32, %c0_i32_0 : i32, i32
  }
  func.func @transform_10(%arg0: i32) -> (i32, i32, i32) {
    %c0_i32 = arith.constant 0 : i32
    %c0_i32_0 = arith.constant 0 : i32
    %c0_i32_1 = arith.constant 0 : i32
    return %arg0, %c0_i32, %c0_i32_0 : i32, i32, i32
  }
}

</mosaic_0001>

<bundles_post_ra>
// kernel: inception_net_forward.3
= control target key start
LH: loop header
LB: loop body
LE: loop exit
PB: predicated region body
PF: predicated region fallthrough
CT: control target
= control target key end

     0   :  { %9 = vsyncpa [#allocation4], 0  ;;  %s1273_s0 = inlined_call_operand.hbm [shape: f32[2,16,128], index: 0, kind: input, shape index: {}]   ;;  %s1274_s1 = inlined_call_operand.hbm [shape: bf16[5,128,128], index: 1, kind: input, shape index: {}]   ;;  %s1275_s2 = inlined_call_operand.vmem [shape: f32[1,128], index: 2, kind: input, shape index: {}]   ;;  %s1276_s3 = inlined_call_operand.vmem [shape: f32[1,128], index: 3, kind: input, shape index: {}]   ;;  %s1277_s4 = inlined_call_operand.vmem [shape: f32[2,16,128], index: 4, kind: output, shape index: {}]  }
   0x1   :  { %11 = vsyncpa [#allocation4 + $0x1], 0 }
   0x2   :  { %12 = vsyncpa [#allocation6], 0  ;;  %s1157_s15 = smov 0   ;;  %s1159_s16 = smov 0  }
   0x3   :  { %s1161_s17 = smov 0   ;;  %s1163_s18 = smov 0  }
   0x4 LB: > { %s1176_s19 = sadd.s32 4294967295, %s1124_s18   ;;  %p38_p0 = scmp.ne.s32.totalorder %s1116_s16, %s1112_s15  ;;  %s1124_s18 = sphi %s1163_s18, %s1284_s18   ;;  %s1120_s17 = sphi %s1161_s17, %s1283_s17   ;;  %s1116_s16 = sphi %s1159_s16, %s1282_s16   ;;  %s1112_s15 = sphi %s1157_s15, %s1281_s15  }
   0x5   : > { %p39_p1 = scmp.eq.s32.totalorder %s1176_s19, 0  ;;  %p754_p2 = scmp.ge.s32.totalorder %s1124_s18, 1 }
   0x6   : > { %p138_p3 = scmp.lt.s32.totalorder %s1124_s18, 3  ;;  %s149_s23 = sshll.u32 %s1274_s1, 4  ;;  %s150_s23 = int_to_ptr.hbm [resolvable:$true] %s149_s23 }
   0x7   : > { %p1184_p4 = por %p39_p1, %p38_p0  ;;  %s1126_s25 = smov [#allocation5]  }
   0x8   : > { %p1191_p5 = pnand %p754_p2, %p138_p3  ;;  %s151_s26 = sshll.u32 %s1126_s25, 4  ;;  %s152_s26 = int_to_ptr.vmem [resolvable:$true] %s151_s26 }
   0x9   : > { %s1200_s27 = sadd.s32 1, %s1124_s18   ;;  %s1127_s28 = smov 64  }
   0xa   : > { %p975_p6 = pneg %p1191_p5  ;;  %s1128_s29 = smov 4  }
   0xb   : > { %s22_s30 = ssub.s32 %s1124_s18, %s1200_s27  ;;  %s25_s5 = sadd.s32 1, %s1120_s17 }
   0xc   : > { %p976_p7 = pnand %p975_p6, %p39_p1  ;;  %p23_p8 = scmp.eq.s32.totalorder %s22_s30, 0 }
   0xd   : > { %p32_p9 = scmp.ne.s32.totalorder %s1120_s17, %s1116_s16  ;;  %p33_p10 = scmp.eq.s32.totalorder %s1124_s18, 0 }
   0xe   : > { %978 = dma.hbm_to_vmem [thread:$0]  (!%p976_p7), %s150_s23, 5120, %s152_s26, [#allocation6], %s1127_s28, %s1127_s28, %s1128_s29  }
   0xf   : > { %p984_p11 = scmp.lt.s32.totalorder %s1124_s18, 2  ;;  %p34_p12 = por %p33_p10, %p32_p9 }
  0x10   : > { %s1210_s6 = scalar_select %p23_p8, %s1120_s17, %s25_s5  }
  0x11   : > { %s171_s7 = sand.u32 1, %s1120_s17   ;;  %s927_s9 = sshll.u32 %s1124_s18, 4 }
  0x12   : > { %s757_s8 = sshll.u32 %s171_s7, 4  ;;  %s180_s12 = scalar_lea.hbm %s1273_s0, %s927_s9 }
  0x13   : > { %s175_s13 = scalar_lea.vmem [#allocation3], %s757_s8  ;;  %s181_s15 = sshll.u32 %s180_s12, 4  ;;  %s182_s15 = int_to_ptr.hbm [resolvable:$true] %s181_s15 }
  0x14   : > { %s183_s14 = sshll.u32 %s175_s13, 4  ;;  %p1217_p13 = pnand %p984_p11, %p34_p12  ;;  %s184_s14 = int_to_ptr.vmem [resolvable:$true] %s183_s14 }
  0x15   : > { %s172_s22 = scalar_lea.sflag [#allocation4], %s171_s7  ;;  %s1056_s23 = sshra.s32 %s182_s15, 4  ;;  %s1057_s23 = int_to_ptr.hbm [resolvable:$true] %s1056_s23 }
  0x16   : > { %s1058_s25 = scalar_lea.hbm %s1057_s23, 16  ;;  %p1060_p2 = pneg %p1217_p13 }
  0x17   : > { %p1059_p0 = scmp.ne.s32.totalorder %s1057_s23, %s1058_s25  ;;  %s1063_s28 = scalar_lea.hbm %s1273_s0, 32 }
  0x18   : > { %p1064_p7 = scmp.lt.s32.totalorder %s1057_s23, %s1273_s0  ;;  %p1065_p8 = scmp.lt.s32.totalorder %s1063_s28, %s1058_s25 }
  0x19   : > { %p1061_p3 = pnand %p1060_p2, %p1059_p0 }
  0x1a   : > { %p1066_p9 = por %p1065_p8, %p1064_p7 }
  0x1b   : > { %p1062_p6 = pneg %p1061_p3 }
  0x1d   : > { %p1067_p10 = pnand %p1066_p9, %p1062_p6 }
  0x1f   : > { %1070 = shalt.err (!%p1067_p10)
}
  0x20   : > { %s1129_s5 = smov 128   ;;  %s1130_s7 = smov 8  }
  0x21   : > { %982 = dma.hbm_to_vmem [thread:$0]  (!%p1217_p13), %s182_s15, 256, %s184_s14, %s172_s22, %s1129_s5, %s1129_s5, %s1130_s7  }
  0x22   : > { %195 = sbr.rel (%p1191_p5) target bundleno = 251 (0xfb), region = 36  ;;  %s197_s8 = sand.u32 (!%p1191_p5), 1, %s1116_s16  }
  0x23   : > { %s1234_s9 = sshll.u32 (!%p1191_p5), %s197_s8, 4  ;;  %s198_s10 = scalar_lea.sflag (!%p1191_p5), [#allocation4], %s197_s8 }
  0x24   : > { %s201_s11 = scalar_lea.vmem (!%p1191_p5), [#allocation3], %s1234_s9 }
  0x27   : > { %1103 = dma.done.wait (%p1184_p4), %s198_s10, 256  }
  0x28   : > { %1105 = vsyncadd (%p1184_p4), %s198_s10, 4294967040 }
  0x29   : > { %1107 = dma.done.wait (%p39_p1), [#allocation6], 5120  }
  0x2a   : > { %1109 = vsyncadd (%p39_p1), [#allocation6], 4294962176  ;;  %v1131_v0 = vmov 0.0   ;;  %v944_v1 = vld [vmem:[#allocation5 + $0x78] sm:$0xff]  ;;  %v943_v5 = vld [vmem:[#allocation5 + $0x70] sm:$0xff]  ;;  %p232_p1 = scmp.lt.s32.totalorder %s1176_s19, 1 }
  0x2b   : > { %238 = vst [vmem:[#allocation2 + $0x18] sm:$0xff] %v1131_v0  ;;  %v952_v2 = vld [vmem:[#allocation5 + $0xb8] sm:$0xff]  ;;  %330 = vmatpush.bf16.msra.mxu0 %v944_v1  ;;  %v951_v6 = vld [vmem:[#allocation5 + $0xb0] sm:$0xff]  ;;  %v942_v9 = vld [vmem:[#allocation5 + $0x68] sm:$0xff] }
  0x2c   : > { %237 = vst [vmem:[#allocation2] sm:$0xff] %v1131_v0  ;;  %v960_v3 = vld [vmem:[#allocation5 + $0xf8] sm:$0xff]  ;;  %474 = vmatpush.bf16.msra.mxu2 %v952_v2  ;;  %v959_v7 = vld [vmem:[#allocation5 + $0xf0] sm:$0xff]  ;;  %v950_v10 = vld [vmem:[#allocation5 + $0xa8] sm:$0xff]  ;;  %s1286_s19 = smov (!%p232_p1, %s1176_s19), 1 }
  0x2d   : > { %v936_v4 = vld [vmem:[#allocation5 + $0x38] sm:$0xff]  ;;  %558 = vmatpush.bf16.msra.mxu3 %v960_v3  ;;  %v935_v8 = vld [vmem:[#allocation5 + $0x30] sm:$0xff]  ;;  %v958_v11 = vld [vmem:[#allocation5 + $0xe8] sm:$0xff]  ;;  %s928_s14 = sshll.u32 %s1286_s19, 4 }
  0x2e   : > { %392 = vmatpush.bf16.msra.mxu1 %v936_v4  ;;  %v934_v12 = vld [vmem:[#allocation5 + $0x28] sm:$0xff]  ;;  %v941_v13 = vld [vmem:[#allocation5 + $0x60] sm:$0xff]  ;;  %v940_v19 = vld [vmem:[#allocation5 + $0x58] sm:$0xff]  ;;  %s236_s22 = scalar_lea.vmem %s1277_s4, %s928_s14 }
  0x2f   : > { %331 = vmatpush.bf16.msra.mxu0 %v943_v5  ;;  %v949_v14 = vld [vmem:[#allocation5 + $0xa0] sm:$0xff]  ;;  %v240_v18 = vld [vmem:[%s201_s11 + $0x8] sm:$0xff]  ;;  %v939_v23 = vld [vmem:[#allocation5 + $0x50] sm:$0xff] }
  0x30   : > { %475 = vmatpush.bf16.msra.mxu2 %v951_v6  ;;  %v239_v15 = vld [vmem:[%s201_s11] sm:$0xff]  ;;  %242 = vst [vmem:[#allocation2 + $0x10] sm:$0xff] %v240_v18  ;;  %v948_v20 = vld [vmem:[#allocation5 + $0x98] sm:$0xff]  ;;  %v938_v27 = vld [vmem:[#allocation5 + $0x48] sm:$0xff] }
  0x31   : > { %559 = vmatpush.bf16.msra.mxu3 %v959_v7  ;;  %v957_v16 = vld [vmem:[#allocation5 + $0xe0] sm:$0xff]  ;;  %241 = vst [vmem:[#allocation2 + $0x8] sm:$0xff] %v239_v15  ;;  %v956_v21 = vld [vmem:[#allocation5 + $0xd8] sm:$0xff]  ;;  %v947_v24 = vld [vmem:[#allocation5 + $0x90] sm:$0xff]  ;;  %v408_v42 = vpack.c.bf16 %v240_v18, %v239_v15 }
  0x32   : > { %393 = vmatpush.bf16.msra.mxu1 %v935_v8  ;;  %v933_v17 = vld [vmem:[#allocation5 + $0x20] sm:$0xff]  ;;  %v932_v22 = vld [vmem:[#allocation5 + $0x18] sm:$0xff]  ;;  %v955_v25 = vld [vmem:[#allocation5 + $0xd0] sm:$0xff] }
  0x33   : > { %332 = vmatpush.bf16.msra.mxu0 %v942_v9  ;;  %v931_v26 = vld [vmem:[#allocation5 + $0x10] sm:$0xff]  ;;  %v946_v28 = vld [vmem:[#allocation5 + $0x88] sm:$0xff]  ;;  %v937_v31 = vld [vmem:[#allocation5 + $0x40] sm:$0xff] }
  0x34   : > { %476 = vmatpush.bf16.msra.mxu2 %v950_v10  ;;  %v954_v29 = vld [vmem:[#allocation5 + $0xc8] sm:$0xff]  ;;  %v945_v32 = vld [vmem:[#allocation5 + $0x80] sm:$0xff]  ;;  %v968_v33 = vld [vmem:[#allocation5 + $0x138] sm:$0xff] }
  0x35   : > { %560 = vmatpush.bf16.msra.mxu3 %v958_v11  ;;  %v930_v30 = vld [vmem:[#allocation5 + $0x8] sm:$0xff]  ;;  %v953_v36 = vld [vmem:[#allocation5 + $0xc0] sm:$0xff]  ;;  %v967_v45 = vld [vmem:[#allocation5 + $0x130] sm:$0xff] }
  0x36   : > { %394 = vmatpush.bf16.msra.mxu1 %v934_v12  ;;  %v929_v39 = vld [vmem:[#allocation5] sm:$0xff]  ;;  %v966_v47 = vld [vmem:[#allocation5 + $0x128] sm:$0xff]  ;;  %v964_v49 = vld [vmem:[#allocation5 + $0x118] sm:$0xff] }
  0x37   : > { %333 = vmatpush.bf16.msra.mxu0 %v941_v13  ;;  %v491_v38 = vld [vmem:[#allocation2 + $0x11] sm:$0xff]  ;;  %v965_v48 = vld [vmem:[#allocation5 + $0x120] sm:$0xff]  ;;  %v962_v51 = vld [vmem:[#allocation5 + $0x108] sm:$0xff] }
  0x38   : > { %477 = vmatpush.bf16.msra.mxu2 %v949_v14  ;;  %v262_v34 = vld [vmem:[#allocation2 + $0x7] sm:$0xff]  ;;  %v263_v35 = vld [vmem:[#allocation2 + $0xf] sm:$0xff]  ;;  %v1024_v2 = vld [vmem:[%s1275_s2] ss:$0 sm:$0xff] }
  0x39   : > { %561 = vmatpush.bf16.msra.mxu3 %v957_v16  ;;  %v490_v37 = vld [vmem:[#allocation2 + $0x9] sm:$0xff]  ;;  %v264_v43 = vpack.c.bf16 %v263_v35, %v262_v34  ;;  %v961_v52 = vld [vmem:[#allocation5 + $0x100] sm:$0xff]  ;;  %v575_v54 = vld [vmem:[#allocation2 + $0x12] sm:$0xff] }
  0x3a   : > { %395 = vmatpush.bf16.msra.mxu1 %v933_v17  ;;  %v243_v40 = vld [vmem:[#allocation2 + $0x6] sm:$0xff]  ;;  %v244_v41 = vld [vmem:[#allocation2 + $0xe] sm:$0xff]  ;;  %v492_v44 = vpack.c.bf16 %v491_v38, %v490_v37  ;;  %v1025_v6 = vld [vmem:[%s1276_s3] ss:$0 sm:$0xff] }
  0x3b   : > { %334 = vmatpush.bf16.msra.mxu0 %v940_v19  ;;  %v245_v46 = vpack.c.bf16 %v244_v41, %v243_v40  ;;  %v963_v50 = vld [vmem:[#allocation5 + $0x110] sm:$0xff] }
  0x3c   : > { %478 = vmatpush.bf16.msra.mxu2 %v948_v20  ;;  %v574_v53 = vld [vmem:[#allocation2 + $0xa] sm:$0xff] }
  0x3d   : > { %562 = vmatpush.bf16.msra.mxu3 %v956_v21  ;;  %v576_v55 = vpack.c.bf16 %v575_v54, %v574_v53 }
  0x3e   : > { %396 = vmatpush.bf16.msra.mxu1 %v932_v22 }
  0x3f   : > { %335 = vmatpush.bf16.msra.mxu0 %v939_v23 }
  0x40   : > { %479 = vmatpush.bf16.msra.mxu2 %v947_v24 }
  0x41   : > { %563 = vmatpush.bf16.msra.mxu3 %v955_v25 }
  0x42   : > { %397 = vmatpush.bf16.msra.mxu1 %v931_v26 }
  0x43   : > { %336 = vmatpush.bf16.msra.mxu0 %v938_v27 }
  0x44   : > { %480 = vmatpush.bf16.msra.mxu2 %v946_v28 }
  0x45   : > { %564 = vmatpush.bf16.msra.mxu3 %v954_v29 }
  0x46   : > { %398 = vmatpush.bf16.msra.mxu1 %v930_v30 }
  0x47   : > { %337 = vmatpush.bf16.msra.mxu0 %v937_v31 }
  0x48   : > { %481 = vmatpush.bf16.msra.mxu2 %v945_v32 }
  0x49   : > { %565 = vmatpush.bf16.msra.mxu3 %v953_v36 }
  0x4a   : > { %399 = vmatpush.bf16.msra.mxu1 %v929_v39  ;;  %338 = vmatmul.bf16.vlgmr.msra.gmra.mxu0 %v264_v43 }
  0x4b   : > { %642 = vmatpush.bf16.msrb.mxu0 %v968_v33  ;;  %482 = vmatmul.bf16.vlgmr.msra.gmra.mxu2 %v408_v42 }
  0x4c   : > { %566 = vmatmul.bf16.vlgmr.msra.gmra.mxu3 %v492_v44 }
  0x4d   : > { %400 = vmatmul.bf16.vlgmr.msra.gmra.mxu1 %v245_v46 }
  0x4f   : > { %643 = vmatpush.bf16.msrb.mxu0 %v967_v45 }
  0x53   : > { %644 = vmatpush.bf16.msrb.mxu0 %v966_v47 }
  0x57   : > { %645 = vmatpush.bf16.msrb.mxu0 %v965_v48 }
  0x5b   : > { %646 = vmatpush.bf16.msrb.mxu0 %v964_v49 }
  0x5f   : > { %647 = vmatpush.bf16.msrb.mxu0 %v963_v50 }
  0x63   : > { %648 = vmatpush.bf16.msrb.mxu0 %v962_v51 }
  0x67   : > { %649 = vmatpush.bf16.msrb.mxu0 %v961_v52 }
  0x6a   : > { %650 = vmatmul.bf16.vlgmr.msrb.gmra.mxu0 %v576_v55 }
  0xc7   : > { %v339_v56 = vpop.f32.mrf.mxu0 }
  0xca   : > { %v401_v57 = vpop.f32.mrf.mxu1 }
  0xcb   : > { %v402_v59 = vadd.f32 %v401_v57, %v339_v56 }
  0xce   : > { %v483_v58 = vpop.f32.mrf.mxu2 }
  0xcf   : > { %v341_v60 = vpop.f32.mrf.mxu0  ;;  %v567_v61 = vpop.f32.mrf.mxu3  ;;  %v488_v62 = vadd.f32 %v483_v58, %v402_v59 }
  0xd1   : > { %v572_v0 = vadd.f32 %v567_v61, %v488_v62 }
  0xd2   : > { %v403_v63 = vpop.f32.mrf.mxu1 }
  0xd3   : > { %v404_v1 = vadd.f32 %v403_v63, %v341_v60 }
  0xd6   : > { %v485_v3 = vpop.f32.mrf.mxu2 }
  0xd7   : > { %v489_v7 = vadd.f32 %v485_v3, %v404_v1  ;;  %v569_v9 = vpop.f32.mrf.mxu3 }
  0xd9   : > { %v573_v11 = vadd.f32 %v569_v9, %v489_v7 }
  0xe7   : > { %v651_v4 = vpop.f32.mrf.mxu0 }
  0xe8   : > { %v656_v5 = vadd.f32 %v651_v4, %v572_v0 }
  0xea   : > { %v662_v8 = vmul.f32 %v1024_v2, %v656_v5 }
  0xec   : > { %v668_v10 = vadd.f32 %v1025_v6, %v662_v8 }
  0xee   : > { %v670_v12 = vmul.f32 0.01, %v668_v10 }
  0xef   : > { %v653_v13 = vpop.f32.mrf.mxu0 }
  0xf0   : > { %v672_v14 = vmax.f32 %v668_v10, %v670_v12  ;;  %v657_v15 = vadd.f32 %v653_v13, %v573_v11 }
  0xf2   : > { %674 = vst [vmem:[%s236_s22] sm:$0xff] %v672_v14  ;;  %v663_v16 = vmul.f32 %v1024_v2, %v657_v15 }
  0xf4   : > { %v669_v17 = vadd.f32 %v1025_v6, %v663_v16 }
  0xf6   : > { %v671_v18 = vmul.f32 0.01, %v669_v17 }
  0xf8   : > { %v673_v19 = vmax.f32 %v669_v17, %v671_v18 }
  0xfa   : > { %675 = vst [vmem:[%s236_s22 + $0x8] sm:$0xff] %v673_v19 }
  0xfb PF: > { %p15_p4 = scmp.ge.s32.totalorder %s1200_s27, 4   ;;  %s1281_s15 = smov %s1116_s16 }
  0xfc   : > { %s1282_s16 = smov %s1120_s17  ;;  %s1283_s17 = smov %s1210_s6 }
  0xfd   : > { %s1284_s18 = smov %s1200_s27  ;;  %17 = sbr.rel (!%p15_p4) target bundleno = 4 (0x4), region = 84 }
 0x102   :  { %697 = vsyncpa [#allocation4], 1 }
 0x103   :  { %699 = vsyncpa [#allocation4 + $0x1], 1 }
 0x104   :  { %700 = vsyncpa [#allocation6], 1 }

// kernel: inception_net_forward.4
= control target key start
LH: loop header
LB: loop body
LE: loop exit
PB: predicated region body
PF: predicated region fallthrough
CT: control target
= control target key end

     0   :  { %13 = vsyncpa [#allocation5], 0  ;;  %s2915_s0 = inlined_call_operand.vmem [shape: f32[2,16,128], index: 0, kind: input, shape index: {}]   ;;  %s2916_s1 = inlined_call_operand.hbm [shape: bf16[7,128,128], index: 1, kind: input, shape index: {}]   ;;  %s2917_s2 = inlined_call_operand.vmem [shape: f32[1,128], index: 2, kind: input, shape index: {}]   ;;  %s2918_s3 = inlined_call_operand.hbm [shape: f32[1,128], index: 3, kind: input, shape index: {}]   ;;  %s2919_s4 = inlined_call_operand.hbm [shape: bf16[10,128,128], index: 4, kind: input, shape index: {}]   ;;  %s2920_s5 = inlined_call_operand.vmem [shape: f32[1,128], index: 5, kind: input, shape index: {}]   ;;  %s2921_s6 = inlined_call_operand.vmem [shape: f32[1,128], index: 6, kind: input, shape index: {}]   ;;  %s2922_s7 = inlined_call_operand.hbm [shape: f32[1,128], index: 7, kind: input, shape index: {}]   ;;  %s2923_s8 = inlined_call_operand.vmem [shape: f32[2,8,128], index: 8, kind: output, shape index: {}]  }
   0x1   :  { %14 = vsyncpa [#allocation7], 0 }
   0x2   :  { %15 = vsyncpa [#allocation10], 0  ;;  %s2817_s27 = smov 0  }
   0x3 LB: > { %s254_s30 = sshll.u32 %s2918_s3, 4  ;;  %s2826_s9 = sadd.s32 4294967295, %s2763_s27   ;;  %s2763_s27 = sphi %s2817_s27, %s21_s27   ;;  %s255_s30 = int_to_ptr.hbm [resolvable:$true] %s254_s30 }
   0x4   : > { %p1870_p0 = scmp.ge.s32.totalorder %s2763_s27, 1  ;;  %p225_p1 = scmp.lt.s32.totalorder %s2763_s27, 3 }
   0x5   : > { %p2597_p2 = scmp.eq.s32.totalorder %s2826_s9, 0  ;;  %s2765_s11 = smov [#allocation6]  }
   0x6   : > { %p2831_p3 = pnand %p1870_p0, %p225_p1  ;;  %s256_s12 = sshll.u32 %s2765_s11, 4  ;;  %s257_s12 = int_to_ptr.vmem [resolvable:$true] %s256_s12 }
   0x7   : > { %s236_s15 = sshll.u32 %s2916_s1, 4  ;;  %s2766_s17 = smov [#allocation4]   ;;  %s237_s15 = int_to_ptr.hbm [resolvable:$true] %s236_s15 }
   0x8   : > { %p2584_p4 = pneg %p2831_p3  ;;  %s238_s18 = sshll.u32 %s2766_s17, 4  ;;  %s239_s18 = int_to_ptr.vmem [resolvable:$true] %s238_s18 }
   0x9   : > { %s265_s21 = sshll.u32 %s2919_s4, 4  ;;  %s2767_s22 = smov 64   ;;  %s266_s21 = int_to_ptr.hbm [resolvable:$true] %s265_s21 }
   0xa   : > { %p2842_p5 = pnand %p2597_p2, %p2584_p4  ;;  %s2768_s23 = smov 4  }
   0xb   : > { %s2769_s24 = smov [#allocation8]   ;;  %s286_s29 = sshll.u32 %s2922_s7, 4  ;;  %s287_s29 = int_to_ptr.hbm [resolvable:$true] %s286_s29 }
   0xc   : > { %2590 = dma.hbm_to_vmem [thread:$0]  (!%p2842_p5), %s255_s30, 16, %s257_s12, [#allocation7]  }
   0xd   : > { %2587 = dma.hbm_to_vmem [thread:$0]  (!%p2842_p5), %s237_s15, 7168, %s239_s18, [#allocation5], %s2767_s22, %s2767_s22, %s2768_s23  }
   0xe   : > { %s267_s25 = sshll.u32 %s2769_s24, 4  ;;  %s2770_s11 = smov [#allocation9]   ;;  %s268_s25 = int_to_ptr.vmem [resolvable:$true] %s267_s25 }
   0xf   : > { %2593 = dma.hbm_to_vmem [thread:$0]  (!%p2842_p5), %s266_s21, 10240, %s268_s25, [#allocation7], %s2767_s22, %s2767_s22, %s2768_s23  }
  0x10   : > { %s288_s13 = sshll.u32 %s2770_s11, 4  ;;  %309 = sbr.rel (%p2831_p3) target bundleno = 425 (0x1a9), region = 52  ;;  %s289_s13 = int_to_ptr.vmem [resolvable:$true] %s288_s13 }
  0x11   : > { %2596 = dma.hbm_to_vmem [thread:$0]  (!%p2842_p5), %s287_s29, 16, %s289_s13, [#allocation10]  }
  0x15   : > { %2750 = dma.done.wait (%p2597_p2), [#allocation5], 7168  }
  0x16   : > { %2752 = vsyncadd (%p2597_p2), [#allocation5], 4294960128 }
  0x17   : > { %2754 = dma.done.wait (%p2597_p2), [#allocation7], 10256  }
  0x18   : > { %2756 = vsyncadd (%p2597_p2), [#allocation7], 4294957040 }
  0x19   : > { %2758 = dma.done.wait (%p2597_p2), [#allocation10], 16  }
  0x1a   : > { %2760 = vsyncadd (%p2597_p2), [#allocation10], 4294967280  ;;  %v2771_v0 = vmov 0.0   ;;  %p358_p6 = scmp.lt.s32.totalorder %s2826_s9, 1  ;;  %v2447_v1 = vld [vmem:[#allocation4 + $0x78] sm:$0xff]  ;;  %v2446_v4 = vld [vmem:[#allocation4 + $0x70] sm:$0xff] }
  0x1b   : > { %372 = vst [vmem:[#allocation2 + $0x10] sm:$0xff] %v2771_v0  ;;  %v2439_v2 = vld [vmem:[#allocation4 + $0x38] sm:$0xff]  ;;  %459 = vmatpush.bf16.msra.mxu0 %v2447_v1  ;;  %v2438_v5 = vld [vmem:[#allocation4 + $0x30] sm:$0xff]  ;;  %v2445_v8 = vld [vmem:[#allocation4 + $0x68] sm:$0xff] }
  0x1c   : > { %371 = vst [vmem:[#allocation2] sm:$0xff] %v2771_v0  ;;  %v2455_v3 = vld [vmem:[#allocation4 + $0xb8] sm:$0xff]  ;;  %520 = vmatpush.bf16.msra.mxu1 %v2439_v2  ;;  %s2927_s9 = smov (!%p358_p6, %s2826_s9), 1  ;;  %v2454_v6 = vld [vmem:[#allocation4 + $0xb0] sm:$0xff]  ;;  %v2437_v9 = vld [vmem:[#allocation4 + $0x28] sm:$0xff] }
  0x1d   : > { %946 = vst [vmem:[#allocation3] sm:$0xff] %v2771_v0  ;;  %600 = vmatpush.bf16.msra.mxu2 %v2455_v3  ;;  %v2463_v7 = vld [vmem:[#allocation4 + $0xf8] sm:$0xff]  ;;  %s2431_s30 = sshll.u32 %s2927_s9, 4  ;;  %v2453_v10 = vld [vmem:[#allocation4 + $0xa8] sm:$0xff]  ;;  %v2462_v11 = vld [vmem:[#allocation4 + $0xf0] sm:$0xff]  ;;  %s1883_s21 = sshll.u32 %s2927_s9, 3 }
  0x1e   : > { %947 = vst [vmem:[#allocation3 + $0x10] sm:$0xff] %v2771_v0  ;;  %681 = vmatpush.bf16.msra.mxu3 %v2463_v7  ;;  %s362_s14 = scalar_lea.vmem %s2915_s0, %s2431_s30  ;;  %v2444_v12 = vld [vmem:[#allocation4 + $0x60] sm:$0xff]  ;;  %v2461_v15 = vld [vmem:[#allocation4 + $0xe8] sm:$0xff]  ;;  %v2443_v19 = vld [vmem:[#allocation4 + $0x58] sm:$0xff]  ;;  %s366_s24 = scalar_lea.vmem %s2923_s8, %s1883_s21 }
  0x1f   : > { %460 = vmatpush.bf16.msra.mxu0 %v2446_v4  ;;  %v2436_v13 = vld [vmem:[#allocation4 + $0x20] sm:$0xff]  ;;  %v367_v16 = vld [vmem:[%s362_s14] ss:$2 sm:$0xff]  ;;  %v1884_v17 = vld [vmem:[%s362_s14 + $0x1] ss:$2 sm:$0xff] }
  0x20   : > { %521 = vmatpush.bf16.msra.mxu1 %v2438_v5  ;;  %v2452_v14 = vld [vmem:[#allocation4 + $0xa0] sm:$0xff]  ;;  %v2882_v18 = vmax.f32 %v367_v16, %v1884_v17  ;;  %v2435_v20 = vld [vmem:[#allocation4 + $0x18] sm:$0xff]  ;;  %v2442_v23 = vld [vmem:[#allocation4 + $0x50] sm:$0xff] }
  0x21   : > { %601 = vmatpush.bf16.msra.mxu2 %v2454_v6  ;;  %v2451_v21 = vld [vmem:[#allocation4 + $0x98] sm:$0xff]  ;;  %v2460_v22 = vld [vmem:[#allocation4 + $0xe0] sm:$0xff]  ;;  %v2434_v24 = vld [vmem:[#allocation4 + $0x10] sm:$0xff] }
  0x22   : > { %682 = vmatpush.bf16.msra.mxu3 %v2462_v11  ;;  %373 = vst [vmem:[#allocation2 + $0x8] sm:$0xff] %v2882_v18  ;;  %v2450_v25 = vld [vmem:[#allocation4 + $0x90] sm:$0xff]  ;;  %v2459_v26 = vld [vmem:[#allocation4 + $0xd8] sm:$0xff]  ;;  %v2441_v27 = vld [vmem:[#allocation4 + $0x48] sm:$0xff]  ;;  %v2887_v40 = vpack.c.bf16 %v2882_v18, %v2882_v18 }
  0x23   : > { %461 = vmatpush.bf16.msra.mxu0 %v2445_v8  ;;  %v2433_v28 = vld [vmem:[#allocation4 + $0x8] sm:$0xff]  ;;  %v2458_v30 = vld [vmem:[#allocation4 + $0xd0] sm:$0xff]  ;;  %v2440_v31 = vld [vmem:[#allocation4 + $0x40] sm:$0xff] }
  0x24   : > { %522 = vmatpush.bf16.msra.mxu1 %v2437_v9  ;;  %v2449_v29 = vld [vmem:[#allocation4 + $0x88] sm:$0xff]  ;;  %v2432_v32 = vld [vmem:[#allocation4] sm:$0xff]  ;;  %v2471_v34 = vld [vmem:[#allocation4 + $0x138] sm:$0xff] }
  0x25   : > { %602 = vmatpush.bf16.msra.mxu2 %v2453_v10  ;;  %v2448_v33 = vld [vmem:[#allocation4 + $0x80] sm:$0xff]  ;;  %v2479_v37 = vld [vmem:[#allocation4 + $0x178] sm:$0xff]  ;;  %v2457_v39 = vld [vmem:[#allocation4 + $0xc8] sm:$0xff] }
  0x26   : > { %683 = vmatpush.bf16.msra.mxu3 %v2461_v15  ;;  %v2487_v38 = vld [vmem:[#allocation4 + $0x1b8] sm:$0xff]  ;;  %v2470_v43 = vld [vmem:[#allocation4 + $0x130] sm:$0xff]  ;;  %v2456_v46 = vld [vmem:[#allocation4 + $0xc0] sm:$0xff] }
  0x27   : > { %462 = vmatpush.bf16.msra.mxu0 %v2444_v12  ;;  %v2478_v44 = vld [vmem:[#allocation4 + $0x170] sm:$0xff]  ;;  %v2503_v48 = vld [vmem:[#allocation8 + $0x78] sm:$0xff]  ;;  %v2469_v49 = vld [vmem:[#allocation4 + $0x128] sm:$0xff] }
  0x28   : > { %523 = vmatpush.bf16.msra.mxu1 %v2436_v13  ;;  %v2486_v45 = vld [vmem:[#allocation4 + $0x1b0] sm:$0xff]  ;;  %v2477_v50 = vld [vmem:[#allocation4 + $0x168] sm:$0xff]  ;;  %v2468_v54 = vld [vmem:[#allocation4 + $0x120] sm:$0xff] }
  0x29   : > { %603 = vmatpush.bf16.msra.mxu2 %v2452_v14  ;;  %v533_v35 = vld [vmem:[#allocation2 + $0x9] sm:$0xff]  ;;  %v2485_v51 = vld [vmem:[#allocation4 + $0x1a8] sm:$0xff]  ;;  %v2466_v60 = vld [vmem:[#allocation4 + $0x110] sm:$0xff] }
  0x2a   : > { %684 = vmatpush.bf16.msra.mxu3 %v2460_v22  ;;  %v374_v36 = vld [vmem:[#allocation2 + $0x7] sm:$0xff]  ;;  %v534_v41 = vpack.c.bf16 %v533_v35, %v533_v35  ;;  %v2476_v55 = vld [vmem:[#allocation4 + $0x160] sm:$0xff]  ;;  %v2465_v63 = vld [vmem:[#allocation4 + $0x108] sm:$0xff] }
  0x2b   : > { %463 = vmatpush.bf16.msra.mxu0 %v2443_v19  ;;  %v375_v42 = vpack.c.bf16 %v374_v36, %v374_v36  ;;  %v614_v47 = vld [vmem:[#allocation2 + $0x5] sm:$0xff]  ;;  %v2484_v56 = vld [vmem:[#allocation4 + $0x1a0] sm:$0xff]  ;;  %v2473_v0 = vld [vmem:[#allocation4 + $0x148] sm:$0xff] }
  0x2c   : > { %524 = vmatpush.bf16.msra.mxu1 %v2435_v20  ;;  %v615_v52 = vpack.c.bf16 %v614_v47, %v614_v47  ;;  %v2502_v53 = vld [vmem:[#allocation8 + $0x70] sm:$0xff]  ;;  %v2481_v1 = vld [vmem:[#allocation4 + $0x188] sm:$0xff]  ;;  %v2464_v2 = vld [vmem:[#allocation4 + $0x100] sm:$0xff] }
  0x2d   : > { %604 = vmatpush.bf16.msra.mxu2 %v2451_v21  ;;  %v2467_v57 = vld [vmem:[#allocation4 + $0x118] sm:$0xff]  ;;  %v2474_v61 = vld [vmem:[#allocation4 + $0x150] sm:$0xff]  ;;  %v2472_v3 = vld [vmem:[#allocation4 + $0x140] sm:$0xff] }
  0x2e   : > { %685 = vmatpush.bf16.msra.mxu3 %v2459_v26  ;;  %v2475_v58 = vld [vmem:[#allocation4 + $0x158] sm:$0xff]  ;;  %v2482_v62 = vld [vmem:[#allocation4 + $0x190] sm:$0xff]  ;;  %v2480_v4 = vld [vmem:[#allocation4 + $0x180] sm:$0xff] }
  0x2f   : > { %464 = vmatpush.bf16.msra.mxu0 %v2442_v23  ;;  %v2483_v59 = vld [vmem:[#allocation4 + $0x198] sm:$0xff]  ;;  %v2501_v9 = vld [vmem:[#allocation8 + $0x68] sm:$0xff]  ;;  %v2500_v13 = vld [vmem:[#allocation8 + $0x60] sm:$0xff] }
  0x30   : > { %525 = vmatpush.bf16.msra.mxu1 %v2434_v24  ;;  %v774_v5 = vld [vmem:[#allocation2 + $0xb] sm:$0xff]  ;;  %v2494_v8 = vld [vmem:[#allocation8 + $0x30] sm:$0xff]  ;;  %v2493_v10 = vld [vmem:[#allocation8 + $0x28] sm:$0xff] }
  0x31   : > { %605 = vmatpush.bf16.msra.mxu2 %v2450_v25  ;;  %v2495_v6 = vld [vmem:[#allocation8 + $0x38] sm:$0xff]  ;;  %v775_v7 = vpack.c.bf16 %v774_v5, %v774_v5  ;;  %v2510_v12 = vld [vmem:[#allocation8 + $0xb0] sm:$0xff]  ;;  %v2492_v14 = vld [vmem:[#allocation8 + $0x20] sm:$0xff] }
  0x32   : > { %686 = vmatpush.bf16.msra.mxu3 %v2458_v30  ;;  %v2511_v11 = vld [vmem:[#allocation8 + $0xb8] sm:$0xff]  ;;  %v2518_v19 = vld [vmem:[#allocation8 + $0xf0] sm:$0xff]  ;;  %v2509_v20 = vld [vmem:[#allocation8 + $0xa8] sm:$0xff] }
  0x33   : > { %465 = vmatpush.bf16.msra.mxu0 %v2441_v27  ;;  %v2519_v15 = vld [vmem:[#allocation8 + $0xf8] sm:$0xff]  ;;  %v2498_v21 = vld [vmem:[#allocation8 + $0x50] sm:$0xff]  ;;  %v2517_v23 = vld [vmem:[#allocation8 + $0xe8] sm:$0xff] }
  0x34   : > { %526 = vmatpush.bf16.msra.mxu1 %v2433_v28  ;;  %v2499_v16 = vld [vmem:[#allocation8 + $0x58] sm:$0xff]  ;;  %v2490_v22 = vld [vmem:[#allocation8 + $0x10] sm:$0xff]  ;;  %v2508_v24 = vld [vmem:[#allocation8 + $0xa0] sm:$0xff] }
  0x35   : > { %606 = vmatpush.bf16.msra.mxu2 %v2449_v29  ;;  %v2491_v17 = vld [vmem:[#allocation8 + $0x18] sm:$0xff]  ;;  %v2497_v25 = vld [vmem:[#allocation8 + $0x48] sm:$0xff]  ;;  %v2516_v27 = vld [vmem:[#allocation8 + $0xe0] sm:$0xff] }
  0x36   : > { %687 = vmatpush.bf16.msra.mxu3 %v2457_v39  ;;  %v2489_v26 = vld [vmem:[#allocation8 + $0x8] sm:$0xff]  ;;  %v2507_v28 = vld [vmem:[#allocation8 + $0x98] sm:$0xff]  ;;  %v2496_v29 = vld [vmem:[#allocation8 + $0x40] sm:$0xff] }
  0x37   : > { %466 = vmatpush.bf16.msra.mxu0 %v2440_v31  ;;  %v2488_v30 = vld [vmem:[#allocation8] sm:$0xff]  ;;  %v2515_v31 = vld [vmem:[#allocation8 + $0xd8] sm:$0xff]  ;;  %v2505_v35 = vld [vmem:[#allocation8 + $0x88] sm:$0xff] }
  0x38   : > { %527 = vmatpush.bf16.msra.mxu1 %v2432_v32  ;;  %v2527_v32 = vld [vmem:[#allocation8 + $0x138] sm:$0xff]  ;;  %v2514_v36 = vld [vmem:[#allocation8 + $0xd0] sm:$0xff]  ;;  %v2512_v47 = vld [vmem:[#allocation8 + $0xc0] sm:$0xff] }
  0x39   : > { %607 = vmatpush.bf16.msra.mxu2 %v2448_v33  ;;  %v2535_v33 = vld [vmem:[#allocation8 + $0x178] sm:$0xff] }
  0x3a   : > { %467 = vmatmul.bf16.vlgmr.msra.gmra.mxu0 %v2887_v40  ;;  %688 = vmatpush.bf16.msra.mxu3 %v2456_v46 }
  0x3b   : > { %760 = vmatpush.bf16.msrb.mxu0 %v2471_v34  ;;  %528 = vmatmul.bf16.vlgmr.msra.gmra.mxu1 %v375_v42  ;;  %v2506_v34 = vld [vmem:[#allocation8 + $0x90] sm:$0xff]  ;;  %v2543_v42 = vld [vmem:[#allocation8 + $0x1b8] sm:$0xff] }
  0x3c   : > { %841 = vmatpush.bf16.msrb.mxu1 %v2479_v37  ;;  %608 = vmatmul.bf16.vlgmr.msra.gmra.mxu2 %v534_v41  ;;  %v2526_v37 = vld [vmem:[#allocation8 + $0x130] sm:$0xff] }
  0x3d   : > { %920 = vmatpush.bf16.msrb.mxu2 %v2487_v38  ;;  %689 = vmatmul.bf16.vlgmr.msra.gmra.mxu3 %v615_v52  ;;  %v2534_v38 = vld [vmem:[#allocation8 + $0x170] sm:$0xff]  ;;  %v2551_v52 = vld [vmem:[#allocation8 + $0x1f8] sm:$0xff] }
  0x3e   : > { %1034 = vmatpush.bf16.msrb.mxu3 %v2503_v48  ;;  %v2524_v48 = vld [vmem:[#allocation8 + $0x120] sm:$0xff] }
  0x3f   : > { %761 = vmatpush.bf16.msrb.mxu0 %v2470_v43  ;;  %v2513_v43 = vld [vmem:[#allocation8 + $0xc8] sm:$0xff] }
  0x40   : > { %842 = vmatpush.bf16.msrb.mxu1 %v2478_v44  ;;  %v2525_v44 = vld [vmem:[#allocation8 + $0x128] sm:$0xff] }
  0x41   : > { %921 = vmatpush.bf16.msrb.mxu2 %v2486_v45  ;;  %v2533_v45 = vld [vmem:[#allocation8 + $0x168] sm:$0xff] }
  0x42   : > { %1035 = vmatpush.bf16.msrb.mxu3 %v2502_v53 }
  0x43   : > { %762 = vmatpush.bf16.msrb.mxu0 %v2469_v49  ;;  %v2542_v49 = vld [vmem:[#allocation8 + $0x1b0] sm:$0xff] }
  0x44   : > { %843 = vmatpush.bf16.msrb.mxu1 %v2477_v50 }
  0x45   : > { %922 = vmatpush.bf16.msrb.mxu2 %v2485_v51  ;;  %v2532_v51 = vld [vmem:[#allocation8 + $0x160] sm:$0xff] }
  0x46   : > { %1036 = vmatpush.bf16.msrb.mxu3 %v2501_v9 }
  0x47   : > { %763 = vmatpush.bf16.msrb.mxu0 %v2468_v54  ;;  %v2523_v54 = vld [vmem:[#allocation8 + $0x118] sm:$0xff] }
  0x48   : > { %844 = vmatpush.bf16.msrb.mxu1 %v2476_v55  ;;  %v2531_v55 = vld [vmem:[#allocation8 + $0x158] sm:$0xff] }
  0x49   : > { %923 = vmatpush.bf16.msrb.mxu2 %v2484_v56  ;;  %v2541_v56 = vld [vmem:[#allocation8 + $0x1a8] sm:$0xff] }
  0x4a   : > { %1037 = vmatpush.bf16.msrb.mxu3 %v2500_v13 }
  0x4b   : > { %764 = vmatpush.bf16.msrb.mxu0 %v2467_v57  ;;  %v2550_v57 = vld [vmem:[#allocation8 + $0x1f0] sm:$0xff] }
  0x4c   : > { %845 = vmatpush.bf16.msrb.mxu1 %v2475_v58 }
  0x4d   : > { %924 = vmatpush.bf16.msrb.mxu2 %v2483_v59  ;;  %v2540_v59 = vld [vmem:[#allocation8 + $0x1a0] sm:$0xff] }
  0x4e   : > { %1038 = vmatpush.bf16.msrb.mxu3 %v2499_v16 }
  0x4f   : > { %765 = vmatpush.bf16.msrb.mxu0 %v2466_v60 }
  0x50   : > { %846 = vmatpush.bf16.msrb.mxu1 %v2474_v61  ;;  %v2522_v61 = vld [vmem:[#allocation8 + $0x110] sm:$0xff] }
  0x51   : > { %925 = vmatpush.bf16.msrb.mxu2 %v2482_v62  ;;  %v2530_v62 = vld [vmem:[#allocation8 + $0x150] sm:$0xff] }
  0x52   : > { %1039 = vmatpush.bf16.msrb.mxu3 %v2498_v21  ;;  %v2620_v21 = vld [vmem:[%s2917_s2] ss:$0 sm:$0xff] }
  0x53   : > { %766 = vmatpush.bf16.msrb.mxu0 %v2465_v63  ;;  %v2549_v63 = vld [vmem:[#allocation8 + $0x1e8] sm:$0xff] }
  0x54   : > { %847 = vmatpush.bf16.msrb.mxu1 %v2473_v0  ;;  %v2521_v0 = vld [vmem:[#allocation8 + $0x108] sm:$0xff] }
  0x55   : > { %926 = vmatpush.bf16.msrb.mxu2 %v2481_v1  ;;  %v2529_v1 = vld [vmem:[#allocation8 + $0x148] sm:$0xff] }
  0x56   : > { %1040 = vmatpush.bf16.msrb.mxu3 %v2497_v25  ;;  %v2621_v25 = vld [vmem:[#allocation6] ss:$0 sm:$0xff] }
  0x57   : > { %767 = vmatpush.bf16.msrb.mxu0 %v2464_v2  ;;  %v2548_v2 = vld [vmem:[#allocation8 + $0x1e0] sm:$0xff] }
  0x58   : > { %848 = vmatpush.bf16.msrb.mxu1 %v2472_v3  ;;  %v2539_v3 = vld [vmem:[#allocation8 + $0x198] sm:$0xff] }
  0x59   : > { %927 = vmatpush.bf16.msrb.mxu2 %v2480_v4 }
  0x5a   : > { %768 = vmatmul.bf16.vlgmr.msrb.gmra.mxu0 %v2887_v40  ;;  %1041 = vmatpush.bf16.msrb.mxu3 %v2496_v29 }
  0x5b   : > { %1095 = vmatpush.bf16.msra.mxu0 %v2495_v6  ;;  %849 = vmatmul.bf16.vlgmr.msrb.gmra.mxu1 %v775_v7  ;;  %v2538_v6 = vld [vmem:[#allocation8 + $0x190] sm:$0xff]  ;;  %v2520_v7 = vld [vmem:[#allocation8 + $0x100] sm:$0xff] }
  0x5c   : > { %928 = vmatmul.bf16.vlgmr.msrb.gmra.mxu2 %v2887_v40  ;;  %1175 = vmatpush.bf16.msra.mxu1 %v2511_v11  ;;  %v2504_v40 = vld [vmem:[#allocation8 + $0x80] sm:$0xff]  ;;  %v2546_v11 = vld [vmem:[#allocation8 + $0x1d0] sm:$0xff] }
  0x5d   : > { %1256 = vmatpush.bf16.msra.mxu2 %v2519_v15 }
  0x5e   : > { %1337 = vmatpush.bf16.msra.mxu3 %v2527_v32 }
  0x5f   : > { %1096 = vmatpush.bf16.msra.mxu0 %v2494_v8  ;;  %v2528_v8 = vld [vmem:[#allocation8 + $0x140] sm:$0xff] }
  0x60   : > { %1176 = vmatpush.bf16.msra.mxu1 %v2510_v12  ;;  %v2537_v12 = vld [vmem:[#allocation8 + $0x188] sm:$0xff] }
  0x61   : > { %1257 = vmatpush.bf16.msra.mxu2 %v2518_v19  ;;  %v2536_v19 = vld [vmem:[#allocation8 + $0x180] sm:$0xff] }
  0x62   : > { %1338 = vmatpush.bf16.msra.mxu3 %v2526_v37 }
  0x63   : > { %1097 = vmatpush.bf16.msra.mxu0 %v2493_v10  ;;  %v2547_v10 = vld [vmem:[#allocation8 + $0x1d8] sm:$0xff] }
  0x64   : > { %1177 = vmatpush.bf16.msra.mxu1 %v2509_v20 }
  0x65   : > { %1258 = vmatpush.bf16.msra.mxu2 %v2517_v23 }
  0x66   : > { %1339 = vmatpush.bf16.msra.mxu3 %v2525_v44 }
  0x67   : > { %1098 = vmatpush.bf16.msra.mxu0 %v2492_v14 }
  0x68   : > { %1178 = vmatpush.bf16.msra.mxu1 %v2508_v24 }
  0x69   : > { %1259 = vmatpush.bf16.msra.mxu2 %v2516_v27 }
  0x6a   : > { %1340 = vmatpush.bf16.msra.mxu3 %v2524_v48  ;;  %v2556_v48 = vld [vmem:[#allocation8 + $0x220] sm:$0xff] }
  0x6b   : > { %1099 = vmatpush.bf16.msra.mxu0 %v2491_v17  ;;  %v2545_v17 = vld [vmem:[#allocation8 + $0x1c8] sm:$0xff] }
  0x6c   : > { %1179 = vmatpush.bf16.msra.mxu1 %v2507_v28 }
  0x6d   : > { %1260 = vmatpush.bf16.msra.mxu2 %v2515_v31 }
  0x6e   : > { %1341 = vmatpush.bf16.msra.mxu3 %v2523_v54 }
  0x6f   : > { %1100 = vmatpush.bf16.msra.mxu0 %v2490_v22  ;;  %v2544_v22 = vld [vmem:[#allocation8 + $0x1c0] sm:$0xff] }
  0x70   : > { %1180 = vmatpush.bf16.msra.mxu1 %v2506_v34  ;;  %v2559_v34 = vld [vmem:[#allocation8 + $0x238] sm:$0xff] }
  0x71   : > { %1261 = vmatpush.bf16.msra.mxu2 %v2514_v36 }
  0x72   : > { %1342 = vmatpush.bf16.msra.mxu3 %v2522_v61  ;;  %v2560_v61 = vld [vmem:[#allocation8 + $0x240] sm:$0xff] }
  0x73   : > { %1101 = vmatpush.bf16.msra.mxu0 %v2489_v26 }
  0x74   : > { %1181 = vmatpush.bf16.msra.mxu1 %v2505_v35 }
  0x75   : > { %1262 = vmatpush.bf16.msra.mxu2 %v2513_v43  ;;  %v2566_v43 = vld [vmem:[#allocation8 + $0x270] sm:$0xff] }
  0x76   : > { %1343 = vmatpush.bf16.msra.mxu3 %v2521_v0 }
  0x77   : > { %1102 = vmatpush.bf16.msra.mxu0 %v2488_v30 }
  0x78   : > { %1182 = vmatpush.bf16.msra.mxu1 %v2504_v40 }
  0x79   : > { %1263 = vmatpush.bf16.msra.mxu2 %v2512_v47 }
  0x7a   : > { %1344 = vmatpush.bf16.msra.mxu3 %v2520_v7 }
  0x7b   : > { %1418 = vmatpush.bf16.msrb.mxu0 %v2535_v33 }
  0x7c   : > { %1499 = vmatpush.bf16.msrb.mxu1 %v2543_v42  ;;  %v2558_v42 = vld [vmem:[#allocation8 + $0x230] sm:$0xff] }
  0x7d   : > { %1578 = vmatpush.bf16.msrb.mxu2 %v2551_v52  ;;  %v2555_v52 = vld [vmem:[#allocation8 + $0x218] sm:$0xff] }
  0x7f   : > { %1419 = vmatpush.bf16.msrb.mxu0 %v2534_v38 }
  0x80   : > { %1500 = vmatpush.bf16.msrb.mxu1 %v2542_v49  ;;  %v2564_v49 = vld [vmem:[#allocation8 + $0x260] sm:$0xff] }
  0x81   : > { %1579 = vmatpush.bf16.msrb.mxu2 %v2550_v57  ;;  %v2562_v57 = vld [vmem:[#allocation8 + $0x250] sm:$0xff] }
  0x83   : > { %1420 = vmatpush.bf16.msrb.mxu0 %v2533_v45  ;;  %v2557_v45 = vld [vmem:[#allocation8 + $0x228] sm:$0xff] }
  0x84   : > { %1501 = vmatpush.bf16.msrb.mxu1 %v2541_v56  ;;  %v2554_v56 = vld [vmem:[#allocation8 + $0x210] sm:$0xff] }
  0x85   : > { %1580 = vmatpush.bf16.msrb.mxu2 %v2549_v63 }
  0x87   : > { %1421 = vmatpush.bf16.msrb.mxu0 %v2532_v51 }
  0x88   : > { %1502 = vmatpush.bf16.msrb.mxu1 %v2540_v59  ;;  %v2561_v59 = vld [vmem:[#allocation8 + $0x248] sm:$0xff] }
  0x89   : > { %1581 = vmatpush.bf16.msrb.mxu2 %v2548_v2 }
  0x8b   : > { %1422 = vmatpush.bf16.msrb.mxu0 %v2531_v55  ;;  %v2563_v55 = vld [vmem:[#allocation8 + $0x258] sm:$0xff] }
  0x8c   : > { %1503 = vmatpush.bf16.msrb.mxu1 %v2539_v3 }
  0x8d   : > { %1582 = vmatpush.bf16.msrb.mxu2 %v2547_v10 }
  0x8f   : > { %1423 = vmatpush.bf16.msrb.mxu0 %v2530_v62 }
  0x90   : > { %1504 = vmatpush.bf16.msrb.mxu1 %v2538_v6 }
  0x91   : > { %1583 = vmatpush.bf16.msrb.mxu2 %v2546_v11 }
  0x93   : > { %1424 = vmatpush.bf16.msrb.mxu0 %v2529_v1 }
  0x94   : > { %1505 = vmatpush.bf16.msrb.mxu1 %v2537_v12 }
  0x95   : > { %1584 = vmatpush.bf16.msrb.mxu2 %v2545_v17 }
  0x97   : > { %1425 = vmatpush.bf16.msrb.mxu0 %v2528_v8 }
  0x98   : > { %1506 = vmatpush.bf16.msrb.mxu1 %v2536_v19 }
  0x99   : > { %1585 = vmatpush.bf16.msrb.mxu2 %v2544_v22 }
  0xb7   : > { %v468_v39 = vpop.f32.mrf.mxu0 }
  0xb8   : > { %v529_v41 = vpop.f32.mrf.mxu1 }
  0xb9   : > { %v530_v4 = vadd.f32 %v529_v41, %v468_v39  ;;  %v2567_v41 = vld [vmem:[#allocation8 + $0x278] sm:$0xff] }
  0xbf   : > { %v609_v46 = vpop.f32.mrf.mxu2  ;;  %v470_v50 = vpop.f32.mrf.mxu0 }
  0xc0   : > { %v531_v53 = vpop.f32.mrf.mxu1  ;;  %v690_v58 = vpop.f32.mrf.mxu3  ;;  %v613_v9 = vadd.f32 %v609_v46, %v530_v4  ;;  %v2565_v46 = vld [vmem:[#allocation8 + $0x268] sm:$0xff] }
  0xc2   : > { %v694_v13 = vadd.f32 %v690_v58, %v613_v9  ;;  %v2553_v58 = vld [vmem:[#allocation8 + $0x208] sm:$0xff] }
  0xc7   : > { %v611_v60 = vpop.f32.mrf.mxu2 }
  0xc8   : > { %v692_v5 = vpop.f32.mrf.mxu3  ;;  %v2552_v60 = vld [vmem:[#allocation8 + $0x200] sm:$0xff] }
  0xd7   : > { %v769_v14 = vpop.f32.mrf.mxu0 }
  0xd8   : > { %v850_v15 = vpop.f32.mrf.mxu1  ;;  %v773_v16 = vadd.f32 %v769_v14, %v694_v13 }
  0xda   : > { %v854_v20 = vadd.f32 %v850_v15, %v773_v16 }
  0xdf   : > { %v929_v23 = vpop.f32.mrf.mxu2  ;;  %v771_v26 = vpop.f32.mrf.mxu0 }
  0xe0   : > { %v933_v24 = vadd.f32 %v929_v23, %v854_v20  ;;  %v852_v27 = vpop.f32.mrf.mxu1 }
  0xe2   : > { %v938_v28 = vmul.f32 %v2620_v21, %v933_v24 }
  0xe4   : > { %v943_v29 = vadd.f32 %v2621_v25, %v938_v28 }
  0xe6   : > { %v944_v30 = vmul.f32 0.01, %v943_v29 }
  0xe7   : > { %v931_v31 = vpop.f32.mrf.mxu2 }
  0xe8   : > { %v2895_v32 = vmax.f32 %v943_v29, %v944_v30  ;;  %v2623_v29 = vld [vmem:[%s2920_s5] ss:$0 sm:$0xff] }
  0xe9   : > { %v2624_v31 = vld [vmem:[%s2921_s6] ss:$0 sm:$0xff] }
  0xea   : > { %948 = vst [vmem:[#allocation3 + $0x8] sm:$0xff] %v2895_v32  ;;  %v1109_v33 = vpack.c.bf16 %v2895_v32, %v2895_v32 }
  0xec   : > { %1183 = vmatmul.bf16.vlgmr.msra.gmra.mxu1 %v1109_v33 }
  0xf1   : > { %v967_v35 = vld [vmem:[#allocation3 + $0x6] sm:$0xff]  ;;  %v1673_v63 = vld [vmem:[#allocation3 + $0xe] sm:$0xff] }
  0xf2   : > { %v949_v36 = vld [vmem:[#allocation3 + $0x4] sm:$0xff]  ;;  %v968_v38 = vpack.c.bf16 %v967_v35, %v967_v35  ;;  %v1270_v50 = vld [vmem:[#allocation3 + $0xc] sm:$0xff]  ;;  %v1674_v1 = vpack.c.bf16 %v1673_v63, %v1673_v63  ;;  %v2622_v35 = vld [vmem:[#allocation9] ss:$0 sm:$0xff] }
  0xf3   : > { %v1189_v37 = vld [vmem:[#allocation3 + $0xa] sm:$0xff]  ;;  %v950_v39 = vpack.c.bf16 %v949_v36, %v949_v36  ;;  %v1351_v51 = vld [vmem:[#allocation3 + $0x2] sm:$0xff]  ;;  %v1271_v53 = vpack.c.bf16 %v1270_v50, %v1270_v50 }
  0xf4   : > { %v1190_v40 = vpack.c.bf16 %v1189_v37, %v1189_v37  ;;  %1042 = vmatmul.bf16.vlgmr.msrb.gmra.mxu3 %v968_v38  ;;  %v1432_v44 = vld [vmem:[#allocation3 + $0x5] sm:$0xff]  ;;  %v1352_v54 = vpack.c.bf16 %v1351_v51, %v1351_v51 }
  0xf5   : > { %1103 = vmatmul.bf16.vlgmr.msra.gmra.mxu0 %v950_v39  ;;  %1659 = vmatpush.bf16.msrb.mxu3 %v2559_v34  ;;  %v1433_v47 = vpack.c.bf16 %v1432_v44, %v1432_v44  ;;  %v1592_v62 = vld [vmem:[#allocation3 + $0xb] sm:$0xff]  ;;  %v1770_v39 = vmul.f32 %v2622_v35, %v2895_v32 }
  0xf6   : > { %1264 = vmatmul.bf16.vlgmr.msra.gmra.mxu2 %v1190_v40  ;;  %1740 = vmatpush.bf16.msra.mxu0 %v2567_v41  ;;  %v1593_v0 = vpack.c.bf16 %v1592_v62, %v1592_v62 }
  0xf9   : > { %1660 = vmatpush.bf16.msrb.mxu3 %v2558_v42 }
  0xfa   : > { %1741 = vmatpush.bf16.msra.mxu0 %v2566_v43 }
  0xfc   : > { %1507 = vmatmul.bf16.vlgmr.msrb.gmra.mxu1 %v1433_v47 }
  0xfd   : > { %1661 = vmatpush.bf16.msrb.mxu3 %v2557_v45 }
  0xfe   : > { %1742 = vmatpush.bf16.msra.mxu0 %v2565_v46 }
 0x101   : > { %1662 = vmatpush.bf16.msrb.mxu3 %v2556_v48 }
 0x102   : > { %1743 = vmatpush.bf16.msra.mxu0 %v2564_v49 }
 0x104   : > { %1345 = vmatmul.bf16.vlgmr.msra.gmra.mxu3 %v1271_v53 }
 0x105   : > { %1426 = vmatmul.bf16.vlgmr.msrb.gmra.mxu0 %v1352_v54  ;;  %1663 = vmatpush.bf16.msrb.mxu3 %v2555_v52 }
 0x106   : > { %1586 = vmatmul.bf16.vlgmr.msrb.gmra.mxu2 %v1109_v33  ;;  %1744 = vmatpush.bf16.msra.mxu0 %v2563_v55 }
 0x109   : > { %1664 = vmatpush.bf16.msrb.mxu3 %v2554_v56 }
 0x10a   : > { %1745 = vmatpush.bf16.msra.mxu0 %v2562_v57 }
 0x10d   : > { %1665 = vmatpush.bf16.msrb.mxu3 %v2553_v58 }
 0x10e   : > { %1746 = vmatpush.bf16.msra.mxu0 %v2561_v59 }
 0x111   : > { %1666 = vmatpush.bf16.msrb.mxu3 %v2552_v60 }
 0x112   : > { %1747 = vmatpush.bf16.msra.mxu0 %v2560_v61 }
 0x114   : > { %1667 = vmatmul.bf16.vlgmr.msrb.gmra.mxu3 %v1593_v0 }
 0x115   : > { %1748 = vmatmul.bf16.vlgmr.msra.gmra.mxu0 %v1674_v1 }
 0x169   : > { %v1184_v2 = vpop.f32.mrf.mxu1 }
 0x171   : > { %v1186_v4 = vpop.f32.mrf.mxu1 }
 0x172   : > { %v1104_v3 = vpop.f32.mrf.mxu0 }
 0x177   : > { %v1043_v5 = vpop.f32.mrf.mxu3 }
 0x178   : > { %v1105_v10 = vadd.f32 %v1104_v3, %v1043_v5 }
 0x179   : > { %v1265_v6 = vpop.f32.mrf.mxu2  ;;  %v1508_v8 = vpop.f32.mrf.mxu1 }
 0x17a   : > { %v1106_v7 = vpop.f32.mrf.mxu0  ;;  %v1188_v14 = vadd.f32 %v1184_v2, %v1105_v10 }
 0x17c   : > { %v1269_v16 = vadd.f32 %v1265_v6, %v1188_v14 }
 0x17f   : > { %v1045_v9 = vpop.f32.mrf.mxu3 }
 0x181   : > { %v1267_v11 = vpop.f32.mrf.mxu2  ;;  %v1510_v13 = vpop.f32.mrf.mxu1 }
 0x182   : > { %v1427_v12 = vpop.f32.mrf.mxu0 }
 0x187   : > { %v1346_v15 = vpop.f32.mrf.mxu3 }
 0x188   : > { %v1350_v20 = vadd.f32 %v1346_v15, %v1269_v16 }
 0x189   : > { %v1587_v17 = vpop.f32.mrf.mxu2 }
 0x18a   : > { %v1429_v19 = vpop.f32.mrf.mxu0  ;;  %v1431_v21 = vadd.f32 %v1427_v12, %v1350_v20 }
 0x18c   : > { %v1512_v24 = vadd.f32 %v1508_v8, %v1431_v21 }
 0x18e   : > { %v1591_v26 = vadd.f32 %v1587_v17, %v1512_v24 }
 0x18f   : > { %v1348_v22 = vpop.f32.mrf.mxu3 }
 0x191   : > { %v1589_v23 = vpop.f32.mrf.mxu2 }
 0x192   : > { %v1749_v25 = vpop.f32.mrf.mxu0 }
 0x197   : > { %v1668_v27 = vpop.f32.mrf.mxu3 }
 0x198   : > { %v1672_v28 = vadd.f32 %v1668_v27, %v1591_v26 }
 0x19a   : > { %v1753_v30 = vadd.f32 %v1749_v25, %v1672_v28  ;;  %v1751_v33 = vpop.f32.mrf.mxu0 }
 0x19c   : > { %v1758_v34 = vmul.f32 %v2623_v29, %v1753_v30 }
 0x19e   : > { %v1763_v36 = vadd.f32 %v2624_v31, %v1758_v34 }
 0x19f   : > { %v1670_v37 = vpop.f32.mrf.mxu3 }
 0x1a0   : > { %v1764_v38 = vmul.f32 0.01, %v1763_v36 }
 0x1a2   : > { %v1765_v40 = vmax.f32 %v1763_v36, %v1764_v38 }
 0x1a4   : > { %v1771_v41 = vadd.f32 %v1770_v39, %v1765_v40 }
 0x1a6   : > { %v1772_v42 = vadd.f32 %v1771_v41, %v2882_v18 }
 0x1a8   : > { %1773 = vst [vmem:[%s366_s24] sm:$0xff] %v1772_v42 }
 0x1a9 PF: > { %s21_s27 = sadd.s32 1, %s2763_s27  }
 0x1aa   : > { %p18_p7 = scmp.ge.s32.totalorder %s21_s27, 4  }
 0x1ac   :  { %20 = sbr.rel (!%p18_p7) target bundleno = 3 (0x3), region = 115 }
 0x1b1   :  { %1793 = vsyncpa [#allocation5], 1 }
 0x1b2   :  { %1795 = vsyncpa [#allocation5 + $0x1], 1 }
 0x1b3   :  { %1796 = vsyncpa [#allocation7], 1 }
 0x1b4   :  { %1797 = vsyncpa [#allocation10], 1 }

// kernel: inception_net_forward.5
= control target key start
LH: loop header
LB: loop body
LE: loop exit
PB: predicated region body
PF: predicated region fallthrough
CT: control target
= control target key end

     0   :  { %15 = vsyncpa [#allocation5], 0  ;;  %s3073_s0 = inlined_call_operand.vmem [shape: f32[2,8,128], index: 0, kind: input, shape index: {}]   ;;  %s3074_s1 = inlined_call_operand.hbm [shape: bf16[7,128,128], index: 1, kind: input, shape index: {}]   ;;  %s3075_s2 = inlined_call_operand.vmem [shape: f32[1,128], index: 2, kind: input, shape index: {}]   ;;  %s3076_s3 = inlined_call_operand.vmem [shape: f32[1,128], index: 3, kind: input, shape index: {}]   ;;  %s3077_s4 = inlined_call_operand.hbm [shape: bf16[10,128,128], index: 4, kind: input, shape index: {}]   ;;  %s3078_s5 = inlined_call_operand.vmem [shape: f32[1,128], index: 5, kind: input, shape index: {}]   ;;  %s3079_s6 = inlined_call_operand.vmem [shape: f32[1,128], index: 6, kind: input, shape index: {}]   ;;  %s3080_s7 = inlined_call_operand.vmem [shape: f32[1,128], index: 7, kind: input, shape index: {}]   ;;  %s3081_s8 = inlined_call_operand.vmem [shape: f32[128,8], index: 8, kind: input, shape index: {}]   ;;  %s3082_s9 = inlined_call_operand.vmem [shape: f32[1,8], index: 9, kind: input, shape index: {}]   ;;  %s3083_s10 = inlined_call_operand.hbm [shape: f32[2,1,8], index: 10, kind: output, shape index: {}]  }
   0x1   :  { %16 = vsyncpa [#allocation8], 0 }
   0x2   :  { %17 = vsyncpa [#allocation6], 0 }
   0x3   :  { %19 = vsyncpa [#allocation6 + $0x1], 0  ;;  %s2884_s13 = smov 0   ;;  %s2886_s14 = smov 0  }
   0x4   :  { %s2888_s15 = smov 0   ;;  %s2890_s16 = smov 0  }
   0x5 LB: > { %s2905_s17 = sadd.s32 4294967295, %s2822_s16   ;;  %s1932_s18 = sadd.s32 4294967294, %s2822_s16   ;;  %s2822_s16 = sphi %s2890_s16, %s3092_s16   ;;  %s2818_s15 = sphi %s2888_s15, %s3091_s15   ;;  %s2814_s14 = sphi %s2886_s14, %s3090_s14   ;;  %s2810_s13 = sphi %s2884_s13, %s3089_s13  }
   0x6   : > { %s2909_s19 = sadd.s32 1, %s2822_s16   ;;  %s247_s20 = sadd.s32 1, %s2818_s15 }
   0x7   : > { %s244_s21 = ssub.s32 %s2822_s16, %s2909_s19  ;;  %p257_p0 = scmp.ne.s32.totalorder %s2818_s15, %s2814_s14 }
   0x8   : > { %p245_p1 = scmp.eq.s32.totalorder %s244_s21, 0  ;;  %p258_p2 = scmp.eq.s32.totalorder %s2905_s17, 1 }
   0x9   : > { %p263_p3 = scmp.ne.s32.totalorder %s2814_s14, %s2810_s13  ;;  %p264_p4 = scmp.eq.s32.totalorder %s1932_s18, 1 }
   0xa   : > { %s2920_s22 = scalar_select %p245_p1, %s2818_s15, %s247_s20  }
   0xb   : > { %p2922_p5 = por %p258_p2, %p257_p0  ;;  %p2926_p6 = por %p264_p4, %p263_p3 }
   0xc   : > { %3084 = sst [smem:[#allocation13_spill]] %s2920_s22  ;;  %p1933_p7 = scmp.ge.s32.totalorder %s2822_s16, 1 }
   0xd   : > { %p271_p8 = scmp.lt.s32.totalorder %s2822_s16, 3  ;;  %p2645_p9 = scmp.eq.s32.totalorder %s2905_s17, 0 }
   0xe   : > { %s282_s28 = sshll.u32 %s3074_s1, 4  ;;  %s2824_s29 = smov [#allocation4]   ;;  %s283_s28 = int_to_ptr.hbm [resolvable:$true] %s282_s28 }
   0xf   : > { %p2933_p10 = pnand %p1933_p7, %p271_p8  ;;  %s284_s30 = sshll.u32 %s2824_s29, 4  ;;  %s285_s30 = int_to_ptr.vmem [resolvable:$true] %s284_s30 }
  0x10   : > { %s302_s18 = sshll.u32 %s3077_s4, 4  ;;  %s2825_s20 = smov 64   ;;  %s303_s18 = int_to_ptr.hbm [resolvable:$true] %s302_s18 }
  0x11   : > { %p2634_p11 = pneg %p2933_p10  ;;  %s2826_s21 = smov 4  }
  0x12   : > { %s2827_s22 = smov [#allocation7]   ;;  %342 = sbr.rel (%p2933_p10) target bundleno = 570 (0x23a), region = 60 }
  0x13   : > { %p2635_p12 = pnand %p2645_p9, %p2634_p11  ;;  %s304_s26 = sshll.u32 %s2827_s22, 4  ;;  %s305_s26 = int_to_ptr.vmem [resolvable:$true] %s304_s26 }
  0x15   : > { %2637 = dma.hbm_to_vmem [thread:$0]  (!%p2635_p12), %s283_s28, 7168, %s285_s30, [#allocation5], %s2825_s20, %s2825_s20, %s2826_s21  }
  0x16   : > { %2640 = dma.hbm_to_vmem [thread:$0]  (!%p2635_p12), %s303_s18, 10240, %s305_s26, [#allocation8], %s2825_s20, %s2825_s20, %s2826_s21  }
  0x17   : > { %2797 = dma.done.wait (%p2645_p9), [#allocation5], 7168  }
  0x18   : > { %2799 = vsyncadd (%p2645_p9), [#allocation5], 4294960128 }
  0x19   : > { %2801 = dma.done.wait (%p2645_p9), [#allocation8], 10240  }
  0x1a   : > { %2803 = vsyncadd (%p2645_p9), [#allocation8], 4294957056  ;;  %v2828_v0 = vmov 0.0   ;;  %p384_p13 = scmp.lt.s32.totalorder %s2905_s17, 1  ;;  %v2503_v1 = vld [vmem:[#allocation4 + $0x78] sm:$0xff]  ;;  %v2502_v4 = vld [vmem:[#allocation4 + $0x70] sm:$0xff]  ;;  %s1851_s27 = scalar_lea.hbm %s3083_s10, %s2905_s17 }
  0x1b   : > { %393 = vst [vmem:[#allocation2 + $0xc] sm:$0xff] %v2828_v0  ;;  %v2495_v2 = vld [vmem:[#allocation4 + $0x38] sm:$0xff]  ;;  %480 = vmatpush.bf16.msra.mxu0 %v2503_v1  ;;  %v2494_v5 = vld [vmem:[#allocation4 + $0x30] sm:$0xff]  ;;  %v2501_v8 = vld [vmem:[#allocation4 + $0x68] sm:$0xff]  ;;  %vm1794_vm0 = vcmask 1043456   ;;  %s382_s26 = sand.u32 1, %s2814_s14  }
  0x1c   : > { %392 = vst [vmem:[#allocation2] sm:$0xff] %v2828_v0  ;;  %v2511_v3 = vld [vmem:[#allocation4 + $0xb8] sm:$0xff]  ;;  %541 = vmatpush.bf16.msra.mxu1 %v2495_v2  ;;  %s385_s22 = scalar_select %p384_p13, %s2905_s17, 1  ;;  %v2510_v6 = vld [vmem:[#allocation4 + $0xb0] sm:$0xff]  ;;  %v2493_v9 = vld [vmem:[#allocation4 + $0x28] sm:$0xff]  ;;  %vm1840_vm1 = vcmask 57344  }
  0x1d   : > { %967 = vst [vmem:[#allocation3] sm:$0xff] %v2828_v0  ;;  %621 = vmatpush.bf16.msra.mxu2 %v2511_v3  ;;  %v2519_v7 = vld [vmem:[#allocation4 + $0xf8] sm:$0xff]  ;;  %v2509_v10 = vld [vmem:[#allocation4 + $0xa8] sm:$0xff]  ;;  %v2518_v11 = vld [vmem:[#allocation4 + $0xf0] sm:$0xff]  ;;  %s383_s30 = scalar_lea.vmem [#allocation9], %s382_s26  ;;  %s1855_s12 = sshll.u32 %s1851_s27, 4  ;;  %s1856_s12 = int_to_ptr.hbm [resolvable:$true] %s1855_s12 }
  0x1e   : > { %968 = vst [vmem:[#allocation3 + $0xc] sm:$0xff] %v2828_v0  ;;  %s1940_s25 = sshll.u32 %s385_s22, 3  ;;  %702 = vmatpush.bf16.msra.mxu3 %v2519_v7  ;;  %v2500_v12 = vld [vmem:[#allocation4 + $0x60] sm:$0xff]  ;;  %v2517_v15 = vld [vmem:[#allocation4 + $0xe8] sm:$0xff]  ;;  %v2499_v19 = vld [vmem:[#allocation4 + $0x58] sm:$0xff]  ;;  %s1853_s11 = sshll.u32 %s383_s30, 4  ;;  %s1854_s11 = int_to_ptr.vmem [resolvable:$true] %s1853_s11 }
  0x1f   : > { %481 = vmatpush.bf16.msra.mxu0 %v2502_v4  ;;  %s387_s29 = scalar_lea.vmem %s3073_s0, %s1940_s25  ;;  %v2492_v13 = vld [vmem:[#allocation4 + $0x20] sm:$0xff]  ;;  %v2491_v20 = vld [vmem:[#allocation4 + $0x18] sm:$0xff]  ;;  %v2498_v23 = vld [vmem:[#allocation4 + $0x50] sm:$0xff]  ;;  %s1843_s18 = scalar_lea.sflag [#allocation6], %s382_s26 }
  0x20   : > { %542 = vmatpush.bf16.msra.mxu1 %v2494_v5  ;;  %v2508_v14 = vld [vmem:[#allocation4 + $0xa0] sm:$0xff]  ;;  %v388_v16 = vld [vmem:[%s387_s29] ss:$2 sm:$0xf]  ;;  %v2507_v21 = vld [vmem:[#allocation4 + $0x98] sm:$0xff]  ;;  %s2766_s20 = sshra.s32 %s1856_s12, 4  ;;  %s2767_s20 = int_to_ptr.hbm [resolvable:$true] %s2766_s20 }
  0x21   : > { %622 = vmatpush.bf16.msra.mxu2 %v2510_v6  ;;  %v1941_v17 = vld [vmem:[%s387_s29 + $0x1] ss:$2 sm:$0xf]  ;;  %v2516_v22 = vld [vmem:[#allocation4 + $0xe0] sm:$0xff]  ;;  %v2490_v24 = vld [vmem:[#allocation4 + $0x10] sm:$0xff]  ;;  %s2768_s21 = scalar_lea.hbm %s2767_s20, 1  ;;  %p2773_p3 = scmp.lt.s32.totalorder %s2767_s20, %s3083_s10 }
  0x22   : > { %703 = vmatpush.bf16.msra.mxu3 %v2518_v11  ;;  %v2962_v18 = vmax.f32 %v388_v16, %v1941_v17  ;;  %v2506_v25 = vld [vmem:[#allocation4 + $0x90] sm:$0xff]  ;;  %v2515_v26 = vld [vmem:[#allocation4 + $0xd8] sm:$0xff]  ;;  %v2497_v27 = vld [vmem:[#allocation4 + $0x48] sm:$0xff]  ;;  %p2769_p0 = scmp.ne.s32.totalorder %s2767_s20, %s2768_s21  ;;  %s2772_s25 = scalar_lea.hbm %s3083_s10, 2 }
  0x23   : > { %482 = vmatpush.bf16.msra.mxu0 %v2501_v8  ;;  %v2489_v28 = vld [vmem:[#allocation4 + $0x8] sm:$0xff]  ;;  %v2514_v30 = vld [vmem:[#allocation4 + $0xd0] sm:$0xff]  ;;  %v2496_v31 = vld [vmem:[#allocation4 + $0x40] sm:$0xff]  ;;  %p2774_p4 = scmp.lt.s32.totalorder %s2772_s25, %s2768_s21 }
  0x24   : > { %543 = vmatpush.bf16.msra.mxu1 %v2493_v9  ;;  %394 = vst [vmem:[#allocation2 + $0x8] sm:$0xf] %v2962_v18  ;;  %v2505_v29 = vld [vmem:[#allocation4 + $0x88] sm:$0xff]  ;;  %v2488_v32 = vld [vmem:[#allocation4] sm:$0xff]  ;;  %v2527_v35 = vld [vmem:[#allocation4 + $0x138] sm:$0xff]  ;;  %p2770_p1 = pnand %p2769_p0, %p2922_p5 }
  0x25   : > { %623 = vmatpush.bf16.msra.mxu2 %v2509_v10  ;;  %v2504_v33 = vld [vmem:[#allocation4 + $0x80] sm:$0xff]  ;;  %v2535_v38 = vld [vmem:[#allocation4 + $0x178] sm:$0xff]  ;;  %v2513_v40 = vld [vmem:[#allocation4 + $0xc8] sm:$0xff]  ;;  %p2775_p7 = por %p2774_p4, %p2773_p3 }
  0x26   : > { %704 = vmatpush.bf16.msra.mxu3 %v2517_v15  ;;  %v2543_v39 = vld [vmem:[#allocation4 + $0x1b8] sm:$0xff]  ;;  %v2526_v44 = vld [vmem:[#allocation4 + $0x130] sm:$0xff]  ;;  %v2512_v47 = vld [vmem:[#allocation4 + $0xc0] sm:$0xff]  ;;  %p2771_p2 = pneg %p2770_p1 }
  0x27   : > { %483 = vmatpush.bf16.msra.mxu0 %v2500_v12  ;;  %v2534_v45 = vld [vmem:[#allocation4 + $0x170] sm:$0xff]  ;;  %v2559_v49 = vld [vmem:[#allocation7 + $0x78] sm:$0xff]  ;;  %v2525_v50 = vld [vmem:[#allocation4 + $0x128] sm:$0xff] }
  0x28   : > { %544 = vmatpush.bf16.msra.mxu1 %v2492_v13  ;;  %v2542_v46 = vld [vmem:[#allocation4 + $0x1b0] sm:$0xff]  ;;  %v2533_v51 = vld [vmem:[#allocation4 + $0x168] sm:$0xff]  ;;  %v2524_v55 = vld [vmem:[#allocation4 + $0x120] sm:$0xff]  ;;  %p2776_p8 = pnand %p2775_p7, %p2771_p2 }
  0x29   : > { %624 = vmatpush.bf16.msra.mxu2 %v2508_v14  ;;  %v2541_v52 = vld [vmem:[#allocation4 + $0x1a8] sm:$0xff]  ;;  %v2558_v54 = vld [vmem:[#allocation7 + $0x70] sm:$0xff]  ;;  %v2532_v56 = vld [vmem:[#allocation4 + $0x160] sm:$0xff] }
  0x2a   : > { %705 = vmatpush.bf16.msra.mxu3 %v2516_v22  ;;  %v2540_v57 = vld [vmem:[#allocation4 + $0x1a0] sm:$0xff]  ;;  %v2523_v58 = vld [vmem:[#allocation4 + $0x118] sm:$0xff]  ;;  %v2522_v61 = vld [vmem:[#allocation4 + $0x110] sm:$0xff] }
  0x2b   : > { %484 = vmatpush.bf16.msra.mxu0 %v2499_v19  ;;  %v413_v34 = vld [vmem:[#allocation2 + $0x8] sm:$0xf]  ;;  %v2530_v62 = vld [vmem:[#allocation4 + $0x150] sm:$0xff]  ;;  %v2521_v0 = vld [vmem:[#allocation4 + $0x108] sm:$0xff] }
  0x2c   : > { %545 = vmatpush.bf16.msra.mxu1 %v2491_v20  ;;  %v554_v36 = vld [vmem:[#allocation2 + $0x9] sm:$0xf]  ;;  %v2965_v41 = vpack.c.bf16 %v413_v34, %v413_v34  ;;  %v635_v48 = vld [vmem:[#allocation2 + $0x5] sm:$0xf]  ;;  %v2529_v1 = vld [vmem:[#allocation4 + $0x148] sm:$0xff] }
  0x2d   : > { %625 = vmatpush.bf16.msra.mxu2 %v2507_v21  ;;  %v395_v37 = vld [vmem:[#allocation2 + $0x7] sm:$0xf]  ;;  %v555_v42 = vpack.c.bf16 %v554_v36, %v554_v36  ;;  %v636_v53 = vpack.c.bf16 %v635_v48, %v635_v48  ;;  %v2537_v2 = vld [vmem:[#allocation4 + $0x188] sm:$0xff]  ;;  %v2520_v3 = vld [vmem:[#allocation4 + $0x100] sm:$0xff] }
  0x2e   : > { %706 = vmatpush.bf16.msra.mxu3 %v2515_v26  ;;  %v396_v43 = vpack.c.bf16 %v395_v37, %v395_v37  ;;  %v2531_v59 = vld [vmem:[#allocation4 + $0x158] sm:$0xff]  ;;  %v2538_v63 = vld [vmem:[#allocation4 + $0x190] sm:$0xff]  ;;  %v2528_v4 = vld [vmem:[#allocation4 + $0x140] sm:$0xff] }
  0x2f   : > { %485 = vmatpush.bf16.msra.mxu0 %v2498_v23  ;;  %v2539_v60 = vld [vmem:[#allocation4 + $0x198] sm:$0xff]  ;;  %v2536_v5 = vld [vmem:[#allocation4 + $0x180] sm:$0xff]  ;;  %v2550_v9 = vld [vmem:[#allocation7 + $0x30] sm:$0xff] }
  0x30   : > { %546 = vmatpush.bf16.msra.mxu1 %v2490_v24  ;;  %v795_v6 = vld [vmem:[#allocation2 + $0xb] sm:$0xf]  ;;  %v2557_v10 = vld [vmem:[#allocation7 + $0x68] sm:$0xff]  ;;  %v2556_v12 = vld [vmem:[#allocation7 + $0x60] sm:$0xff] }
  0x31   : > { %626 = vmatpush.bf16.msra.mxu2 %v2506_v25  ;;  %v2551_v7 = vld [vmem:[#allocation7 + $0x38] sm:$0xff]  ;;  %v796_v8 = vpack.c.bf16 %v795_v6, %v795_v6  ;;  %v2549_v11 = vld [vmem:[#allocation7 + $0x28] sm:$0xff]  ;;  %v2548_v13 = vld [vmem:[#allocation7 + $0x20] sm:$0xff] }
  0x32   : > { %707 = vmatpush.bf16.msra.mxu3 %v2514_v30  ;;  %v2567_v14 = vld [vmem:[#allocation7 + $0xb8] sm:$0xff]  ;;  %v2566_v19 = vld [vmem:[#allocation7 + $0xb0] sm:$0xff]  ;;  %v2565_v23 = vld [vmem:[#allocation7 + $0xa8] sm:$0xff] }
  0x33   : > { %486 = vmatpush.bf16.msra.mxu0 %v2497_v27  ;;  %v2575_v15 = vld [vmem:[#allocation7 + $0xf8] sm:$0xff]  ;;  %v2574_v20 = vld [vmem:[#allocation7 + $0xf0] sm:$0xff]  ;;  %v2573_v24 = vld [vmem:[#allocation7 + $0xe8] sm:$0xff] }
  0x34   : > { %547 = vmatpush.bf16.msra.mxu1 %v2489_v28  ;;  %v2555_v16 = vld [vmem:[#allocation7 + $0x58] sm:$0xff]  ;;  %v2554_v21 = vld [vmem:[#allocation7 + $0x50] sm:$0xff]  ;;  %v2553_v25 = vld [vmem:[#allocation7 + $0x48] sm:$0xff] }
  0x35   : > { %627 = vmatpush.bf16.msra.mxu2 %v2505_v29  ;;  %v2547_v17 = vld [vmem:[#allocation7 + $0x18] sm:$0xff]  ;;  %v2546_v22 = vld [vmem:[#allocation7 + $0x10] sm:$0xff]  ;;  %v2545_v26 = vld [vmem:[#allocation7 + $0x8] sm:$0xff] }
  0x36   : > { %708 = vmatpush.bf16.msra.mxu3 %v2513_v40  ;;  %v2564_v27 = vld [vmem:[#allocation7 + $0xa0] sm:$0xff]  ;;  %v2591_v34 = vld [vmem:[#allocation7 + $0x178] sm:$0xff]  ;;  %v2570_v36 = vld [vmem:[#allocation7 + $0xd0] sm:$0xff] }
  0x37   : > { %487 = vmatpush.bf16.msra.mxu0 %v2496_v31  ;;  %v2572_v28 = vld [vmem:[#allocation7 + $0xe0] sm:$0xff]  ;;  %v2563_v31 = vld [vmem:[#allocation7 + $0x98] sm:$0xff]  ;;  %v2582_v37 = vld [vmem:[#allocation7 + $0x130] sm:$0xff] }
  0x38   : > { %548 = vmatpush.bf16.msra.mxu1 %v2488_v32  ;;  %v2552_v29 = vld [vmem:[#allocation7 + $0x40] sm:$0xff]  ;;  %v2571_v32 = vld [vmem:[#allocation7 + $0xd8] sm:$0xff]  ;;  %v970_v6 = vld [vmem:[#allocation3 + $0x4] sm:$0xf] }
  0x39   : > { %628 = vmatpush.bf16.msra.mxu2 %v2504_v33  ;;  %v2544_v30 = vld [vmem:[#allocation7] sm:$0xff]  ;;  %v2583_v33 = vld [vmem:[#allocation7 + $0x138] sm:$0xff] }
  0x3a   : > { %488 = vmatmul.bf16.vlgmr.msra.gmra.mxu0 %v2965_v41  ;;  %709 = vmatpush.bf16.msra.mxu3 %v2512_v47  ;;  %v2568_v47 = vld [vmem:[#allocation7 + $0xc0] sm:$0xff] }
  0x3b   : > { %781 = vmatpush.bf16.msrb.mxu0 %v2527_v35  ;;  %549 = vmatmul.bf16.vlgmr.msra.gmra.mxu1 %v396_v43  ;;  %v2562_v35 = vld [vmem:[#allocation7 + $0x90] sm:$0xff]  ;;  %v2581_v43 = vld [vmem:[#allocation7 + $0x128] sm:$0xff] }
  0x3c   : > { %862 = vmatpush.bf16.msrb.mxu1 %v2535_v38  ;;  %629 = vmatmul.bf16.vlgmr.msra.gmra.mxu2 %v555_v42  ;;  %v2569_v42 = vld [vmem:[#allocation7 + $0xc8] sm:$0xff] }
  0x3d   : > { %941 = vmatpush.bf16.msrb.mxu2 %v2543_v39  ;;  %710 = vmatmul.bf16.vlgmr.msra.gmra.mxu3 %v636_v53  ;;  %v2590_v39 = vld [vmem:[#allocation7 + $0x170] sm:$0xff]  ;;  %v2607_v53 = vld [vmem:[#allocation7 + $0x1f8] sm:$0xff] }
  0x3e   : > { %1055 = vmatpush.bf16.msrb.mxu3 %v2559_v49  ;;  %v2580_v49 = vld [vmem:[#allocation7 + $0x120] sm:$0xff] }
  0x3f   : > { %782 = vmatpush.bf16.msrb.mxu0 %v2526_v44  ;;  %v2589_v44 = vld [vmem:[#allocation7 + $0x168] sm:$0xff] }
  0x40   : > { %863 = vmatpush.bf16.msrb.mxu1 %v2534_v45 }
  0x41   : > { %942 = vmatpush.bf16.msrb.mxu2 %v2542_v46  ;;  %v2560_v46 = vld [vmem:[#allocation7 + $0x80] sm:$0xff] }
  0x42   : > { %1056 = vmatpush.bf16.msrb.mxu3 %v2558_v54  ;;  %v2579_v54 = vld [vmem:[#allocation7 + $0x118] sm:$0xff] }
  0x43   : > { %783 = vmatpush.bf16.msrb.mxu0 %v2525_v50  ;;  %v2588_v50 = vld [vmem:[#allocation7 + $0x160] sm:$0xff] }
  0x44   : > { %864 = vmatpush.bf16.msrb.mxu1 %v2533_v51  ;;  %v2599_v51 = vld [vmem:[#allocation7 + $0x1b8] sm:$0xff] }
  0x45   : > { %943 = vmatpush.bf16.msrb.mxu2 %v2541_v52 }
  0x46   : > { %1057 = vmatpush.bf16.msrb.mxu3 %v2557_v10 }
  0x47   : > { %784 = vmatpush.bf16.msrb.mxu0 %v2524_v55  ;;  %v2587_v55 = vld [vmem:[#allocation7 + $0x158] sm:$0xff] }
  0x48   : > { %865 = vmatpush.bf16.msrb.mxu1 %v2532_v56  ;;  %v2598_v56 = vld [vmem:[#allocation7 + $0x1b0] sm:$0xff] }
  0x49   : > { %944 = vmatpush.bf16.msrb.mxu2 %v2540_v57  ;;  %v2606_v57 = vld [vmem:[#allocation7 + $0x1f0] sm:$0xff] }
  0x4a   : > { %1058 = vmatpush.bf16.msrb.mxu3 %v2556_v12  ;;  %v2603_v12 = vld [vmem:[#allocation7 + $0x1d8] sm:$0xff] }
  0x4b   : > { %785 = vmatpush.bf16.msrb.mxu0 %v2523_v58 }
  0x4c   : > { %866 = vmatpush.bf16.msrb.mxu1 %v2531_v59 }
  0x4d   : > { %945 = vmatpush.bf16.msrb.mxu2 %v2539_v60  ;;  %v2578_v60 = vld [vmem:[#allocation7 + $0x110] sm:$0xff] }
  0x4e   : > { %1059 = vmatpush.bf16.msrb.mxu3 %v2555_v16 }
  0x4f   : > { %786 = vmatpush.bf16.msrb.mxu0 %v2522_v61  ;;  %v2586_v61 = vld [vmem:[#allocation7 + $0x150] sm:$0xff] }
  0x50   : > { %867 = vmatpush.bf16.msrb.mxu1 %v2530_v62  ;;  %v2597_v62 = vld [vmem:[#allocation7 + $0x1a8] sm:$0xff] }
  0x51   : > { %946 = vmatpush.bf16.msrb.mxu2 %v2538_v63  ;;  %v2605_v63 = vld [vmem:[#allocation7 + $0x1e8] sm:$0xff] }
  0x52   : > { %1060 = vmatpush.bf16.msrb.mxu3 %v2554_v21 }
  0x53   : > { %787 = vmatpush.bf16.msrb.mxu0 %v2521_v0  ;;  %v2577_v0 = vld [vmem:[#allocation7 + $0x108] sm:$0xff] }
  0x54   : > { %868 = vmatpush.bf16.msrb.mxu1 %v2529_v1  ;;  %v2585_v1 = vld [vmem:[#allocation7 + $0x148] sm:$0xff] }
  0x55   : > { %947 = vmatpush.bf16.msrb.mxu2 %v2537_v2  ;;  %v2596_v2 = vld [vmem:[#allocation7 + $0x1a0] sm:$0xff] }
  0x56   : > { %1061 = vmatpush.bf16.msrb.mxu3 %v2553_v25 }
  0x57   : > { %788 = vmatpush.bf16.msrb.mxu0 %v2520_v3  ;;  %v2604_v3 = vld [vmem:[#allocation7 + $0x1e0] sm:$0xff] }
  0x58   : > { %869 = vmatpush.bf16.msrb.mxu1 %v2528_v4 }
  0x59   : > { %948 = vmatpush.bf16.msrb.mxu2 %v2536_v5 }
  0x5a   : > { %789 = vmatmul.bf16.vlgmr.msrb.gmra.mxu0 %v2965_v41  ;;  %1062 = vmatpush.bf16.msrb.mxu3 %v2552_v29 }
  0x5b   : > { %1116 = vmatpush.bf16.msra.mxu0 %v2551_v7  ;;  %870 = vmatmul.bf16.vlgmr.msrb.gmra.mxu1 %v796_v8  ;;  %v971_v7 = vpack.c.bf16 %v970_v6, %v970_v6  ;;  %v2576_v8 = vld [vmem:[#allocation7 + $0x100] sm:$0xff] }
  0x5c   : > { %949 = vmatmul.bf16.vlgmr.msrb.gmra.mxu2 %v2965_v41  ;;  %1196 = vmatpush.bf16.msra.mxu1 %v2567_v14  ;;  %v2561_v41 = vld [vmem:[#allocation7 + $0x88] sm:$0xff]  ;;  %v2594_v14 = vld [vmem:[#allocation7 + $0x190] sm:$0xff] }
  0x5d   : > { %1277 = vmatpush.bf16.msra.mxu2 %v2575_v15  ;;  %v2602_v15 = vld [vmem:[#allocation7 + $0x1d0] sm:$0xff] }
  0x5e   : > { %1358 = vmatpush.bf16.msra.mxu3 %v2583_v33  ;;  %v2620_v33 = vld [vmem:[#allocation7 + $0x260] sm:$0xff] }
  0x5f   : > { %1117 = vmatpush.bf16.msra.mxu0 %v2550_v9  ;;  %v2584_v9 = vld [vmem:[#allocation7 + $0x140] sm:$0xff] }
  0x60   : > { %1197 = vmatpush.bf16.msra.mxu1 %v2566_v19  ;;  %v2622_v19 = vld [vmem:[#allocation7 + $0x270] sm:$0xff] }
  0x61   : > { %1278 = vmatpush.bf16.msra.mxu2 %v2574_v20 }
  0x62   : > { %1359 = vmatpush.bf16.msra.mxu3 %v2582_v37 }
  0x63   : > { %1118 = vmatpush.bf16.msra.mxu0 %v2549_v11  ;;  %v2595_v11 = vld [vmem:[#allocation7 + $0x198] sm:$0xff] }
  0x64   : > { %1198 = vmatpush.bf16.msra.mxu1 %v2565_v23  ;;  %v2601_v23 = vld [vmem:[#allocation7 + $0x1c8] sm:$0xff] }
  0x65   : > { %1279 = vmatpush.bf16.msra.mxu2 %v2573_v24  ;;  %v2621_v24 = vld [vmem:[#allocation7 + $0x268] sm:$0xff] }
  0x66   : > { %1360 = vmatpush.bf16.msra.mxu3 %v2581_v43  ;;  %v2618_v43 = vld [vmem:[#allocation7 + $0x250] sm:$0xff] }
  0x67   : > { %1119 = vmatpush.bf16.msra.mxu0 %v2548_v13  ;;  %v2623_v13 = vld [vmem:[#allocation7 + $0x278] sm:$0xff] }
  0x68   : > { %1199 = vmatpush.bf16.msra.mxu1 %v2564_v27  ;;  %v2592_v27 = vld [vmem:[#allocation7 + $0x180] sm:$0xff] }
  0x69   : > { %1280 = vmatpush.bf16.msra.mxu2 %v2572_v28  ;;  %v2600_v28 = vld [vmem:[#allocation7 + $0x1c0] sm:$0xff] }
  0x6a   : > { %1361 = vmatpush.bf16.msra.mxu3 %v2580_v49 }
  0x6b   : > { %1120 = vmatpush.bf16.msra.mxu0 %v2547_v17 }
  0x6c   : > { %1200 = vmatpush.bf16.msra.mxu1 %v2563_v31  ;;  %v2688_v31 = vld [vmem:[%s3076_s3] ss:$0 sm:$0xff] }
  0x6d   : > { %1281 = vmatpush.bf16.msra.mxu2 %v2571_v32 }
  0x6e   : > { %1362 = vmatpush.bf16.msra.mxu3 %v2579_v54 }
  0x6f   : > { %1121 = vmatpush.bf16.msra.mxu0 %v2546_v22  ;;  %v2593_v22 = vld [vmem:[#allocation7 + $0x188] sm:$0xff] }
  0x70   : > { %1201 = vmatpush.bf16.msra.mxu1 %v2562_v35 }
  0x71   : > { %1282 = vmatpush.bf16.msra.mxu2 %v2570_v36  ;;  %v1372_v36 = vld [vmem:[#allocation3 + $0x2] sm:$0xf] }
  0x72   : > { %1363 = vmatpush.bf16.msra.mxu3 %v2578_v60  ;;  %v1373_v37 = vpack.c.bf16 %v1372_v36, %v1372_v36  ;;  %v1807_v36 = vld [vmem:[%s3081_s8 + $0x20] sm:$0xff] }
  0x73   : > { %1122 = vmatpush.bf16.msra.mxu0 %v2545_v26  ;;  %v2687_v26 = vld [vmem:[%s3075_s2] ss:$0 sm:$0xff] }
  0x74   : > { %1202 = vmatpush.bf16.msra.mxu1 %v2561_v41 }
  0x75   : > { %1283 = vmatpush.bf16.msra.mxu2 %v2569_v42 }
  0x76   : > { %1364 = vmatpush.bf16.msra.mxu3 %v2577_v0  ;;  %v2609_v0 = vld [vmem:[#allocation7 + $0x208] sm:$0xff] }
  0x77   : > { %1123 = vmatpush.bf16.msra.mxu0 %v2544_v30 }
  0x78   : > { %1203 = vmatpush.bf16.msra.mxu1 %v2560_v46  ;;  %v2616_v46 = vld [vmem:[#allocation7 + $0x240] sm:$0xff] }
  0x79   : > { %1284 = vmatpush.bf16.msra.mxu2 %v2568_v47 }
  0x7a   : > { %1124 = vmatmul.bf16.vlgmr.msra.gmra.mxu0 %v971_v7  ;;  %1365 = vmatpush.bf16.msra.mxu3 %v2576_v8 }
  0x7b   : > { %1439 = vmatpush.bf16.msrb.mxu0 %v2591_v34 }
  0x7c   : > { %1520 = vmatpush.bf16.msrb.mxu1 %v2599_v51 }
  0x7d   : > { %1599 = vmatpush.bf16.msrb.mxu2 %v2607_v53  ;;  %v1694_v53 = vld [vmem:[#allocation3 + $0xe] sm:$0xf] }
  0x7e   : > { %v1695_v54 = vpack.c.bf16 %v1694_v53, %v1694_v53  ;;  %v2689_v53 = vld [vmem:[%s3080_s7] ss:$0 sm:$0xff] }
  0x7f   : > { %1440 = vmatpush.bf16.msrb.mxu0 %v2590_v39  ;;  %v2619_v39 = vld [vmem:[#allocation7 + $0x258] sm:$0xff] }
  0x80   : > { %1521 = vmatpush.bf16.msrb.mxu1 %v2598_v56  ;;  %v2613_v56 = vld [vmem:[#allocation7 + $0x228] sm:$0xff] }
  0x81   : > { %1600 = vmatpush.bf16.msrb.mxu2 %v2606_v57  ;;  %v2612_v57 = vld [vmem:[#allocation7 + $0x220] sm:$0xff] }
  0x83   : > { %1441 = vmatpush.bf16.msrb.mxu0 %v2589_v44  ;;  %v2617_v44 = vld [vmem:[#allocation7 + $0x248] sm:$0xff] }
  0x84   : > { %1522 = vmatpush.bf16.msrb.mxu1 %v2597_v62 }
  0x85   : > { %1601 = vmatpush.bf16.msrb.mxu2 %v2605_v63  ;;  %v2610_v63 = vld [vmem:[#allocation7 + $0x210] sm:$0xff] }
  0x87   : > { %1442 = vmatpush.bf16.msrb.mxu0 %v2588_v50 }
  0x88   : > { %1523 = vmatpush.bf16.msrb.mxu1 %v2596_v2 }
  0x89   : > { %1602 = vmatpush.bf16.msrb.mxu2 %v2604_v3 }
  0x8b   : > { %1443 = vmatpush.bf16.msrb.mxu0 %v2587_v55  ;;  %v2614_v55 = vld [vmem:[#allocation7 + $0x230] sm:$0xff] }
  0x8c   : > { %1524 = vmatpush.bf16.msrb.mxu1 %v2595_v11 }
  0x8d   : > { %1603 = vmatpush.bf16.msrb.mxu2 %v2603_v12  ;;  %v1818_v12 = vld [vmem:[%s3081_s8 + $0x78] sm:$0xff] }
  0x8f   : > { %1444 = vmatpush.bf16.msrb.mxu0 %v2586_v61  ;;  %v2611_v61 = vld [vmem:[#allocation7 + $0x218] sm:$0xff] }
  0x90   : > { %1525 = vmatpush.bf16.msrb.mxu1 %v2594_v14  ;;  %v1817_v14 = vld [vmem:[%s3081_s8 + $0x70] sm:$0xff] }
  0x91   : > { %1604 = vmatpush.bf16.msrb.mxu2 %v2602_v15 }
  0x93   : > { %1445 = vmatpush.bf16.msrb.mxu0 %v2585_v1  ;;  %v2608_v1 = vld [vmem:[#allocation7 + $0x200] sm:$0xff] }
  0x94   : > { %1526 = vmatpush.bf16.msrb.mxu1 %v2593_v22  ;;  %v1814_v22 = vld [vmem:[%s3081_s8 + $0x58] sm:$0xff] }
  0x95   : > { %1605 = vmatpush.bf16.msrb.mxu2 %v2601_v23 }
  0x97   : > { %1446 = vmatpush.bf16.msrb.mxu0 %v2584_v9 }
  0x98   : > { %1527 = vmatpush.bf16.msrb.mxu1 %v2592_v27  ;;  %v1811_v27 = vld [vmem:[%s3081_s8 + $0x40] sm:$0xff] }
  0x99   : > { %1606 = vmatpush.bf16.msrb.mxu2 %v2600_v28  ;;  %v1810_v28 = vld [vmem:[%s3081_s8 + $0x38] sm:$0xff] }
  0x9a   : > { %1447 = vmatmul.bf16.vlgmr.msrb.gmra.mxu0 %v1373_v37 }
  0x9b   : > { %1761 = vmatpush.bf16.msra.mxu0 %v2623_v13 }
  0x9f   : > { %1762 = vmatpush.bf16.msra.mxu0 %v2622_v19 }
  0xa3   : > { %1763 = vmatpush.bf16.msra.mxu0 %v2621_v24  ;;  %v1813_v24 = vld [vmem:[%s3081_s8 + $0x50] sm:$0xff] }
  0xa7   : > { %1764 = vmatpush.bf16.msra.mxu0 %v2620_v33 }
  0xab   : > { %1765 = vmatpush.bf16.msra.mxu0 %v2619_v39 }
  0xaf   : > { %1766 = vmatpush.bf16.msra.mxu0 %v2618_v43 }
  0xb3   : > { %1767 = vmatpush.bf16.msra.mxu0 %v2617_v44  ;;  %v1804_v44 = vld [vmem:[%s3081_s8 + $0x8] sm:$0xff] }
  0xb7   : > { %v489_v38 = vpop.f32.mrf.mxu0  ;;  %1768 = vmatpush.bf16.msra.mxu0 %v2616_v46 }
  0xb8   : > { %v550_v40 = vpop.f32.mrf.mxu1 }
  0xb9   : > { %v551_v4 = vadd.f32 %v550_v40, %v489_v38 }
  0xba   : > { %1769 = vmatmul.bf16.vlgmr.msra.gmra.mxu0 %v1695_v54 }
  0xbf   : > { %v630_v45 = vpop.f32.mrf.mxu2  ;;  %v491_v48 = vpop.f32.mrf.mxu0 }
  0xc0   : > { %v552_v52 = vpop.f32.mrf.mxu1  ;;  %v711_v58 = vpop.f32.mrf.mxu3  ;;  %v634_v10 = vadd.f32 %v630_v45, %v551_v4  ;;  %v2615_v45 = vld [vmem:[#allocation7 + $0x238] sm:$0xff] }
  0xc2   : > { %v715_v16 = vadd.f32 %v711_v58, %v634_v10  ;;  %v1291_v58 = vld [vmem:[#allocation3 + $0xc] sm:$0xf] }
  0xc3   : > { %v1292_v60 = vpack.c.bf16 %v1291_v58, %v1291_v58 }
  0xc7   : > { %v632_v59 = vpop.f32.mrf.mxu2 }
  0xc8   : > { %v713_v5 = vpop.f32.mrf.mxu3 }
  0xd7   : > { %v790_v17 = vpop.f32.mrf.mxu0 }
  0xd8   : > { %v871_v20 = vpop.f32.mrf.mxu1  ;;  %v794_v21 = vadd.f32 %v790_v17, %v715_v16  ;;  %v1816_v16 = vld [vmem:[%s3081_s8 + $0x68] sm:$0xff]  ;;  %v1815_v17 = vld [vmem:[%s3081_s8 + $0x60] sm:$0xff] }
  0xda   : > { %v875_v25 = vadd.f32 %v871_v20, %v794_v21 }
  0xdf   : > { %v950_v29 = vpop.f32.mrf.mxu2  ;;  %v792_v32 = vpop.f32.mrf.mxu0 }
  0xe0   : > { %v954_v30 = vadd.f32 %v950_v29, %v875_v25  ;;  %v873_v34 = vpop.f32.mrf.mxu1  ;;  %v1809_v32 = vld [vmem:[%s3081_s8 + $0x30] sm:$0xff] }
  0xe2   : > { %v959_v35 = vmul.f32 %v2687_v26, %v954_v30  ;;  %v1812_v26 = vld [vmem:[%s3081_s8 + $0x48] sm:$0xff] }
  0xe4   : > { %v964_v38 = vadd.f32 %v2688_v31, %v959_v35  ;;  %v1808_v35 = vld [vmem:[%s3081_s8 + $0x28] sm:$0xff] }
  0xe6   : > { %v965_v40 = vmul.f32 0.01, %v964_v38 }
  0xe7   : > { %v952_v41 = vpop.f32.mrf.mxu2 }
  0xe8   : > { %v2976_v42 = vmax.f32 %v964_v38, %v965_v40  ;;  %v1806_v38 = vld [vmem:[%s3081_s8 + $0x18] sm:$0xff]  ;;  %v1805_v41 = vld [vmem:[%s3081_s8 + $0x10] sm:$0xff] }
  0xea   : > { %969 = vst [vmem:[#allocation3 + $0x8] sm:$0xf] %v2976_v42 }
  0xf1   : > { %v988_v47 = vld [vmem:[#allocation3 + $0x6] sm:$0xf]  ;;  %v1210_v49 = vld [vmem:[#allocation3 + $0xa] sm:$0xf] }
  0xf2   : > { %v1129_v48 = vld [vmem:[#allocation3 + $0x8] sm:$0xf]  ;;  %v989_v50 = vpack.c.bf16 %v988_v47, %v988_v47  ;;  %v1211_v52 = vpack.c.bf16 %v1210_v49, %v1210_v49  ;;  %v2690_v49 = vld [vmem:[%s3078_s5] ss:$0 sm:$0xff] }
  0xf3   : > { %v1130_v51 = vpack.c.bf16 %v1129_v48, %v1129_v48  ;;  %v1453_v59 = vld [vmem:[#allocation3 + $0x5] sm:$0xf]  ;;  %v1613_v2 = vld [vmem:[#allocation3 + $0xb] sm:$0xf] }
  0xf4   : > { %1063 = vmatmul.bf16.vlgmr.msrb.gmra.mxu3 %v989_v50  ;;  %1285 = vmatmul.bf16.vlgmr.msra.gmra.mxu2 %v1211_v52  ;;  %v1454_v62 = vpack.c.bf16 %v1453_v59, %v1453_v59  ;;  %v1614_v3 = vpack.c.bf16 %v1613_v2, %v1613_v2 }
  0xf5   : > { %1204 = vmatmul.bf16.vlgmr.msra.gmra.mxu1 %v1130_v51  ;;  %1680 = vmatpush.bf16.msrb.mxu3 %v2615_v45  ;;  %v1803_v45 = vld [vmem:[%s3081_s8] sm:$0xff] }
  0xf6   : > { %1820 = vmatpush.msra.mxu1 %v1818_v12 }
  0xf7   : > { %v1125_v4 = vpop.f32.mrf.mxu0 }
  0xf8   : > { %1821 = vmatpush.msra.mxu1 %v1817_v14 }
  0xf9   : > { %1681 = vmatpush.bf16.msrb.mxu3 %v2614_v55 }
  0xfa   : > { %1822 = vmatpush.msra.mxu1 %v1816_v16 }
  0xfc   : > { %1823 = vmatpush.msra.mxu1 %v1815_v17 }
  0xfd   : > { %1682 = vmatpush.bf16.msrb.mxu3 %v2613_v56 }
  0xfe   : > { %1824 = vmatpush.msra.mxu1 %v1814_v22 }
  0xff   : > { %v1127_v5 = vpop.f32.mrf.mxu0 }
 0x100   : > { %1825 = vmatpush.msra.mxu1 %v1813_v24 }
 0x101   : > { %1683 = vmatpush.bf16.msrb.mxu3 %v2612_v57  ;;  %v1791_v57 = vmul.f32 %v2689_v53, %v2976_v42  ;;  %v1819_v42 = vld [vmem:[%s3082_s9] sm:$0x1] }
 0x102   : > { %1826 = vmatpush.msra.mxu1 %v1812_v26 }
 0x104   : > { %1366 = vmatmul.bf16.vlgmr.msra.gmra.mxu3 %v1292_v60  ;;  %1607 = vmatmul.bf16.vlgmr.msrb.gmra.mxu2 %v1130_v51  ;;  %v2691_v51 = vld [vmem:[%s3079_s6] ss:$0 sm:$0xff] }
 0x105   : > { %1528 = vmatmul.bf16.vlgmr.msrb.gmra.mxu1 %v1454_v62  ;;  %1684 = vmatpush.bf16.msrb.mxu3 %v2611_v61 }
 0x106   : > { %1827 = vmatpush.msra.mxu1 %v1811_v27 }
 0x108   : > { %1828 = vmatpush.msra.mxu1 %v1810_v28 }
 0x109   : > { %1685 = vmatpush.bf16.msrb.mxu3 %v2610_v63 }
 0x10a   : > { %1829 = vmatpush.msra.mxu1 %v1809_v32 }
 0x10c   : > { %1830 = vmatpush.msra.mxu1 %v1808_v35 }
 0x10d   : > { %1686 = vmatpush.bf16.msrb.mxu3 %v2609_v0 }
 0x10e   : > { %1831 = vmatpush.msra.mxu1 %v1807_v36 }
 0x110   : > { %1832 = vmatpush.msra.mxu1 %v1806_v38 }
 0x111   : > { %1687 = vmatpush.bf16.msrb.mxu3 %v2608_v1 }
 0x112   : > { %1833 = vmatpush.msra.mxu1 %v1805_v41 }
 0x114   : > { %1688 = vmatmul.bf16.vlgmr.msrb.gmra.mxu3 %v1614_v3  ;;  %1834 = vmatpush.msra.mxu1 %v1804_v44 }
 0x116   : > { %1835 = vmatpush.msra.mxu1 %v1803_v45 }
 0x117   : > { %v1448_v6 = vpop.f32.mrf.mxu0 }
 0x11f   : > { %v1450_v7 = vpop.f32.mrf.mxu0 }
 0x137   : > { %v1770_v9 = vpop.f32.mrf.mxu0 }
 0x13f   : > { %v1772_v15 = vpop.f32.mrf.mxu0 }
 0x172   : > { %v1205_v8 = vpop.f32.mrf.mxu1 }
 0x177   : > { %v1064_v10 = vpop.f32.mrf.mxu3  ;;  %v1286_v11 = vpop.f32.mrf.mxu2 }
 0x178   : > { %v1126_v20 = vadd.f32 %v1125_v4, %v1064_v10 }
 0x17a   : > { %v1207_v13 = vpop.f32.mrf.mxu1  ;;  %v1209_v25 = vadd.f32 %v1205_v8, %v1126_v20 }
 0x17c   : > { %v1290_v30 = vadd.f32 %v1286_v11, %v1209_v25 }
 0x17f   : > { %v1066_v19 = vpop.f32.mrf.mxu3  ;;  %v1288_v21 = vpop.f32.mrf.mxu2 }
 0x182   : > { %v1529_v23 = vpop.f32.mrf.mxu1 }
 0x187   : > { %v1367_v29 = vpop.f32.mrf.mxu3  ;;  %v1608_v31 = vpop.f32.mrf.mxu2 }
 0x188   : > { %v1371_v34 = vadd.f32 %v1367_v29, %v1290_v30 }
 0x18a   : > { %v1531_v33 = vpop.f32.mrf.mxu1  ;;  %v1452_v37 = vadd.f32 %v1448_v6, %v1371_v34 }
 0x18c   : > { %v1533_v43 = vadd.f32 %v1529_v23, %v1452_v37 }
 0x18e   : > { %v1612_v46 = vadd.f32 %v1608_v31, %v1533_v43 }
 0x18f   : > { %v1369_v39 = vpop.f32.mrf.mxu3  ;;  %v1610_v40 = vpop.f32.mrf.mxu2 }
 0x197   : > { %v1689_v47 = vpop.f32.mrf.mxu3 }
 0x198   : > { %v1693_v48 = vadd.f32 %v1689_v47, %v1612_v46 }
 0x19a   : > { %v1774_v50 = vadd.f32 %v1770_v9, %v1693_v48 }
 0x19c   : > { %v1779_v52 = vmul.f32 %v2690_v49, %v1774_v50 }
 0x19e   : > { %v1784_v54 = vadd.f32 %v2691_v51, %v1779_v52 }
 0x19f   : > { %v1691_v55 = vpop.f32.mrf.mxu3 }
 0x1a0   : > { %v1785_v56 = vmul.f32 0.01, %v1784_v54 }
 0x1a2   : > { %v1786_v58 = vmax.f32 %v1784_v54, %v1785_v56 }
 0x1a4   : > { %v1792_v59 = vadd.f32 %v1791_v57, %v1786_v58 }
 0x1a6   : > { %v1793_v60 = vadd.f32 %v1792_v59, %v2962_v18 }
 0x1a8   : > { %v1795_v61 = vsel %vm1794_vm0, %v1793_v60, 0.0 }
 0x1a9   : > { %v1796_v62 = vrot.slane %v1795_v61, 4 }
 0x1ab   : > { %v1797_v63 = vadd.f32 %v1796_v62, %v1795_v61 }
 0x1ad   : > { %v1798_v0 = vrot.slane %v1797_v63, 2 }
 0x1af   : > { %v1799_v1 = vadd.f32 %v1798_v0, %v1797_v63 }
 0x1b1   : > { %v1800_v2 = vrot.slane %v1799_v1, 1 }
 0x1b3   : > { %v1801_v3 = vadd.f32 %v1800_v2, %v1799_v1 }
 0x1b5   : > { %v1802_v4 = vmul.f32 0.25, %v1801_v3 }
 0x1b7   : > { %1836 = vmatmul.f32.vlgmr.msra.gmra.mxu1 %v1802_v4 }
 0x234   : > { %v1837_v18 = vpop.f32.mrf.mxu1 }
 0x235   : > { %v1838_v5 = vadd.f32 %v1837_v18, %v1819_v42 }
 0x237   : > { %1841 = vst.msk [vmem:[%s383_s30] sm:$0x1] %vm1840_vm1, %v1838_v5 }
 0x238   : > { %2779 = shalt.err (!%p2776_p8)
}
 0x239   : > { %2632 = dma.vmem_to_hbm [thread:$0]  (%p2922_p5), %s1854_s11, 16, %s1856_s12, %s1843_s18  }
 0x23a PF: > { %p2649_p9 = scmp.ge.s32.totalorder %s2822_s16, 2  ;;  %s1867_s26 = sand.u32 1, %s2810_s13  }
 0x23b   : > { %s1868_s29 = scalar_lea.sflag [#allocation6], %s1867_s26 }
 0x23c   : > { %p2642_p10 = pnand %p2649_p9, %p2926_p6 }
 0x23e   : > { %p2643_p11 = pneg %p2642_p10 }
 0x240   : > { %2805 = dma.done.wait (%p2643_p11), %s1868_s29, 16  }
 0x241   : > { %2807 = vsyncadd (%p2643_p11), %s1868_s29, 4294967280  ;;  %s3088_s30 = sld [smem:[#allocation13_spill]]  ;;  %p22_p12 = scmp.ge.s32.totalorder %s2909_s19, 4  }
 0x242   : > { %s3089_s13 = smov %s2814_s14  ;;  %s3090_s14 = smov %s2818_s15 }
 0x243   : > { %s3092_s16 = smov %s2909_s19  ;;  %24 = sbr.rel (!%p22_p12) target bundleno = 5 (0x5), region = 120 }
 0x247   : > { %s3091_s15 = smov %s3088_s30 }
 0x248   :  { %1873 = vsyncpa [#allocation5], 1 }
 0x249   :  { %1875 = vsyncpa [#allocation5 + $0x1], 1 }
 0x24a   :  { %1876 = vsyncpa [#allocation8], 1 }
 0x24b   :  { %1877 = vsyncpa [#allocation6], 1 }
 0x24c   :  { %1879 = vsyncpa [#allocation6 + $0x1], 1 }

</bundles_post_ra>
